<compile_context>
chip_gen: v5e
topology: v5e:2x2
jax: 0.10.0
libtpu: 0.0.40
codegen_flags: <defaults>
</compile_context>

<pallas_src>
import functools

import jax
import jax.numpy as jnp
from jax.experimental import pallas as pl
from jax.experimental.pallas import tpu as pltpu

_VMEM_LIMIT = 32 * 1024 * 1024  # explicit scoped-VMEM budget (safe on v5e/v6e/v7x)
_GATHER_ROWS = 8                # embedding rows gathered per grid step


def _round_up(x, m):
    return ((x + m - 1) // m) * m


def _pick_tile(extent, cap, mult):
    """Tile size <= cap, multiple of `mult`, chosen to minimize padding waste."""
    padded = _round_up(extent, mult)
    if padded <= cap:
        return padded
    tiles = -(-padded // cap)
    return _round_up(-(-extent // tiles), mult)


def _sigmoid(z):
    # exp goes to the EUP; keep gate math in f32 (v5e has no bf16 VPU/EUP path).
    return 1.0 / (1.0 + jnp.exp(-z))


# --------------------------------------------------------------------------------------
# Kernel 1: tiled matmul + fused bias epilogue (input projection and final fc)
# --------------------------------------------------------------------------------------
def _matmul_bias_kernel(x_ref, w_ref, b_ref, o_ref):
    acc = jnp.dot(x_ref[...], w_ref[...], preferred_element_type=jnp.float32)
    o_ref[...] = acc + b_ref[...]


def matmul_bias(x, w_t, bias, *, tm_cap=256, tn_cap=512):
    """y = x @ w_t + bias with (M, N) grid, bf16 MXU operands, f32 accumulate.

    x: (M, K) f32, w_t: (K, N) f32/bf16, bias: (N,) f32 -> (M, N) f32."""
    m, k = x.shape
    n = w_t.shape[1]

    # Lane-dense, VMEM-bounded output tiles: N gridded in multiples of 128.
    n128 = _round_up(n, 128)
    tn = n128 if n128 <= tn_cap else tn_cap
    n_pad = _round_up(n, tn)

    # M tile: multiple of 16 (bf16 sublane packing); 128-aligned when M is large
    # so the v5e 4x128x128 / v6e 2x256x256 MXUs stay fed; minimal padding overshoot.
    tm = _pick_tile(m, tm_cap, 16 if m < 128 else 128)
    m_pad = _round_up(m, tm)

    if n_pad != n:
        w_t = jnp.pad(w_t, ((0, 0), (0, n_pad - n)))
        bias = jnp.pad(bias, (0, n_pad - n))
    if m_pad != m:
        x = jnp.pad(x, ((0, m_pad - m), (0, 0)))

    x_bf = x.astype(jnp.bfloat16)  # activations cast per call; weights arrive pre-cast
    w_bf = w_t if w_t.dtype == jnp.bfloat16 else w_t.astype(jnp.bfloat16)
    b2 = bias.reshape(1, n_pad).astype(jnp.float32)

    out = pl.pallas_call(
        _matmul_bias_kernel,
        out_shape=jax.ShapeDtypeStruct((m_pad, n_pad), jnp.float32),
        grid_spec=pltpu.PrefetchScalarGridSpec(
            num_scalar_prefetch=0,
            grid=(m_pad // tm, n_pad // tn),
            in_specs=[
                pl.BlockSpec((tm, k), lambda i, j: (i, 0)),    # streamed over M
                pl.BlockSpec((k, tn), lambda i, j: (0, j)),    # weight column tile
                pl.BlockSpec((1, tn), lambda i, j: (0, j)),    # bias column tile
            ],
            out_specs=pl.BlockSpec((tm, tn), lambda i, j: (i, j)),
        ),
        compiler_params=pltpu.CompilerParams(
            dimension_semantics=("parallel", "parallel"),
            vmem_limit_bytes=_VMEM_LIMIT),
    )(x_bf, w_bf, b2)
    return out[:m, :n]


# --------------------------------------------------------------------------------------
# Kernel 2: batched embedding row gather (manual DMAs from an HBM-resident table,
#           token ids scalar-prefetched into SMEM)
# --------------------------------------------------------------------------------------
def _embed_gather_kernel(ids_ref, table_hbm, out_ref, buf, sems):
    base = pl.program_id(0) * _GATHER_ROWS
    copies = []
    for g in range(_GATHER_ROWS):
        row = ids_ref[base + g]
        cp = pltpu.make_async_copy(table_hbm.at[pl.ds(row, 1)],
                                   buf.at[pl.ds(g, 1)],
                                   sems.at[g])
        cp.start()
        copies.append(cp)
    for cp in copies:
        cp.wait()
    out_ref[...] = buf[...]


def embedding_lookup(table, ids):
    """nn.Embedding: gather rows of `table` (V, E) at `ids` (N,) -> (N, E) f32."""
    _, e = table.shape
    n = ids.shape[0]
    n_pad = _round_up(n, _GATHER_ROWS)
    ids_p = jnp.pad(ids.astype(jnp.int32), (0, n_pad - n))
    out = pl.pallas_call(
        _embed_gather_kernel,
        out_shape=jax.ShapeDtypeStruct((n_pad, e), jnp.float32),
        grid_spec=pltpu.PrefetchScalarGridSpec(
            num_scalar_prefetch=1,                       # ids -> SMEM
            grid=(n_pad // _GATHER_ROWS,),
            in_specs=[pl.BlockSpec(memory_space=pl.ANY)],  # table stays in HBM
            out_specs=pl.BlockSpec((_GATHER_ROWS, e), lambda i, ids_ref: (i, 0)),
            scratch_shapes=[
                pltpu.VMEM((_GATHER_ROWS, e), jnp.float32),
                pltpu.SemaphoreType.DMA((_GATHER_ROWS,)),
            ],
        ),
        compiler_params=pltpu.CompilerParams(
            dimension_semantics=("arbitrary",),
            vmem_limit_bytes=_VMEM_LIMIT),
    )(ids_p, table)
    return out[:n]


# --------------------------------------------------------------------------------------
# Kernel 3: whole-sequence LSTM recurrence in ONE grid step; h/c are vreg loop carries.
#           Input is the precomputed x @ W_ih^T + (b_ih + b_hh) slab, batch-major,
#           flattened to (B, T*4H) so each timestep is a static 128-aligned lane slice.
# --------------------------------------------------------------------------------------
def _lstm_seq_kernel(xp_ref, whh_ref, h_out_ref, *, hidden, t_len):
    bsz = xp_ref.shape[0]
    four_h = 4 * hidden
    whh = whh_ref[...]                                   # (H, 4H) f32, loaded once
    h = jnp.zeros((bsz, hidden), jnp.float32)
    c = jnp.zeros((bsz, hidden), jnp.float32)
    for t in range(t_len):                               # static unroll; carries stay in vregs
        x_t = xp_ref[:, t * four_h:(t + 1) * four_h]     # (B, 4H) lane-aligned slice
        # f32 recurrent matmul (keeps rounding error from compounding over timesteps)
        gates = x_t + jnp.dot(h, whh, preferred_element_type=jnp.float32)
        i_g = _sigmoid(gates[:, 0 * hidden:1 * hidden])
        f_g = _sigmoid(gates[:, 1 * hidden:2 * hidden])
        g_g = jnp.tanh(gates[:, 2 * hidden:3 * hidden])
        o_g = _sigmoid(gates[:, 3 * hidden:4 * hidden])
        c = f_g * c + i_g * g_g
        h = o_g * jnp.tanh(c)
        h_out_ref[:, t * hidden:(t + 1) * hidden] = h    # lane-aligned store


def lstm_recurrence(xproj_2d, w_hh_t, bsz, t_len, hidden):
    """xproj_2d: (B, T*4H) f32, biases folded; w_hh_t: (H, 4H) f32.
    Returns all hidden states as (B, T*H) f32 (batch-major). Zero initial state."""
    four_h = 4 * hidden
    kernel = functools.partial(_lstm_seq_kernel, hidden=hidden, t_len=t_len)
    return pl.pallas_call(
        kernel,
        out_shape=jax.ShapeDtypeStruct((bsz, t_len * hidden), jnp.float32),
        grid_spec=pltpu.PrefetchScalarGridSpec(
            num_scalar_prefetch=0,
            grid=(1,),                                    # single step: whole slabs in VMEM
            in_specs=[
                pl.BlockSpec((bsz, t_len * four_h), lambda i: (0, 0)),
                pl.BlockSpec((hidden, four_h), lambda i: (0, 0)),
            ],
            out_specs=pl.BlockSpec((bsz, t_len * hidden), lambda i: (0, 0)),
        ),
        compiler_params=pltpu.CompilerParams(
            dimension_semantics=("arbitrary",),
            vmem_limit_bytes=_VMEM_LIMIT),
    )(xproj_2d, w_hh_t)


# --------------------------------------------------------------------------------------
# DecoderRNN.forward
# --------------------------------------------------------------------------------------
@jax.jit
def decoder_rnn_forward(features, captions, params):
    """features: (B, embed_size) f32, captions: (B, L) int32 -> logits (B, L, vocab)."""
    embed_w = params["embed_w"]
    hidden = params["w_hh_t"].shape[0]
    emb_dim = embed_w.shape[1]
    bsz, cap_len = captions.shape

    # captions[:, :-1] -> batched Pallas DMA gather of embedding rows (batch-major ids)
    cap = captions[:, :-1]
    ids = cap.reshape(-1)
    emb = embedding_lookup(embed_w, ids).reshape(bsz, cap_len - 1, emb_dim)

    # torch.cat([features.unsqueeze(1), embed], 1)  -> (B, T, E), batch-major
    x_seq = jnp.concatenate([features[:, None, :].astype(jnp.float32), emb], axis=1)
    t_len = x_seq.shape[1]

    # Input projection for ALL timesteps in one gridded matmul; fold b_ih + b_hh here.
    xproj = matmul_bias(x_seq.reshape(bsz * t_len, emb_dim),
                        params["w_ih_t_bf16"],
                        params["b_ih"] + params["b_hh"])          # (B*T, 4H)

    # Sequential LSTM recurrence; (B*T,4H)->(B,T*4H) and (B,T*H)->(B*T,H) are free reshapes,
    # so there is no transpose anywhere around the recurrence.
    h_all = lstm_recurrence(xproj.reshape(bsz, t_len * 4 * hidden),
                            params["w_hh_t"], bsz, t_len, hidden)  # (B, T*H)

    # self.fc(output) over all timesteps in one gridded matmul.
    logits = matmul_bias(h_all.reshape(bsz * t_len, hidden),
                         params["w_fc_t_bf16"], params["b_fc"])    # (B*T, V)
    return logits.reshape(bsz, t_len, -1)


# --------------------------------------------------------------------------------------
# Deterministic synthetic parameters (PyTorch-style init scales, stored transposed).
# MXU weights are pre-cast to bf16 ONCE here (no per-call convert inside the jit).
# --------------------------------------------------------------------------------------
def make_decoder_params(key, vocab_size, embed_size, hidden_size):
    ks = jax.random.split(key, 7)
    bound = 1.0 / float(hidden_size) ** 0.5
    params = {
        # nn.Embedding default init: N(0, 1)
        "embed_w": jax.random.normal(ks[0], (vocab_size, embed_size), jnp.float32),
        # nn.LSTM weights stored transposed for x @ W^T: (E, 4H), (H, 4H); gate order i,f,g,o
        "w_ih_t": jax.random.uniform(ks[1], (embed_size, 4 * hidden_size), jnp.float32,
                                     -bound, bound),
        "w_hh_t": jax.random.uniform(ks[2], (hidden_size, 4 * hidden_size), jnp.float32,
                                     -bound, bound),
        "b_ih": jax.random.uniform(ks[3], (4 * hidden_size,), jnp.float32, -bound, bound),
        "b_hh": jax.random.uniform(ks[4], (4 * hidden_size,), jnp.float32, -bound, bound),
        # nn.Linear(hidden, vocab), stored as (H, V) = W^T
        "w_fc_t": jax.random.uniform(ks[5], (hidden_size, vocab_size), jnp.float32,
                                     -bound, bound),
        "b_fc": jax.random.uniform(ks[6], (vocab_size,), jnp.float32, -bound, bound),
    }
    # Pre-cast MXU operands once (W_hh stays f32 for the recurrent matmul).
    params["w_ih_t_bf16"] = params["w_ih_t"].astype(jnp.bfloat16)
    params["w_fc_t_bf16"] = params["w_fc_t"].astype(jnp.bfloat16)
    return params


# --------------------------------------------------------------------------------------
# Pure-JAX f32 reference (PyTorch semantics) for a correctness check
# --------------------------------------------------------------------------------------
def decoder_rnn_reference(features, captions, params):
    hp = jax.lax.Precision.HIGHEST
    hidden = params["w_hh_t"].shape[0]
    cap = captions[:, :-1]
    emb = jnp.take(params["embed_w"], cap, axis=0)
    x = jnp.concatenate([features[:, None, :], emb], axis=1)
    bsz, t_len, _ = x.shape
    bias = params["b_ih"] + params["b_hh"]
    h = jnp.zeros((bsz, hidden), jnp.float32)
    c = jnp.zeros((bsz, hidden), jnp.float32)
    hs = []
    for t in range(t_len):
        gates = (jnp.dot(x[:, t, :], params["w_ih_t"], precision=hp) + bias
                 + jnp.dot(h, params["w_hh_t"], precision=hp))
        i_g = _sigmoid(gates[:, 0 * hidden:1 * hidden])
        f_g = _sigmoid(gates[:, 1 * hidden:2 * hidden])
        g_g = jnp.tanh(gates[:, 2 * hidden:3 * hidden])
        o_g = _sigmoid(gates[:, 3 * hidden:4 * hidden])
        c = f_g * c + i_g * g_g
        h = o_g * jnp.tanh(c)
        hs.append(h)
    hseq = jnp.stack(hs, axis=1)                                    # (B, T, H)
    return jnp.dot(hseq, params["w_fc_t"], precision=hp) + params["b_fc"]


# --------------------------------------------------------------------------------------
if __name__ == "__main__":
    vocab_size, embed_size, hidden_size = 256, 32, 128   # lane-friendly toy sizes
    batch, caption_len = 2, 8

    key = jax.random.PRNGKey(0)
    pkey, fkey, ckey = jax.random.split(key, 3)

    params = make_decoder_params(pkey, vocab_size, embed_size, hidden_size)
    features = jax.random.normal(fkey, (batch, embed_size), jnp.float32)
    captions = jax.random.randint(ckey, (batch, caption_len), 0, vocab_size, jnp.int32)

    logits = decoder_rnn_forward(features, captions, params)
    logits = jax.block_until_ready(logits)

    assert logits.shape == (batch, caption_len, vocab_size), logits.shape
    assert bool(jnp.all(jnp.isfinite(logits)))

    # Correctness vs f32 PyTorch-semantics reference (loose tol: bf16 MXU inputs on the
    # two big matmuls; recurrence itself is f32).
    ref = decoder_rnn_reference(features, captions, params)
    max_err = float(jnp.max(jnp.abs(logits - ref)))
    assert max_err < 5e-2, f"max abs err vs reference: {max_err}"

    print("KERNEL_OK")
</pallas_src>

<mosaic_0001>
module attributes {stable_mosaic.version = 11 : i64} {
  func.func @_embed_gather_kernel(%arg0: i32, %arg1: memref<16xi32, #tpu.memory_space<smem>>, %arg2: memref<256x32xf32, #tpu.memory_space<any>>, %arg3: memref<8x32xf32, #tpu.memory_space<vmem>>, %arg4: memref<8x32xf32, #tpu.memory_space<vmem>>, %arg5: memref<8x!tpu.dma_semaphore, #tpu.memory_space<semaphore_mem>>) attributes {dimension_semantics = [#tpu.dimension_semantics<arbitrary>], iteration_bounds = array<i64: 2>, scalar_prefetch = 1 : i64, scratch_operands = 2 : i64, tpu.core_type = #tpu.core_type<tc>, window_params = [{}, {transform_indices = @transform_1, window_bounds = array<i64: 8, 32>}]} {
    %c8_i32 = arith.constant 8 : i32
    %0 = arith.muli %arg0, %c8_i32 : i32
    %c0_i32 = arith.constant 0 : i32
    %1 = arith.addi %0, %c0_i32 : i32
    %2 = arith.index_cast %1 : i32 to index
    %3 = memref.load %arg1[%2] : memref<16xi32, #tpu.memory_space<smem>>
    %c0_i32_0 = arith.constant 0 : i32
    %c0_i32_1 = arith.constant 0 : i32
    %4 = tpu.memref_slice %arg2[%3, %c0_i32_1] : memref<256x32xf32, #tpu.memory_space<any>> -> memref<1x32xf32, #tpu.memory_space<any>>
    %c0_i32_2 = arith.constant 0 : i32
    %c0_i32_3 = arith.constant 0 : i32
    %5 = tpu.memref_slice %arg4[%c0_i32_2, %c0_i32_3] : memref<8x32xf32, #tpu.memory_space<vmem>> -> memref<1x32xf32, #tpu.memory_space<vmem>>
    %6 = tpu.memref_slice %arg5[%c0_i32_0] : memref<8x!tpu.dma_semaphore, #tpu.memory_space<semaphore_mem>> -> memref<1x!tpu.dma_semaphore, #tpu.memory_space<semaphore_mem>>
    %7 = tpu.memref_squeeze %6 : memref<1x!tpu.dma_semaphore, #tpu.memory_space<semaphore_mem>> -> memref<!tpu.dma_semaphore, #tpu.memory_space<semaphore_mem>>
    tpu.enqueue_dma source(%4 : memref<1x32xf32, #tpu.memory_space<any>>) target(%5 : memref<1x32xf32, #tpu.memory_space<vmem>>) target_semaphore(%7 : memref<!tpu.dma_semaphore, #tpu.memory_space<semaphore_mem>>)
    %c1_i32 = arith.constant 1 : i32
    %8 = arith.addi %0, %c1_i32 : i32
    %9 = arith.index_cast %8 : i32 to index
    %10 = memref.load %arg1[%9] : memref<16xi32, #tpu.memory_space<smem>>
    %c1_i32_4 = arith.constant 1 : i32
    %c0_i32_5 = arith.constant 0 : i32
    %11 = tpu.memref_slice %arg2[%10, %c0_i32_5] : memref<256x32xf32, #tpu.memory_space<any>> -> memref<1x32xf32, #tpu.memory_space<any>>
    %c1_i32_6 = arith.constant 1 : i32
    %c0_i32_7 = arith.constant 0 : i32
    %12 = tpu.memref_slice %arg4[%c1_i32_6, %c0_i32_7] : memref<8x32xf32, #tpu.memory_space<vmem>> -> memref<1x32xf32, #tpu.memory_space<vmem>>
    %13 = tpu.memref_slice %arg5[%c1_i32_4] : memref<8x!tpu.dma_semaphore, #tpu.memory_space<semaphore_mem>> -> memref<1x!tpu.dma_semaphore, #tpu.memory_space<semaphore_mem>>
    %14 = tpu.memref_squeeze %13 : memref<1x!tpu.dma_semaphore, #tpu.memory_space<semaphore_mem>> -> memref<!tpu.dma_semaphore, #tpu.memory_space<semaphore_mem>>
    tpu.enqueue_dma source(%11 : memref<1x32xf32, #tpu.memory_space<any>>) target(%12 : memref<1x32xf32, #tpu.memory_space<vmem>>) target_semaphore(%14 : memref<!tpu.dma_semaphore, #tpu.memory_space<semaphore_mem>>)
    %c2_i32 = arith.constant 2 : i32
    %15 = arith.addi %0, %c2_i32 : i32
    %16 = arith.index_cast %15 : i32 to index
    %17 = memref.load %arg1[%16] : memref<16xi32, #tpu.memory_space<smem>>
    %c2_i32_8 = arith.constant 2 : i32
    %c0_i32_9 = arith.constant 0 : i32
    %18 = tpu.memref_slice %arg2[%17, %c0_i32_9] : memref<256x32xf32, #tpu.memory_space<any>> -> memref<1x32xf32, #tpu.memory_space<any>>
    %c2_i32_10 = arith.constant 2 : i32
    %c0_i32_11 = arith.constant 0 : i32
    %19 = tpu.memref_slice %arg4[%c2_i32_10, %c0_i32_11] : memref<8x32xf32, #tpu.memory_space<vmem>> -> memref<1x32xf32, #tpu.memory_space<vmem>>
    %20 = tpu.memref_slice %arg5[%c2_i32_8] : memref<8x!tpu.dma_semaphore, #tpu.memory_space<semaphore_mem>> -> memref<1x!tpu.dma_semaphore, #tpu.memory_space<semaphore_mem>>
    %21 = tpu.memref_squeeze %20 : memref<1x!tpu.dma_semaphore, #tpu.memory_space<semaphore_mem>> -> memref<!tpu.dma_semaphore, #tpu.memory_space<semaphore_mem>>
    tpu.enqueue_dma source(%18 : memref<1x32xf32, #tpu.memory_space<any>>) target(%19 : memref<1x32xf32, #tpu.memory_space<vmem>>) target_semaphore(%21 : memref<!tpu.dma_semaphore, #tpu.memory_space<semaphore_mem>>)
    %c3_i32 = arith.constant 3 : i32
    %22 = arith.addi %0, %c3_i32 : i32
    %23 = arith.index_cast %22 : i32 to index
    %24 = memref.load %arg1[%23] : memref<16xi32, #tpu.memory_space<smem>>
    %c3_i32_12 = arith.constant 3 : i32
    %c0_i32_13 = arith.constant 0 : i32
    %25 = tpu.memref_slice %arg2[%24, %c0_i32_13] : memref<256x32xf32, #tpu.memory_space<any>> -> memref<1x32xf32, #tpu.memory_space<any>>
    %c3_i32_14 = arith.constant 3 : i32
    %c0_i32_15 = arith.constant 0 : i32
    %26 = tpu.memref_slice %arg4[%c3_i32_14, %c0_i32_15] : memref<8x32xf32, #tpu.memory_space<vmem>> -> memref<1x32xf32, #tpu.memory_space<vmem>>
    %27 = tpu.memref_slice %arg5[%c3_i32_12] : memref<8x!tpu.dma_semaphore, #tpu.memory_space<semaphore_mem>> -> memref<1x!tpu.dma_semaphore, #tpu.memory_space<semaphore_mem>>
    %28 = tpu.memref_squeeze %27 : memref<1x!tpu.dma_semaphore, #tpu.memory_space<semaphore_mem>> -> memref<!tpu.dma_semaphore, #tpu.memory_space<semaphore_mem>>
    tpu.enqueue_dma source(%25 : memref<1x32xf32, #tpu.memory_space<any>>) target(%26 : memref<1x32xf32, #tpu.memory_space<vmem>>) target_semaphore(%28 : memref<!tpu.dma_semaphore, #tpu.memory_space<semaphore_mem>>)
    %c4_i32 = arith.constant 4 : i32
    %29 = arith.addi %0, %c4_i32 : i32
    %30 = arith.index_cast %29 : i32 to index
    %31 = memref.load %arg1[%30] : memref<16xi32, #tpu.memory_space<smem>>
    %c4_i32_16 = arith.constant 4 : i32
    %c0_i32_17 = arith.constant 0 : i32
    %32 = tpu.memref_slice %arg2[%31, %c0_i32_17] : memref<256x32xf32, #tpu.memory_space<any>> -> memref<1x32xf32, #tpu.memory_space<any>>
    %c4_i32_18 = arith.constant 4 : i32
    %c0_i32_19 = arith.constant 0 : i32
    %33 = tpu.memref_slice %arg4[%c4_i32_18, %c0_i32_19] : memref<8x32xf32, #tpu.memory_space<vmem>> -> memref<1x32xf32, #tpu.memory_space<vmem>>
    %34 = tpu.memref_slice %arg5[%c4_i32_16] : memref<8x!tpu.dma_semaphore, #tpu.memory_space<semaphore_mem>> -> memref<1x!tpu.dma_semaphore, #tpu.memory_space<semaphore_mem>>
    %35 = tpu.memref_squeeze %34 : memref<1x!tpu.dma_semaphore, #tpu.memory_space<semaphore_mem>> -> memref<!tpu.dma_semaphore, #tpu.memory_space<semaphore_mem>>
    tpu.enqueue_dma source(%32 : memref<1x32xf32, #tpu.memory_space<any>>) target(%33 : memref<1x32xf32, #tpu.memory_space<vmem>>) target_semaphore(%35 : memref<!tpu.dma_semaphore, #tpu.memory_space<semaphore_mem>>)
    %c5_i32 = arith.constant 5 : i32
    %36 = arith.addi %0, %c5_i32 : i32
    %37 = arith.index_cast %36 : i32 to index
    %38 = memref.load %arg1[%37] : memref<16xi32, #tpu.memory_space<smem>>
    %c5_i32_20 = arith.constant 5 : i32
    %c0_i32_21 = arith.constant 0 : i32
    %39 = tpu.memref_slice %arg2[%38, %c0_i32_21] : memref<256x32xf32, #tpu.memory_space<any>> -> memref<1x32xf32, #tpu.memory_space<any>>
    %c5_i32_22 = arith.constant 5 : i32
    %c0_i32_23 = arith.constant 0 : i32
    %40 = tpu.memref_slice %arg4[%c5_i32_22, %c0_i32_23] : memref<8x32xf32, #tpu.memory_space<vmem>> -> memref<1x32xf32, #tpu.memory_space<vmem>>
    %41 = tpu.memref_slice %arg5[%c5_i32_20] : memref<8x!tpu.dma_semaphore, #tpu.memory_space<semaphore_mem>> -> memref<1x!tpu.dma_semaphore, #tpu.memory_space<semaphore_mem>>
    %42 = tpu.memref_squeeze %41 : memref<1x!tpu.dma_semaphore, #tpu.memory_space<semaphore_mem>> -> memref<!tpu.dma_semaphore, #tpu.memory_space<semaphore_mem>>
    tpu.enqueue_dma source(%39 : memref<1x32xf32, #tpu.memory_space<any>>) target(%40 : memref<1x32xf32, #tpu.memory_space<vmem>>) target_semaphore(%42 : memref<!tpu.dma_semaphore, #tpu.memory_space<semaphore_mem>>)
    %c6_i32 = arith.constant 6 : i32
    %43 = arith.addi %0, %c6_i32 : i32
    %44 = arith.index_cast %43 : i32 to index
    %45 = memref.load %arg1[%44] : memref<16xi32, #tpu.memory_space<smem>>
    %c6_i32_24 = arith.constant 6 : i32
    %c0_i32_25 = arith.constant 0 : i32
    %46 = tpu.memref_slice %arg2[%45, %c0_i32_25] : memref<256x32xf32, #tpu.memory_space<any>> -> memref<1x32xf32, #tpu.memory_space<any>>
    %c6_i32_26 = arith.constant 6 : i32
    %c0_i32_27 = arith.constant 0 : i32
    %47 = tpu.memref_slice %arg4[%c6_i32_26, %c0_i32_27] : memref<8x32xf32, #tpu.memory_space<vmem>> -> memref<1x32xf32, #tpu.memory_space<vmem>>
    %48 = tpu.memref_slice %arg5[%c6_i32_24] : memref<8x!tpu.dma_semaphore, #tpu.memory_space<semaphore_mem>> -> memref<1x!tpu.dma_semaphore, #tpu.memory_space<semaphore_mem>>
    %49 = tpu.memref_squeeze %48 : memref<1x!tpu.dma_semaphore, #tpu.memory_space<semaphore_mem>> -> memref<!tpu.dma_semaphore, #tpu.memory_space<semaphore_mem>>
    tpu.enqueue_dma source(%46 : memref<1x32xf32, #tpu.memory_space<any>>) target(%47 : memref<1x32xf32, #tpu.memory_space<vmem>>) target_semaphore(%49 : memref<!tpu.dma_semaphore, #tpu.memory_space<semaphore_mem>>)
    %c7_i32 = arith.constant 7 : i32
    %50 = arith.addi %0, %c7_i32 : i32
    %51 = arith.index_cast %50 : i32 to index
    %52 = memref.load %arg1[%51] : memref<16xi32, #tpu.memory_space<smem>>
    %c7_i32_28 = arith.constant 7 : i32
    %c0_i32_29 = arith.constant 0 : i32
    %53 = tpu.memref_slice %arg2[%52, %c0_i32_29] : memref<256x32xf32, #tpu.memory_space<any>> -> memref<1x32xf32, #tpu.memory_space<any>>
    %c7_i32_30 = arith.constant 7 : i32
    %c0_i32_31 = arith.constant 0 : i32
    %54 = tpu.memref_slice %arg4[%c7_i32_30, %c0_i32_31] : memref<8x32xf32, #tpu.memory_space<vmem>> -> memref<1x32xf32, #tpu.memory_space<vmem>>
    %55 = tpu.memref_slice %arg5[%c7_i32_28] : memref<8x!tpu.dma_semaphore, #tpu.memory_space<semaphore_mem>> -> memref<1x!tpu.dma_semaphore, #tpu.memory_space<semaphore_mem>>
    %56 = tpu.memref_squeeze %55 : memref<1x!tpu.dma_semaphore, #tpu.memory_space<semaphore_mem>> -> memref<!tpu.dma_semaphore, #tpu.memory_space<semaphore_mem>>
    tpu.enqueue_dma source(%53 : memref<1x32xf32, #tpu.memory_space<any>>) target(%54 : memref<1x32xf32, #tpu.memory_space<vmem>>) target_semaphore(%56 : memref<!tpu.dma_semaphore, #tpu.memory_space<semaphore_mem>>)
    %c0_i32_32 = arith.constant 0 : i32
    %c0_i32_33 = arith.constant 0 : i32
    %57 = tpu.memref_slice %arg2[%3, %c0_i32_33] : memref<256x32xf32, #tpu.memory_space<any>> -> memref<1x32xf32, #tpu.memory_space<any>>
    %c0_i32_34 = arith.constant 0 : i32
    %c0_i32_35 = arith.constant 0 : i32
    %58 = tpu.memref_slice %arg4[%c0_i32_34, %c0_i32_35] : memref<8x32xf32, #tpu.memory_space<vmem>> -> memref<1x32xf32, #tpu.memory_space<vmem>>
    %59 = tpu.memref_slice %arg5[%c0_i32_32] : memref<8x!tpu.dma_semaphore, #tpu.memory_space<semaphore_mem>> -> memref<1x!tpu.dma_semaphore, #tpu.memory_space<semaphore_mem>>
    %60 = tpu.memref_squeeze %59 : memref<1x!tpu.dma_semaphore, #tpu.memory_space<semaphore_mem>> -> memref<!tpu.dma_semaphore, #tpu.memory_space<semaphore_mem>>
    tpu.wait_dma2 semaphore(%60 : memref<!tpu.dma_semaphore, #tpu.memory_space<semaphore_mem>>) src(%57 : memref<1x32xf32, #tpu.memory_space<any>>) dst(%58 : memref<1x32xf32, #tpu.memory_space<vmem>>)
    %c1_i32_36 = arith.constant 1 : i32
    %c0_i32_37 = arith.constant 0 : i32
    %61 = tpu.memref_slice %arg2[%10, %c0_i32_37] : memref<256x32xf32, #tpu.memory_space<any>> -> memref<1x32xf32, #tpu.memory_space<any>>
    %c1_i32_38 = arith.constant 1 : i32
    %c0_i32_39 = arith.constant 0 : i32
    %62 = tpu.memref_slice %arg4[%c1_i32_38, %c0_i32_39] : memref<8x32xf32, #tpu.memory_space<vmem>> -> memref<1x32xf32, #tpu.memory_space<vmem>>
    %63 = tpu.memref_slice %arg5[%c1_i32_36] : memref<8x!tpu.dma_semaphore, #tpu.memory_space<semaphore_mem>> -> memref<1x!tpu.dma_semaphore, #tpu.memory_space<semaphore_mem>>
    %64 = tpu.memref_squeeze %63 : memref<1x!tpu.dma_semaphore, #tpu.memory_space<semaphore_mem>> -> memref<!tpu.dma_semaphore, #tpu.memory_space<semaphore_mem>>
    tpu.wait_dma2 semaphore(%64 : memref<!tpu.dma_semaphore, #tpu.memory_space<semaphore_mem>>) src(%61 : memref<1x32xf32, #tpu.memory_space<any>>) dst(%62 : memref<1x32xf32, #tpu.memory_space<vmem>>)
    %c2_i32_40 = arith.constant 2 : i32
    %c0_i32_41 = arith.constant 0 : i32
    %65 = tpu.memref_slice %arg2[%17, %c0_i32_41] : memref<256x32xf32, #tpu.memory_space<any>> -> memref<1x32xf32, #tpu.memory_space<any>>
    %c2_i32_42 = arith.constant 2 : i32
    %c0_i32_43 = arith.constant 0 : i32
    %66 = tpu.memref_slice %arg4[%c2_i32_42, %c0_i32_43] : memref<8x32xf32, #tpu.memory_space<vmem>> -> memref<1x32xf32, #tpu.memory_space<vmem>>
    %67 = tpu.memref_slice %arg5[%c2_i32_40] : memref<8x!tpu.dma_semaphore, #tpu.memory_space<semaphore_mem>> -> memref<1x!tpu.dma_semaphore, #tpu.memory_space<semaphore_mem>>
    %68 = tpu.memref_squeeze %67 : memref<1x!tpu.dma_semaphore, #tpu.memory_space<semaphore_mem>> -> memref<!tpu.dma_semaphore, #tpu.memory_space<semaphore_mem>>
    tpu.wait_dma2 semaphore(%68 : memref<!tpu.dma_semaphore, #tpu.memory_space<semaphore_mem>>) src(%65 : memref<1x32xf32, #tpu.memory_space<any>>) dst(%66 : memref<1x32xf32, #tpu.memory_space<vmem>>)
    %c3_i32_44 = arith.constant 3 : i32
    %c0_i32_45 = arith.constant 0 : i32
    %69 = tpu.memref_slice %arg2[%24, %c0_i32_45] : memref<256x32xf32, #tpu.memory_space<any>> -> memref<1x32xf32, #tpu.memory_space<any>>
    %c3_i32_46 = arith.constant 3 : i32
    %c0_i32_47 = arith.constant 0 : i32
    %70 = tpu.memref_slice %arg4[%c3_i32_46, %c0_i32_47] : memref<8x32xf32, #tpu.memory_space<vmem>> -> memref<1x32xf32, #tpu.memory_space<vmem>>
    %71 = tpu.memref_slice %arg5[%c3_i32_44] : memref<8x!tpu.dma_semaphore, #tpu.memory_space<semaphore_mem>> -> memref<1x!tpu.dma_semaphore, #tpu.memory_space<semaphore_mem>>
    %72 = tpu.memref_squeeze %71 : memref<1x!tpu.dma_semaphore, #tpu.memory_space<semaphore_mem>> -> memref<!tpu.dma_semaphore, #tpu.memory_space<semaphore_mem>>
    tpu.wait_dma2 semaphore(%72 : memref<!tpu.dma_semaphore, #tpu.memory_space<semaphore_mem>>) src(%69 : memref<1x32xf32, #tpu.memory_space<any>>) dst(%70 : memref<1x32xf32, #tpu.memory_space<vmem>>)
    %c4_i32_48 = arith.constant 4 : i32
    %c0_i32_49 = arith.constant 0 : i32
    %73 = tpu.memref_slice %arg2[%31, %c0_i32_49] : memref<256x32xf32, #tpu.memory_space<any>> -> memref<1x32xf32, #tpu.memory_space<any>>
    %c4_i32_50 = arith.constant 4 : i32
    %c0_i32_51 = arith.constant 0 : i32
    %74 = tpu.memref_slice %arg4[%c4_i32_50, %c0_i32_51] : memref<8x32xf32, #tpu.memory_space<vmem>> -> memref<1x32xf32, #tpu.memory_space<vmem>>
    %75 = tpu.memref_slice %arg5[%c4_i32_48] : memref<8x!tpu.dma_semaphore, #tpu.memory_space<semaphore_mem>> -> memref<1x!tpu.dma_semaphore, #tpu.memory_space<semaphore_mem>>
    %76 = tpu.memref_squeeze %75 : memref<1x!tpu.dma_semaphore, #tpu.memory_space<semaphore_mem>> -> memref<!tpu.dma_semaphore, #tpu.memory_space<semaphore_mem>>
    tpu.wait_dma2 semaphore(%76 : memref<!tpu.dma_semaphore, #tpu.memory_space<semaphore_mem>>) src(%73 : memref<1x32xf32, #tpu.memory_space<any>>) dst(%74 : memref<1x32xf32, #tpu.memory_space<vmem>>)
    %c5_i32_52 = arith.constant 5 : i32
    %c0_i32_53 = arith.constant 0 : i32
    %77 = tpu.memref_slice %arg2[%38, %c0_i32_53] : memref<256x32xf32, #tpu.memory_space<any>> -> memref<1x32xf32, #tpu.memory_space<any>>
    %c5_i32_54 = arith.constant 5 : i32
    %c0_i32_55 = arith.constant 0 : i32
    %78 = tpu.memref_slice %arg4[%c5_i32_54, %c0_i32_55] : memref<8x32xf32, #tpu.memory_space<vmem>> -> memref<1x32xf32, #tpu.memory_space<vmem>>
    %79 = tpu.memref_slice %arg5[%c5_i32_52] : memref<8x!tpu.dma_semaphore, #tpu.memory_space<semaphore_mem>> -> memref<1x!tpu.dma_semaphore, #tpu.memory_space<semaphore_mem>>
    %80 = tpu.memref_squeeze %79 : memref<1x!tpu.dma_semaphore, #tpu.memory_space<semaphore_mem>> -> memref<!tpu.dma_semaphore, #tpu.memory_space<semaphore_mem>>
    tpu.wait_dma2 semaphore(%80 : memref<!tpu.dma_semaphore, #tpu.memory_space<semaphore_mem>>) src(%77 : memref<1x32xf32, #tpu.memory_space<any>>) dst(%78 : memref<1x32xf32, #tpu.memory_space<vmem>>)
    %c6_i32_56 = arith.constant 6 : i32
    %c0_i32_57 = arith.constant 0 : i32
    %81 = tpu.memref_slice %arg2[%45, %c0_i32_57] : memref<256x32xf32, #tpu.memory_space<any>> -> memref<1x32xf32, #tpu.memory_space<any>>
    %c6_i32_58 = arith.constant 6 : i32
    %c0_i32_59 = arith.constant 0 : i32
    %82 = tpu.memref_slice %arg4[%c6_i32_58, %c0_i32_59] : memref<8x32xf32, #tpu.memory_space<vmem>> -> memref<1x32xf32, #tpu.memory_space<vmem>>
    %83 = tpu.memref_slice %arg5[%c6_i32_56] : memref<8x!tpu.dma_semaphore, #tpu.memory_space<semaphore_mem>> -> memref<1x!tpu.dma_semaphore, #tpu.memory_space<semaphore_mem>>
    %84 = tpu.memref_squeeze %83 : memref<1x!tpu.dma_semaphore, #tpu.memory_space<semaphore_mem>> -> memref<!tpu.dma_semaphore, #tpu.memory_space<semaphore_mem>>
    tpu.wait_dma2 semaphore(%84 : memref<!tpu.dma_semaphore, #tpu.memory_space<semaphore_mem>>) src(%81 : memref<1x32xf32, #tpu.memory_space<any>>) dst(%82 : memref<1x32xf32, #tpu.memory_space<vmem>>)
    %c7_i32_60 = arith.constant 7 : i32
    %c0_i32_61 = arith.constant 0 : i32
    %85 = tpu.memref_slice %arg2[%52, %c0_i32_61] : memref<256x32xf32, #tpu.memory_space<any>> -> memref<1x32xf32, #tpu.memory_space<any>>
    %c7_i32_62 = arith.constant 7 : i32
    %c0_i32_63 = arith.constant 0 : i32
    %86 = tpu.memref_slice %arg4[%c7_i32_62, %c0_i32_63] : memref<8x32xf32, #tpu.memory_space<vmem>> -> memref<1x32xf32, #tpu.memory_space<vmem>>
    %87 = tpu.memref_slice %arg5[%c7_i32_60] : memref<8x!tpu.dma_semaphore, #tpu.memory_space<semaphore_mem>> -> memref<1x!tpu.dma_semaphore, #tpu.memory_space<semaphore_mem>>
    %88 = tpu.memref_squeeze %87 : memref<1x!tpu.dma_semaphore, #tpu.memory_space<semaphore_mem>> -> memref<!tpu.dma_semaphore, #tpu.memory_space<semaphore_mem>>
    tpu.wait_dma2 semaphore(%88 : memref<!tpu.dma_semaphore, #tpu.memory_space<semaphore_mem>>) src(%85 : memref<1x32xf32, #tpu.memory_space<any>>) dst(%86 : memref<1x32xf32, #tpu.memory_space<vmem>>)
    %c0 = arith.constant 0 : index
    %c0_64 = arith.constant 0 : index
    %89 = vector.load %arg4[%c0, %c0_64] : memref<8x32xf32, #tpu.memory_space<vmem>>, vector<8x32xf32>
    %c0_65 = arith.constant 0 : index
    %c0_66 = arith.constant 0 : index
    %90 = vector.load %arg3[%c0_65, %c0_66] : memref<8x32xf32, #tpu.memory_space<vmem>>, vector<8x32xf32>
    tpu.vector_store %arg3[%c0_65, %c0_66], %89 {strides = array<i32>} : memref<8x32xf32, #tpu.memory_space<vmem>>, vector<8x32xf32>,
    return
  }
  func.func @transform_1(%arg0: i32, %arg1: memref<16xi32, #tpu.memory_space<smem>>) -> (i32, i32) {
    %c0_i32 = arith.constant 0 : i32
    %c0_i32_0 = arith.constant 0 : i32
    return %arg0, %c0_i32 : i32, i32
  }
}

module attributes {stable_mosaic.version = 11 : i64} {
  func.func @_matmul_bias_kernel(%arg0: i32, %arg1: i32, %arg2: memref<16x32xbf16, #tpu.memory_space<vmem>>, %arg3: memref<32x512xbf16, #tpu.memory_space<vmem>>, %arg4: memref<1x512xf32, #tpu.memory_space<vmem>>, %arg5: memref<16x512xf32, #tpu.memory_space<vmem>>) attributes {dimension_semantics = [#tpu.dimension_semantics<parallel>, #tpu.dimension_semantics<parallel>], iteration_bounds = array<i64: 1, 1>, scalar_prefetch = 0 : i64, scratch_operands = 0 : i64, tpu.core_type = #tpu.core_type<tc>, window_params = [{transform_indices = @transform_0, window_bounds = array<i64: 16, 32>}, {transform_indices = @transform_1, window_bounds = array<i64: 32, 512>}, {transform_indices = @transform_2, window_bounds = array<i64: 1, 512>}, {transform_indices = @transform_3, window_bounds = array<i64: 16, 512>}]} {
    %c0 = arith.constant 0 : index
    %c0_0 = arith.constant 0 : index
    %0 = vector.load %arg2[%c0, %c0_0] : memref<16x32xbf16, #tpu.memory_space<vmem>>, vector<16x32xbf16>
    %c0_1 = arith.constant 0 : index
    %c0_2 = arith.constant 0 : index
    %1 = vector.load %arg3[%c0_1, %c0_2] : memref<32x512xbf16, #tpu.memory_space<vmem>>, vector<32x512xbf16>
    %cst = arith.constant dense<0.000000e+00> : vector<16x512xf32>
    %2 = tpu.matmul %0, %1, %cst {dimension_numbers = #tpu.dot_dimension_numbers<[1], [0], [0], [1], [0, 0, 1, 1], [], []>} : vector<16x32xbf16>, vector<32x512xbf16>, vector<16x512xf32> -> vector<16x512xf32>
    %c0_3 = arith.constant 0 : index
    %c0_4 = arith.constant 0 : index
    %3 = vector.load %arg4[%c0_3, %c0_4] : memref<1x512xf32, #tpu.memory_space<vmem>>, vector<1x512xf32>
    %4 = vector.broadcast %3 : vector<1x512xf32> to vector<16x512xf32>
    %5 = arith.addf %2, %4 : vector<16x512xf32>
    %c0_5 = arith.constant 0 : index
    %c0_6 = arith.constant 0 : index
    %6 = vector.load %arg5[%c0_5, %c0_6] : memref<16x512xf32, #tpu.memory_space<vmem>>, vector<16x512xf32>
    tpu.vector_store %arg5[%c0_5, %c0_6], %5 {strides = array<i32>} : memref<16x512xf32, #tpu.memory_space<vmem>>, vector<16x512xf32>,
    return
  }
  func.func @transform_0(%arg0: i32, %arg1: i32) -> (i32, i32) {
    %c0_i32 = arith.constant 0 : i32
    %c0_i32_0 = arith.constant 0 : i32
    return %arg0, %c0_i32 : i32, i32
  }
  func.func @transform_1(%arg0: i32, %arg1: i32) -> (i32, i32) {
    %c0_i32 = arith.constant 0 : i32
    %c0_i32_0 = arith.constant 0 : i32
    return %c0_i32, %arg1 : i32, i32
  }
  func.func @transform_2(%arg0: i32, %arg1: i32) -> (i32, i32) {
    %c0_i32 = arith.constant 0 : i32
    %c0_i32_0 = arith.constant 0 : i32
    return %c0_i32, %arg1 : i32, i32
  }
  func.func @transform_3(%arg0: i32, %arg1: i32) -> (i32, i32) {
    %c0_i32 = arith.constant 0 : i32
    return %arg0, %arg1 : i32, i32
  }
}

module attributes {stable_mosaic.version = 11 : i64} {
  func.func @_lstm_seq_kernel(%arg0: i32, %arg1: memref<2x4096xf32, #tpu.memory_space<vmem>>, %arg2: memref<128x512xf32, #tpu.memory_space<vmem>>, %arg3: memref<2x1024xf32, #tpu.memory_space<vmem>>) attributes {dimension_semantics = [#tpu.dimension_semantics<arbitrary>], iteration_bounds = array<i64: 1>, scalar_prefetch = 0 : i64, scratch_operands = 0 : i64, tpu.core_type = #tpu.core_type<tc>, window_params = [{pipeline_mode = #tpu.pipeline_mode<synchronous>, transform_indices = @transform_0, window_bounds = array<i64: 2, 4096>}, {pipeline_mode = #tpu.pipeline_mode<synchronous>, transform_indices = @transform_1, window_bounds = array<i64: 128, 512>}, {pipeline_mode = #tpu.pipeline_mode<synchronous>, transform_indices = @transform_2, window_bounds = array<i64: 2, 1024>}]} {
    %c0 = arith.constant 0 : index
    %c0_0 = arith.constant 0 : index
    %0 = vector.load %arg2[%c0, %c0_0] : memref<128x512xf32, #tpu.memory_space<vmem>>, vector<128x512xf32>
    %cst = arith.constant 0.000000e+00 : f32
    %1 = vector.broadcast %cst : f32 to vector<2x128xf32>
    %cst_1 = arith.constant 0.000000e+00 : f32
    %2 = vector.broadcast %cst_1 : f32 to vector<2x128xf32>
    %c0_2 = arith.constant 0 : index
    %c0_3 = arith.constant 0 : index
    %3 = vector.load %arg1[%c0_2, %c0_3] : memref<2x4096xf32, #tpu.memory_space<vmem>>, vector<2x512xf32>
    %cst_4 = arith.constant dense<0.000000e+00> : vector<2x512xf32>
    %4 = tpu.matmul %1, %0, %cst_4 {dimension_numbers = #tpu.dot_dimension_numbers<[1], [0], [0], [1], [0, 0, 1, 1], [], []>} : vector<2x128xf32>, vector<128x512xf32>, vector<2x512xf32> -> vector<2x512xf32>
    %5 = arith.addf %3, %4 : vector<2x512xf32>
    %6 = vector.extract_strided_slice %5 {offsets = [0, 0], sizes = [2, 128], strides = [1, 1]} : vector<2x512xf32> to vector<2x128xf32>
    %cst_5 = arith.constant 0.000000e+00 : f32
    %7 = vector.broadcast %cst_5 : f32 to vector<2x128xf32>
    %8 = arith.subf %7, %6 : vector<2x128xf32>
    %9 = math.exp %8 : vector<2x128xf32>
    %cst_6 = arith.constant 1.000000e+00 : f32
    %10 = vector.broadcast %cst_6 : f32 to vector<2x128xf32>
    %11 = arith.addf %10, %9 : vector<2x128xf32>
    %cst_7 = arith.constant 1.000000e+00 : f32
    %12 = vector.broadcast %cst_7 : f32 to vector<2x128xf32>
    %13 = arith.divf %12, %11 : vector<2x128xf32>
    %14 = vector.extract_strided_slice %5 {offsets = [0, 128], sizes = [2, 128], strides = [1, 1]} : vector<2x512xf32> to vector<2x128xf32>
    %cst_8 = arith.constant 0.000000e+00 : f32
    %15 = vector.broadcast %cst_8 : f32 to vector<2x128xf32>
    %16 = arith.subf %15, %14 : vector<2x128xf32>
    %17 = math.exp %16 : vector<2x128xf32>
    %cst_9 = arith.constant 1.000000e+00 : f32
    %18 = vector.broadcast %cst_9 : f32 to vector<2x128xf32>
    %19 = arith.addf %18, %17 : vector<2x128xf32>
    %cst_10 = arith.constant 1.000000e+00 : f32
    %20 = vector.broadcast %cst_10 : f32 to vector<2x128xf32>
    %21 = arith.divf %20, %19 : vector<2x128xf32>
    %22 = vector.extract_strided_slice %5 {offsets = [0, 256], sizes = [2, 128], strides = [1, 1]} : vector<2x512xf32> to vector<2x128xf32>
    %23 = math.tanh %22 : vector<2x128xf32>
    %24 = vector.extract_strided_slice %5 {offsets = [0, 384], sizes = [2, 128], strides = [1, 1]} : vector<2x512xf32> to vector<2x128xf32>
    %cst_11 = arith.constant 0.000000e+00 : f32
    %25 = vector.broadcast %cst_11 : f32 to vector<2x128xf32>
    %26 = arith.subf %25, %24 : vector<2x128xf32>
    %27 = math.exp %26 : vector<2x128xf32>
    %cst_12 = arith.constant 1.000000e+00 : f32
    %28 = vector.broadcast %cst_12 : f32 to vector<2x128xf32>
    %29 = arith.addf %28, %27 : vector<2x128xf32>
    %cst_13 = arith.constant 1.000000e+00 : f32
    %30 = vector.broadcast %cst_13 : f32 to vector<2x128xf32>
    %31 = arith.divf %30, %29 : vector<2x128xf32>
    %32 = arith.mulf %21, %2 : vector<2x128xf32>
    %33 = arith.mulf %13, %23 : vector<2x128xf32>
    %34 = arith.addf %32, %33 : vector<2x128xf32>
    %35 = math.tanh %34 : vector<2x128xf32>
    %36 = arith.mulf %31, %35 : vector<2x128xf32>
    %c0_14 = arith.constant 0 : index
    %c0_15 = arith.constant 0 : index
    %37 = vector.load %arg3[%c0_14, %c0_15] : memref<2x1024xf32, #tpu.memory_space<vmem>>, vector<2x128xf32>
    tpu.vector_store %arg3[%c0_14, %c0_15], %36 {strides = array<i32>} : memref<2x1024xf32, #tpu.memory_space<vmem>>, vector<2x128xf32>,
    %c0_16 = arith.constant 0 : index
    %c512 = arith.constant 512 : index
    %38 = vector.load %arg1[%c0_16, %c512] : memref<2x4096xf32, #tpu.memory_space<vmem>>, vector<2x512xf32>
    %cst_17 = arith.constant dense<0.000000e+00> : vector<2x512xf32>
    %39 = tpu.matmul %36, %0, %cst_17 {dimension_numbers = #tpu.dot_dimension_numbers<[1], [0], [0], [1], [0, 0, 1, 1], [], []>} : vector<2x128xf32>, vector<128x512xf32>, vector<2x512xf32> -> vector<2x512xf32>
    %40 = arith.addf %38, %39 : vector<2x512xf32>
    %41 = vector.extract_strided_slice %40 {offsets = [0, 0], sizes = [2, 128], strides = [1, 1]} : vector<2x512xf32> to vector<2x128xf32>
    %cst_18 = arith.constant 0.000000e+00 : f32
    %42 = vector.broadcast %cst_18 : f32 to vector<2x128xf32>
    %43 = arith.subf %42, %41 : vector<2x128xf32>
    %44 = math.exp %43 : vector<2x128xf32>
    %cst_19 = arith.constant 1.000000e+00 : f32
    %45 = vector.broadcast %cst_19 : f32 to vector<2x128xf32>
    %46 = arith.addf %45, %44 : vector<2x128xf32>
    %cst_20 = arith.constant 1.000000e+00 : f32
    %47 = vector.broadcast %cst_20 : f32 to vector<2x128xf32>
    %48 = arith.divf %47, %46 : vector<2x128xf32>
    %49 = vector.extract_strided_slice %40 {offsets = [0, 128], sizes = [2, 128], strides = [1, 1]} : vector<2x512xf32> to vector<2x128xf32>
    %cst_21 = arith.constant 0.000000e+00 : f32
    %50 = vector.broadcast %cst_21 : f32 to vector<2x128xf32>
    %51 = arith.subf %50, %49 : vector<2x128xf32>
    %52 = math.exp %51 : vector<2x128xf32>
    %cst_22 = arith.constant 1.000000e+00 : f32
    %53 = vector.broadcast %cst_22 : f32 to vector<2x128xf32>
    %54 = arith.addf %53, %52 : vector<2x128xf32>
    %cst_23 = arith.constant 1.000000e+00 : f32
    %55 = vector.broadcast %cst_23 : f32 to vector<2x128xf32>
    %56 = arith.divf %55, %54 : vector<2x128xf32>
    %57 = vector.extract_strided_slice %40 {offsets = [0, 256], sizes = [2, 128], strides = [1, 1]} : vector<2x512xf32> to vector<2x128xf32>
    %58 = math.tanh %57 : vector<2x128xf32>
    %59 = vector.extract_strided_slice %40 {offsets = [0, 384], sizes = [2, 128], strides = [1, 1]} : vector<2x512xf32> to vector<2x128xf32>
    %cst_24 = arith.constant 0.000000e+00 : f32
    %60 = vector.broadcast %cst_24 : f32 to vector<2x128xf32>
    %61 = arith.subf %60, %59 : vector<2x128xf32>
    %62 = math.exp %61 : vector<2x128xf32>
    %cst_25 = arith.constant 1.000000e+00 : f32
    %63 = vector.broadcast %cst_25 : f32 to vector<2x128xf32>
    %64 = arith.addf %63, %62 : vector<2x128xf32>
    %cst_26 = arith.constant 1.000000e+00 : f32
    %65 = vector.broadcast %cst_26 : f32 to vector<2x128xf32>
    %66 = arith.divf %65, %64 : vector<2x128xf32>
    %67 = arith.mulf %56, %34 : vector<2x128xf32>
    %68 = arith.mulf %48, %58 : vector<2x128xf32>
    %69 = arith.addf %67, %68 : vector<2x128xf32>
    %70 = math.tanh %69 : vector<2x128xf32>
    %71 = arith.mulf %66, %70 : vector<2x128xf32>
    %c0_27 = arith.constant 0 : index
    %c128 = arith.constant 128 : index
    %72 = vector.load %arg3[%c0_27, %c128] : memref<2x1024xf32, #tpu.memory_space<vmem>>, vector<2x128xf32>
    tpu.vector_store %arg3[%c0_27, %c128], %71 {strides = array<i32>} : memref<2x1024xf32, #tpu.memory_space<vmem>>, vector<2x128xf32>,
    %c0_28 = arith.constant 0 : index
    %c1024 = arith.constant 1024 : index
    %73 = vector.load %arg1[%c0_28, %c1024] : memref<2x4096xf32, #tpu.memory_space<vmem>>, vector<2x512xf32>
    %cst_29 = arith.constant dense<0.000000e+00> : vector<2x512xf32>
    %74 = tpu.matmul %71, %0, %cst_29 {dimension_numbers = #tpu.dot_dimension_numbers<[1], [0], [0], [1], [0, 0, 1, 1], [], []>} : vector<2x128xf32>, vector<128x512xf32>, vector<2x512xf32> -> vector<2x512xf32>
    %75 = arith.addf %73, %74 : vector<2x512xf32>
    %76 = vector.extract_strided_slice %75 {offsets = [0, 0], sizes = [2, 128], strides = [1, 1]} : vector<2x512xf32> to vector<2x128xf32>
    %cst_30 = arith.constant 0.000000e+00 : f32
    %77 = vector.broadcast %cst_30 : f32 to vector<2x128xf32>
    %78 = arith.subf %77, %76 : vector<2x128xf32>
    %79 = math.exp %78 : vector<2x128xf32>
    %cst_31 = arith.constant 1.000000e+00 : f32
    %80 = vector.broadcast %cst_31 : f32 to vector<2x128xf32>
    %81 = arith.addf %80, %79 : vector<2x128xf32>
    %cst_32 = arith.constant 1.000000e+00 : f32
    %82 = vector.broadcast %cst_32 : f32 to vector<2x128xf32>
    %83 = arith.divf %82, %81 : vector<2x128xf32>
    %84 = vector.extract_strided_slice %75 {offsets = [0, 128], sizes = [2, 128], strides = [1, 1]} : vector<2x512xf32> to vector<2x128xf32>
    %cst_33 = arith.constant 0.000000e+00 : f32
    %85 = vector.broadcast %cst_33 : f32 to vector<2x128xf32>
    %86 = arith.subf %85, %84 : vector<2x128xf32>
    %87 = math.exp %86 : vector<2x128xf32>
    %cst_34 = arith.constant 1.000000e+00 : f32
    %88 = vector.broadcast %cst_34 : f32 to vector<2x128xf32>
    %89 = arith.addf %88, %87 : vector<2x128xf32>
    %cst_35 = arith.constant 1.000000e+00 : f32
    %90 = vector.broadcast %cst_35 : f32 to vector<2x128xf32>
    %91 = arith.divf %90, %89 : vector<2x128xf32>
    %92 = vector.extract_strided_slice %75 {offsets = [0, 256], sizes = [2, 128], strides = [1, 1]} : vector<2x512xf32> to vector<2x128xf32>
    %93 = math.tanh %92 : vector<2x128xf32>
    %94 = vector.extract_strided_slice %75 {offsets = [0, 384], sizes = [2, 128], strides = [1, 1]} : vector<2x512xf32> to vector<2x128xf32>
    %cst_36 = arith.constant 0.000000e+00 : f32
    %95 = vector.broadcast %cst_36 : f32 to vector<2x128xf32>
    %96 = arith.subf %95, %94 : vector<2x128xf32>
    %97 = math.exp %96 : vector<2x128xf32>
    %cst_37 = arith.constant 1.000000e+00 : f32
    %98 = vector.broadcast %cst_37 : f32 to vector<2x128xf32>
    %99 = arith.addf %98, %97 : vector<2x128xf32>
    %cst_38 = arith.constant 1.000000e+00 : f32
    %100 = vector.broadcast %cst_38 : f32 to vector<2x128xf32>
    %101 = arith.divf %100, %99 : vector<2x128xf32>
    %102 = arith.mulf %91, %69 : vector<2x128xf32>
    %103 = arith.mulf %83, %93 : vector<2x128xf32>
    %104 = arith.addf %102, %103 : vector<2x128xf32>
    %105 = math.tanh %104 : vector<2x128xf32>
    %106 = arith.mulf %101, %105 : vector<2x128xf32>
    %c0_39 = arith.constant 0 : index
    %c256 = arith.constant 256 : index
    %107 = vector.load %arg3[%c0_39, %c256] : memref<2x1024xf32, #tpu.memory_space<vmem>>, vector<2x128xf32>
    tpu.vector_store %arg3[%c0_39, %c256], %106 {strides = array<i32>} : memref<2x1024xf32, #tpu.memory_space<vmem>>, vector<2x128xf32>,
    %c0_40 = arith.constant 0 : index
    %c1536 = arith.constant 1536 : index
    %108 = vector.load %arg1[%c0_40, %c1536] : memref<2x4096xf32, #tpu.memory_space<vmem>>, vector<2x512xf32>
    %cst_41 = arith.constant dense<0.000000e+00> : vector<2x512xf32>
    %109 = tpu.matmul %106, %0, %cst_41 {dimension_numbers = #tpu.dot_dimension_numbers<[1], [0], [0], [1], [0, 0, 1, 1], [], []>} : vector<2x128xf32>, vector<128x512xf32>, vector<2x512xf32> -> vector<2x512xf32>
    %110 = arith.addf %108, %109 : vector<2x512xf32>
    %111 = vector.extract_strided_slice %110 {offsets = [0, 0], sizes = [2, 128], strides = [1, 1]} : vector<2x512xf32> to vector<2x128xf32>
    %cst_42 = arith.constant 0.000000e+00 : f32
    %112 = vector.broadcast %cst_42 : f32 to vector<2x128xf32>
    %113 = arith.subf %112, %111 : vector<2x128xf32>
    %114 = math.exp %113 : vector<2x128xf32>
    %cst_43 = arith.constant 1.000000e+00 : f32
    %115 = vector.broadcast %cst_43 : f32 to vector<2x128xf32>
    %116 = arith.addf %115, %114 : vector<2x128xf32>
    %cst_44 = arith.constant 1.000000e+00 : f32
    %117 = vector.broadcast %cst_44 : f32 to vector<2x128xf32>
    %118 = arith.divf %117, %116 : vector<2x128xf32>
    %119 = vector.extract_strided_slice %110 {offsets = [0, 128], sizes = [2, 128], strides = [1, 1]} : vector<2x512xf32> to vector<2x128xf32>
    %cst_45 = arith.constant 0.000000e+00 : f32
    %120 = vector.broadcast %cst_45 : f32 to vector<2x128xf32>
    %121 = arith.subf %120, %119 : vector<2x128xf32>
    %122 = math.exp %121 : vector<2x128xf32>
    %cst_46 = arith.constant 1.000000e+00 : f32
    %123 = vector.broadcast %cst_46 : f32 to vector<2x128xf32>
    %124 = arith.addf %123, %122 : vector<2x128xf32>
    %cst_47 = arith.constant 1.000000e+00 : f32
    %125 = vector.broadcast %cst_47 : f32 to vector<2x128xf32>
    %126 = arith.divf %125, %124 : vector<2x128xf32>
    %127 = vector.extract_strided_slice %110 {offsets = [0, 256], sizes = [2, 128], strides = [1, 1]} : vector<2x512xf32> to vector<2x128xf32>
    %128 = math.tanh %127 : vector<2x128xf32>
    %129 = vector.extract_strided_slice %110 {offsets = [0, 384], sizes = [2, 128], strides = [1, 1]} : vector<2x512xf32> to vector<2x128xf32>
    %cst_48 = arith.constant 0.000000e+00 : f32
    %130 = vector.broadcast %cst_48 : f32 to vector<2x128xf32>
    %131 = arith.subf %130, %129 : vector<2x128xf32>
    %132 = math.exp %131 : vector<2x128xf32>
    %cst_49 = arith.constant 1.000000e+00 : f32
    %133 = vector.broadcast %cst_49 : f32 to vector<2x128xf32>
    %134 = arith.addf %133, %132 : vector<2x128xf32>
    %cst_50 = arith.constant 1.000000e+00 : f32
    %135 = vector.broadcast %cst_50 : f32 to vector<2x128xf32>
    %136 = arith.divf %135, %134 : vector<2x128xf32>
    %137 = arith.mulf %126, %104 : vector<2x128xf32>
    %138 = arith.mulf %118, %128 : vector<2x128xf32>
    %139 = arith.addf %137, %138 : vector<2x128xf32>
    %140 = math.tanh %139 : vector<2x128xf32>
    %141 = arith.mulf %136, %140 : vector<2x128xf32>
    %c0_51 = arith.constant 0 : index
    %c384 = arith.constant 384 : index
    %142 = vector.load %arg3[%c0_51, %c384] : memref<2x1024xf32, #tpu.memory_space<vmem>>, vector<2x128xf32>
    tpu.vector_store %arg3[%c0_51, %c384], %141 {strides = array<i32>} : memref<2x1024xf32, #tpu.memory_space<vmem>>, vector<2x128xf32>,
    %c0_52 = arith.constant 0 : index
    %c2048 = arith.constant 2048 : index
    %143 = vector.load %arg1[%c0_52, %c2048] : memref<2x4096xf32, #tpu.memory_space<vmem>>, vector<2x512xf32>
    %cst_53 = arith.constant dense<0.000000e+00> : vector<2x512xf32>
    %144 = tpu.matmul %141, %0, %cst_53 {dimension_numbers = #tpu.dot_dimension_numbers<[1], [0], [0], [1], [0, 0, 1, 1], [], []>} : vector<2x128xf32>, vector<128x512xf32>, vector<2x512xf32> -> vector<2x512xf32>
    %145 = arith.addf %143, %144 : vector<2x512xf32>
    %146 = vector.extract_strided_slice %145 {offsets = [0, 0], sizes = [2, 128], strides = [1, 1]} : vector<2x512xf32> to vector<2x128xf32>
    %cst_54 = arith.constant 0.000000e+00 : f32
    %147 = vector.broadcast %cst_54 : f32 to vector<2x128xf32>
    %148 = arith.subf %147, %146 : vector<2x128xf32>
    %149 = math.exp %148 : vector<2x128xf32>
    %cst_55 = arith.constant 1.000000e+00 : f32
    %150 = vector.broadcast %cst_55 : f32 to vector<2x128xf32>
    %151 = arith.addf %150, %149 : vector<2x128xf32>
    %cst_56 = arith.constant 1.000000e+00 : f32
    %152 = vector.broadcast %cst_56 : f32 to vector<2x128xf32>
    %153 = arith.divf %152, %151 : vector<2x128xf32>
    %154 = vector.extract_strided_slice %145 {offsets = [0, 128], sizes = [2, 128], strides = [1, 1]} : vector<2x512xf32> to vector<2x128xf32>
    %cst_57 = arith.constant 0.000000e+00 : f32
    %155 = vector.broadcast %cst_57 : f32 to vector<2x128xf32>
    %156 = arith.subf %155, %154 : vector<2x128xf32>
    %157 = math.exp %156 : vector<2x128xf32>
    %cst_58 = arith.constant 1.000000e+00 : f32
    %158 = vector.broadcast %cst_58 : f32 to vector<2x128xf32>
    %159 = arith.addf %158, %157 : vector<2x128xf32>
    %cst_59 = arith.constant 1.000000e+00 : f32
    %160 = vector.broadcast %cst_59 : f32 to vector<2x128xf32>
    %161 = arith.divf %160, %159 : vector<2x128xf32>
    %162 = vector.extract_strided_slice %145 {offsets = [0, 256], sizes = [2, 128], strides = [1, 1]} : vector<2x512xf32> to vector<2x128xf32>
    %163 = math.tanh %162 : vector<2x128xf32>
    %164 = vector.extract_strided_slice %145 {offsets = [0, 384], sizes = [2, 128], strides = [1, 1]} : vector<2x512xf32> to vector<2x128xf32>
    %cst_60 = arith.constant 0.000000e+00 : f32
    %165 = vector.broadcast %cst_60 : f32 to vector<2x128xf32>
    %166 = arith.subf %165, %164 : vector<2x128xf32>
    %167 = math.exp %166 : vector<2x128xf32>
    %cst_61 = arith.constant 1.000000e+00 : f32
    %168 = vector.broadcast %cst_61 : f32 to vector<2x128xf32>
    %169 = arith.addf %168, %167 : vector<2x128xf32>
    %cst_62 = arith.constant 1.000000e+00 : f32
    %170 = vector.broadcast %cst_62 : f32 to vector<2x128xf32>
    %171 = arith.divf %170, %169 : vector<2x128xf32>
    %172 = arith.mulf %161, %139 : vector<2x128xf32>
    %173 = arith.mulf %153, %163 : vector<2x128xf32>
    %174 = arith.addf %172, %173 : vector<2x128xf32>
    %175 = math.tanh %174 : vector<2x128xf32>
    %176 = arith.mulf %171, %175 : vector<2x128xf32>
    %c0_63 = arith.constant 0 : index
    %c512_64 = arith.constant 512 : index
    %177 = vector.load %arg3[%c0_63, %c512_64] : memref<2x1024xf32, #tpu.memory_space<vmem>>, vector<2x128xf32>
    tpu.vector_store %arg3[%c0_63, %c512_64], %176 {strides = array<i32>} : memref<2x1024xf32, #tpu.memory_space<vmem>>, vector<2x128xf32>,
    %c0_65 = arith.constant 0 : index
    %c2560 = arith.constant 2560 : index
    %178 = vector.load %arg1[%c0_65, %c2560] : memref<2x4096xf32, #tpu.memory_space<vmem>>, vector<2x512xf32>
    %cst_66 = arith.constant dense<0.000000e+00> : vector<2x512xf32>
    %179 = tpu.matmul %176, %0, %cst_66 {dimension_numbers = #tpu.dot_dimension_numbers<[1], [0], [0], [1], [0, 0, 1, 1], [], []>} : vector<2x128xf32>, vector<128x512xf32>, vector<2x512xf32> -> vector<2x512xf32>
    %180 = arith.addf %178, %179 : vector<2x512xf32>
    %181 = vector.extract_strided_slice %180 {offsets = [0, 0], sizes = [2, 128], strides = [1, 1]} : vector<2x512xf32> to vector<2x128xf32>
    %cst_67 = arith.constant 0.000000e+00 : f32
    %182 = vector.broadcast %cst_67 : f32 to vector<2x128xf32>
    %183 = arith.subf %182, %181 : vector<2x128xf32>
    %184 = math.exp %183 : vector<2x128xf32>
    %cst_68 = arith.constant 1.000000e+00 : f32
    %185 = vector.broadcast %cst_68 : f32 to vector<2x128xf32>
    %186 = arith.addf %185, %184 : vector<2x128xf32>
    %cst_69 = arith.constant 1.000000e+00 : f32
    %187 = vector.broadcast %cst_69 : f32 to vector<2x128xf32>
    %188 = arith.divf %187, %186 : vector<2x128xf32>
    %189 = vector.extract_strided_slice %180 {offsets = [0, 128], sizes = [2, 128], strides = [1, 1]} : vector<2x512xf32> to vector<2x128xf32>
    %cst_70 = arith.constant 0.000000e+00 : f32
    %190 = vector.broadcast %cst_70 : f32 to vector<2x128xf32>
    %191 = arith.subf %190, %189 : vector<2x128xf32>
    %192 = math.exp %191 : vector<2x128xf32>
    %cst_71 = arith.constant 1.000000e+00 : f32
    %193 = vector.broadcast %cst_71 : f32 to vector<2x128xf32>
    %194 = arith.addf %193, %192 : vector<2x128xf32>
    %cst_72 = arith.constant 1.000000e+00 : f32
    %195 = vector.broadcast %cst_72 : f32 to vector<2x128xf32>
    %196 = arith.divf %195, %194 : vector<2x128xf32>
    %197 = vector.extract_strided_slice %180 {offsets = [0, 256], sizes = [2, 128], strides = [1, 1]} : vector<2x512xf32> to vector<2x128xf32>
    %198 = math.tanh %197 : vector<2x128xf32>
    %199 = vector.extract_strided_slice %180 {offsets = [0, 384], sizes = [2, 128], strides = [1, 1]} : vector<2x512xf32> to vector<2x128xf32>
    %cst_73 = arith.constant 0.000000e+00 : f32
    %200 = vector.broadcast %cst_73 : f32 to vector<2x128xf32>
    %201 = arith.subf %200, %199 : vector<2x128xf32>
    %202 = math.exp %201 : vector<2x128xf32>
    %cst_74 = arith.constant 1.000000e+00 : f32
    %203 = vector.broadcast %cst_74 : f32 to vector<2x128xf32>
    %204 = arith.addf %203, %202 : vector<2x128xf32>
    %cst_75 = arith.constant 1.000000e+00 : f32
    %205 = vector.broadcast %cst_75 : f32 to vector<2x128xf32>
    %206 = arith.divf %205, %204 : vector<2x128xf32>
    %207 = arith.mulf %196, %174 : vector<2x128xf32>
    %208 = arith.mulf %188, %198 : vector<2x128xf32>
    %209 = arith.addf %207, %208 : vector<2x128xf32>
    %210 = math.tanh %209 : vector<2x128xf32>
    %211 = arith.mulf %206, %210 : vector<2x128xf32>
    %c0_76 = arith.constant 0 : index
    %c640 = arith.constant 640 : index
    %212 = vector.load %arg3[%c0_76, %c640] : memref<2x1024xf32, #tpu.memory_space<vmem>>, vector<2x128xf32>
    tpu.vector_store %arg3[%c0_76, %c640], %211 {strides = array<i32>} : memref<2x1024xf32, #tpu.memory_space<vmem>>, vector<2x128xf32>,
    %c0_77 = arith.constant 0 : index
    %c3072 = arith.constant 3072 : index
    %213 = vector.load %arg1[%c0_77, %c3072] : memref<2x4096xf32, #tpu.memory_space<vmem>>, vector<2x512xf32>
    %cst_78 = arith.constant dense<0.000000e+00> : vector<2x512xf32>
    %214 = tpu.matmul %211, %0, %cst_78 {dimension_numbers = #tpu.dot_dimension_numbers<[1], [0], [0], [1], [0, 0, 1, 1], [], []>} : vector<2x128xf32>, vector<128x512xf32>, vector<2x512xf32> -> vector<2x512xf32>
    %215 = arith.addf %213, %214 : vector<2x512xf32>
    %216 = vector.extract_strided_slice %215 {offsets = [0, 0], sizes = [2, 128], strides = [1, 1]} : vector<2x512xf32> to vector<2x128xf32>
    %cst_79 = arith.constant 0.000000e+00 : f32
    %217 = vector.broadcast %cst_79 : f32 to vector<2x128xf32>
    %218 = arith.subf %217, %216 : vector<2x128xf32>
    %219 = math.exp %218 : vector<2x128xf32>
    %cst_80 = arith.constant 1.000000e+00 : f32
    %220 = vector.broadcast %cst_80 : f32 to vector<2x128xf32>
    %221 = arith.addf %220, %219 : vector<2x128xf32>
    %cst_81 = arith.constant 1.000000e+00 : f32
    %222 = vector.broadcast %cst_81 : f32 to vector<2x128xf32>
    %223 = arith.divf %222, %221 : vector<2x128xf32>
    %224 = vector.extract_strided_slice %215 {offsets = [0, 128], sizes = [2, 128], strides = [1, 1]} : vector<2x512xf32> to vector<2x128xf32>
    %cst_82 = arith.constant 0.000000e+00 : f32
    %225 = vector.broadcast %cst_82 : f32 to vector<2x128xf32>
    %226 = arith.subf %225, %224 : vector<2x128xf32>
    %227 = math.exp %226 : vector<2x128xf32>
    %cst_83 = arith.constant 1.000000e+00 : f32
    %228 = vector.broadcast %cst_83 : f32 to vector<2x128xf32>
    %229 = arith.addf %228, %227 : vector<2x128xf32>
    %cst_84 = arith.constant 1.000000e+00 : f32
    %230 = vector.broadcast %cst_84 : f32 to vector<2x128xf32>
    %231 = arith.divf %230, %229 : vector<2x128xf32>
    %232 = vector.extract_strided_slice %215 {offsets = [0, 256], sizes = [2, 128], strides = [1, 1]} : vector<2x512xf32> to vector<2x128xf32>
    %233 = math.tanh %232 : vector<2x128xf32>
    %234 = vector.extract_strided_slice %215 {offsets = [0, 384], sizes = [2, 128], strides = [1, 1]} : vector<2x512xf32> to vector<2x128xf32>
    %cst_85 = arith.constant 0.000000e+00 : f32
    %235 = vector.broadcast %cst_85 : f32 to vector<2x128xf32>
    %236 = arith.subf %235, %234 : vector<2x128xf32>
    %237 = math.exp %236 : vector<2x128xf32>
    %cst_86 = arith.constant 1.000000e+00 : f32
    %238 = vector.broadcast %cst_86 : f32 to vector<2x128xf32>
    %239 = arith.addf %238, %237 : vector<2x128xf32>
    %cst_87 = arith.constant 1.000000e+00 : f32
    %240 = vector.broadcast %cst_87 : f32 to vector<2x128xf32>
    %241 = arith.divf %240, %239 : vector<2x128xf32>
    %242 = arith.mulf %231, %209 : vector<2x128xf32>
    %243 = arith.mulf %223, %233 : vector<2x128xf32>
    %244 = arith.addf %242, %243 : vector<2x128xf32>
    %245 = math.tanh %244 : vector<2x128xf32>
    %246 = arith.mulf %241, %245 : vector<2x128xf32>
    %c0_88 = arith.constant 0 : index
    %c768 = arith.constant 768 : index
    %247 = vector.load %arg3[%c0_88, %c768] : memref<2x1024xf32, #tpu.memory_space<vmem>>, vector<2x128xf32>
    tpu.vector_store %arg3[%c0_88, %c768], %246 {strides = array<i32>} : memref<2x1024xf32, #tpu.memory_space<vmem>>, vector<2x128xf32>,
    %c0_89 = arith.constant 0 : index
    %c3584 = arith.constant 3584 : index
    %248 = vector.load %arg1[%c0_89, %c3584] : memref<2x4096xf32, #tpu.memory_space<vmem>>, vector<2x512xf32>
    %cst_90 = arith.constant dense<0.000000e+00> : vector<2x512xf32>
    %249 = tpu.matmul %246, %0, %cst_90 {dimension_numbers = #tpu.dot_dimension_numbers<[1], [0], [0], [1], [0, 0, 1, 1], [], []>} : vector<2x128xf32>, vector<128x512xf32>, vector<2x512xf32> -> vector<2x512xf32>
    %250 = arith.addf %248, %249 : vector<2x512xf32>
    %251 = vector.extract_strided_slice %250 {offsets = [0, 0], sizes = [2, 128], strides = [1, 1]} : vector<2x512xf32> to vector<2x128xf32>
    %cst_91 = arith.constant 0.000000e+00 : f32
    %252 = vector.broadcast %cst_91 : f32 to vector<2x128xf32>
    %253 = arith.subf %252, %251 : vector<2x128xf32>
    %254 = math.exp %253 : vector<2x128xf32>
    %cst_92 = arith.constant 1.000000e+00 : f32
    %255 = vector.broadcast %cst_92 : f32 to vector<2x128xf32>
    %256 = arith.addf %255, %254 : vector<2x128xf32>
    %cst_93 = arith.constant 1.000000e+00 : f32
    %257 = vector.broadcast %cst_93 : f32 to vector<2x128xf32>
    %258 = arith.divf %257, %256 : vector<2x128xf32>
    %259 = vector.extract_strided_slice %250 {offsets = [0, 128], sizes = [2, 128], strides = [1, 1]} : vector<2x512xf32> to vector<2x128xf32>
    %cst_94 = arith.constant 0.000000e+00 : f32
    %260 = vector.broadcast %cst_94 : f32 to vector<2x128xf32>
    %261 = arith.subf %260, %259 : vector<2x128xf32>
    %262 = math.exp %261 : vector<2x128xf32>
    %cst_95 = arith.constant 1.000000e+00 : f32
    %263 = vector.broadcast %cst_95 : f32 to vector<2x128xf32>
    %264 = arith.addf %263, %262 : vector<2x128xf32>
    %cst_96 = arith.constant 1.000000e+00 : f32
    %265 = vector.broadcast %cst_96 : f32 to vector<2x128xf32>
    %266 = arith.divf %265, %264 : vector<2x128xf32>
    %267 = vector.extract_strided_slice %250 {offsets = [0, 256], sizes = [2, 128], strides = [1, 1]} : vector<2x512xf32> to vector<2x128xf32>
    %268 = math.tanh %267 : vector<2x128xf32>
    %269 = vector.extract_strided_slice %250 {offsets = [0, 384], sizes = [2, 128], strides = [1, 1]} : vector<2x512xf32> to vector<2x128xf32>
    %cst_97 = arith.constant 0.000000e+00 : f32
    %270 = vector.broadcast %cst_97 : f32 to vector<2x128xf32>
    %271 = arith.subf %270, %269 : vector<2x128xf32>
    %272 = math.exp %271 : vector<2x128xf32>
    %cst_98 = arith.constant 1.000000e+00 : f32
    %273 = vector.broadcast %cst_98 : f32 to vector<2x128xf32>
    %274 = arith.addf %273, %272 : vector<2x128xf32>
    %cst_99 = arith.constant 1.000000e+00 : f32
    %275 = vector.broadcast %cst_99 : f32 to vector<2x128xf32>
    %276 = arith.divf %275, %274 : vector<2x128xf32>
    %277 = arith.mulf %266, %244 : vector<2x128xf32>
    %278 = arith.mulf %258, %268 : vector<2x128xf32>
    %279 = arith.addf %277, %278 : vector<2x128xf32>
    %280 = math.tanh %279 : vector<2x128xf32>
    %281 = arith.mulf %276, %280 : vector<2x128xf32>
    %c0_100 = arith.constant 0 : index
    %c896 = arith.constant 896 : index
    %282 = vector.load %arg3[%c0_100, %c896] : memref<2x1024xf32, #tpu.memory_space<vmem>>, vector<2x128xf32>
    tpu.vector_store %arg3[%c0_100, %c896], %281 {strides = array<i32>} : memref<2x1024xf32, #tpu.memory_space<vmem>>, vector<2x128xf32>,
    return
  }
  func.func @transform_0(%arg0: i32) -> (i32, i32) {
    %c0_i32 = arith.constant 0 : i32
    %c0_i32_0 = arith.constant 0 : i32
    %c0_i32_1 = arith.constant 0 : i32
    return %c0_i32, %c0_i32_0 : i32, i32
  }
  func.func @transform_1(%arg0: i32) -> (i32, i32) {
    %c0_i32 = arith.constant 0 : i32
    %c0_i32_0 = arith.constant 0 : i32
    %c0_i32_1 = arith.constant 0 : i32
    return %c0_i32, %c0_i32_0 : i32, i32
  }
  func.func @transform_2(%arg0: i32) -> (i32, i32) {
    %c0_i32 = arith.constant 0 : i32
    %c0_i32_0 = arith.constant 0 : i32
    %c0_i32_1 = arith.constant 0 : i32
    return %c0_i32, %c0_i32_0 : i32, i32
  }
}

module attributes {stable_mosaic.version = 11 : i64} {
  func.func @_matmul_bias_kernel(%arg0: i32, %arg1: i32, %arg2: memref<16x128xbf16, #tpu.memory_space<vmem>>, %arg3: memref<128x256xbf16, #tpu.memory_space<vmem>>, %arg4: memref<1x256xf32, #tpu.memory_space<vmem>>, %arg5: memref<16x256xf32, #tpu.memory_space<vmem>>) attributes {dimension_semantics = [#tpu.dimension_semantics<parallel>, #tpu.dimension_semantics<parallel>], iteration_bounds = array<i64: 1, 1>, scalar_prefetch = 0 : i64, scratch_operands = 0 : i64, tpu.core_type = #tpu.core_type<tc>, window_params = [{transform_indices = @transform_0, window_bounds = array<i64: 16, 128>}, {transform_indices = @transform_1, window_bounds = array<i64: 128, 256>}, {transform_indices = @transform_2, window_bounds = array<i64: 1, 256>}, {transform_indices = @transform_3, window_bounds = array<i64: 16, 256>}]} {
    %c0 = arith.constant 0 : index
    %c0_0 = arith.constant 0 : index
    %0 = vector.load %arg2[%c0, %c0_0] : memref<16x128xbf16, #tpu.memory_space<vmem>>, vector<16x128xbf16>
    %c0_1 = arith.constant 0 : index
    %c0_2 = arith.constant 0 : index
    %1 = vector.load %arg3[%c0_1, %c0_2] : memref<128x256xbf16, #tpu.memory_space<vmem>>, vector<128x256xbf16>
    %cst = arith.constant dense<0.000000e+00> : vector<16x256xf32>
    %2 = tpu.matmul %0, %1, %cst {dimension_numbers = #tpu.dot_dimension_numbers<[1], [0], [0], [1], [0, 0, 1, 1], [], []>} : vector<16x128xbf16>, vector<128x256xbf16>, vector<16x256xf32> -> vector<16x256xf32>
    %c0_3 = arith.constant 0 : index
    %c0_4 = arith.constant 0 : index
    %3 = vector.load %arg4[%c0_3, %c0_4] : memref<1x256xf32, #tpu.memory_space<vmem>>, vector<1x256xf32>
    %4 = vector.broadcast %3 : vector<1x256xf32> to vector<16x256xf32>
    %5 = arith.addf %2, %4 : vector<16x256xf32>
    %c0_5 = arith.constant 0 : index
    %c0_6 = arith.constant 0 : index
    %6 = vector.load %arg5[%c0_5, %c0_6] : memref<16x256xf32, #tpu.memory_space<vmem>>, vector<16x256xf32>
    tpu.vector_store %arg5[%c0_5, %c0_6], %5 {strides = array<i32>} : memref<16x256xf32, #tpu.memory_space<vmem>>, vector<16x256xf32>,
    return
  }
  func.func @transform_0(%arg0: i32, %arg1: i32) -> (i32, i32) {
    %c0_i32 = arith.constant 0 : i32
    %c0_i32_0 = arith.constant 0 : i32
    return %arg0, %c0_i32 : i32, i32
  }
  func.func @transform_1(%arg0: i32, %arg1: i32) -> (i32, i32) {
    %c0_i32 = arith.constant 0 : i32
    %c0_i32_0 = arith.constant 0 : i32
    return %c0_i32, %arg1 : i32, i32
  }
  func.func @transform_2(%arg0: i32, %arg1: i32) -> (i32, i32) {
    %c0_i32 = arith.constant 0 : i32
    %c0_i32_0 = arith.constant 0 : i32
    return %c0_i32, %arg1 : i32, i32
  }
  func.func @transform_3(%arg0: i32, %arg1: i32) -> (i32, i32) {
    %c0_i32 = arith.constant 0 : i32
    return %arg0, %arg1 : i32, i32
  }
}

</mosaic_0001>

<bundles_post_ra>
// kernel: decoder_rnn_forward.4
= control target key start
LH: loop header
LB: loop body
LE: loop exit
PB: predicated region body
PF: predicated region fallthrough
CT: control target
= control target key end

     0   :  { %s580_s12 = smov [#allocation5]   ;;  %s651_s0 = inlined_call_operand.vmem [shape: s32[16], index: 0, kind: input, shape index: {}]   ;;  %s652_s1 = inlined_call_operand.vmem [shape: f32[256,32], index: 1, kind: input, shape index: {}]   ;;  %s653_s2 = inlined_call_operand.vmem [shape: f32[16,32], index: 2, kind: output, shape index: {}]  }
   0x1   :  { %s8_s11 = sshll.u32 %s651_s0, 4  ;;  %s9_s11 = int_to_ptr.vmem [resolvable:$true] %s8_s11 }
   0x2   :  { %11 = dma.vmem_to_smem %s9_s11, 16, %s580_s12, [#allocation4] }
   0x3   :  { %558 = dma.done.wait [#allocation4], 16 }
   0x4   :  { %559 = vsyncadd [#allocation4], 4294967280 }
   0x5   :  { %14 = sfence }
   0x6   :  { %s599_s13 = smov 0  }
   0x7 LB: > { %p520_p0 = scmp.ge.s32.totalorder %s578_s13, 2  ;;  %s578_s13 = sphi %s599_s13, %s20_s13  }
   0x8   : > { %p52_p1 = scmp.lt.s32.totalorder (!%p520_p0), %s578_s13, 1  ;;  %s607_s0 = sshll.u32 (!%p520_p0), %s578_s13, 3 }
   0x9   : > { %45 = sbr.rel (%p520_p0) target bundleno = 106 (0x6a), region = 12  ;;  %s57_s14 = sld [smem:[#allocation5 + %s607_s0]] (!%p520_p0) }
   0xe   : > { %s53_s15 = scalar_select %p52_p1, %s578_s13, 1 }
   0xf   : > { %s58_s22 = scalar_lea.vmem %s652_s1, %s57_s14 }
  0x10   : > { %s521_s16 = sshll.u32 %s53_s15, 3  ;;  %v73_v0 = vld [vmem:[%s58_s22] sm:$0x1] }
  0x11   : > { %s614_s19 = scalar_lea.vmem %s653_s2, %s521_s16  ;;  %74 = vst [vmem:[#allocation2] sm:$0x1] %v73_v0 }
  0x12   : > { %92 = vsyncadd [#allocation3], 16  ;;  %s93_s23 = sadd.s32 1, %s607_s0 }
  0x13   : > { %s94_s24 = sld [smem:[#allocation5 + %s93_s23]] }
  0x19   : > { %s95_s27 = scalar_lea.vmem %s652_s1, %s94_s24 }
  0x1a   : > { %v112_v1 = vld [vmem:[%s95_s27] sm:$0x1] }
  0x1b   : > { %113 = vst [vmem:[#allocation2 + $0x1] sm:$0x1] %v112_v1 }
  0x1c   : > { %131 = vsyncadd [#allocation3 + $0x1], 16  ;;  %s132_s28 = sadd.s32 2, %s607_s0 }
  0x1d   : > { %s133_s29 = sld [smem:[#allocation5 + %s132_s28]] }
  0x23   : > { %s134_s4 = scalar_lea.vmem %s652_s1, %s133_s29 }
  0x24   : > { %v151_v2 = vld [vmem:[%s134_s4] sm:$0x1] }
  0x25   : > { %152 = vst [vmem:[#allocation2 + $0x2] sm:$0x1] %v151_v2 }
  0x26   : > { %170 = vsyncadd [#allocation3 + $0x2], 16  ;;  %s171_s5 = sadd.s32 3, %s607_s0 }
  0x27   : > { %s172_s6 = sld [smem:[#allocation5 + %s171_s5]] }
  0x2d   : > { %s173_s9 = scalar_lea.vmem %s652_s1, %s172_s6 }
  0x2e   : > { %v190_v3 = vld [vmem:[%s173_s9] sm:$0x1] }
  0x2f   : > { %191 = vst [vmem:[#allocation2 + $0x3] sm:$0x1] %v190_v3 }
  0x30   : > { %209 = vsyncadd [#allocation3 + $0x3], 16  ;;  %s210_s10 = sadd.s32 4, %s607_s0 }
  0x31   : > { %s211_s11 = sld [smem:[#allocation5 + %s210_s10]] }
  0x37   : > { %s212_s15 = scalar_lea.vmem %s652_s1, %s211_s11 }
  0x38   : > { %v229_v4 = vld [vmem:[%s212_s15] sm:$0x1] }
  0x39   : > { %230 = vst [vmem:[#allocation2 + $0x4] sm:$0x1] %v229_v4 }
  0x3a   : > { %248 = vsyncadd [#allocation3 + $0x4], 16  ;;  %s249_s16 = sadd.s32 5, %s607_s0 }
  0x3b   : > { %s250_s17 = sld [smem:[#allocation5 + %s249_s16]] }
  0x41   : > { %s251_s21 = scalar_lea.vmem %s652_s1, %s250_s17 }
  0x42   : > { %v268_v5 = vld [vmem:[%s251_s21] sm:$0x1] }
  0x43   : > { %269 = vst [vmem:[#allocation2 + $0x5] sm:$0x1] %v268_v5 }
  0x44   : > { %287 = vsyncadd [#allocation3 + $0x5], 16  ;;  %s288_s22 = sadd.s32 6, %s607_s0 }
  0x45   : > { %s289_s23 = sld [smem:[#allocation5 + %s288_s22]] }
  0x4b   : > { %s290_s26 = scalar_lea.vmem %s652_s1, %s289_s23 }
  0x4c   : > { %v307_v6 = vld [vmem:[%s290_s26] sm:$0x1] }
  0x4d   : > { %308 = vst [vmem:[#allocation2 + $0x6] sm:$0x1] %v307_v6 }
  0x4e   : > { %326 = vsyncadd [#allocation3 + $0x6], 16  ;;  %s327_s27 = sadd.s32 7, %s607_s0 }
  0x4f   : > { %s328_s28 = sld [smem:[#allocation5 + %s327_s27]] }
  0x55   : > { %s329_s3 = scalar_lea.vmem %s652_s1, %s328_s28 }
  0x56   : > { %v346_v7 = vld [vmem:[%s329_s3] sm:$0x1] }
  0x57   : > { %347 = vst [vmem:[#allocation2 + $0x7] sm:$0x1] %v346_v7 }
  0x58   : > { %365 = vsyncadd [#allocation3 + $0x7], 16 }
  0x59   : > { %560 = dma.done.wait [#allocation3], 16 }
  0x5a   : > { %561 = vsyncadd [#allocation3], 4294967280 }
  0x5b   : > { %562 = dma.done.wait [#allocation3 + $0x1], 16 }
  0x5c   : > { %563 = vsyncadd [#allocation3 + $0x1], 4294967280 }
  0x5d   : > { %564 = dma.done.wait [#allocation3 + $0x2], 16 }
  0x5e   : > { %565 = vsyncadd [#allocation3 + $0x2], 4294967280 }
  0x5f   : > { %566 = dma.done.wait [#allocation3 + $0x3], 16 }
  0x60   : > { %567 = vsyncadd [#allocation3 + $0x3], 4294967280 }
  0x61   : > { %568 = dma.done.wait [#allocation3 + $0x4], 16 }
  0x62   : > { %569 = vsyncadd [#allocation3 + $0x4], 4294967280 }
  0x63   : > { %570 = dma.done.wait [#allocation3 + $0x5], 16 }
  0x64   : > { %571 = vsyncadd [#allocation3 + $0x5], 4294967280 }
  0x65   : > { %572 = dma.done.wait [#allocation3 + $0x6], 16 }
  0x66   : > { %573 = vsyncadd [#allocation3 + $0x6], 4294967280 }
  0x67   : > { %574 = dma.done.wait [#allocation3 + $0x7], 16 }
  0x68   : > { %575 = vsyncadd [#allocation3 + $0x7], 4294967280  ;;  %vm384_vm0 = vcmask 261120   ;;  %v383_v8 = vld [vmem:[#allocation2] sm:$0xff] }
  0x69   : > { %385 = vst.msk [vmem:[%s614_s19] sm:$0xff] %vm384_vm0, %v383_v8 }
  0x6a PF: > { %s20_s13 = sadd.s32 1, %s578_s13  }
  0x6b   : > { %p17_p2 = scmp.ge.s32.totalorder %s20_s13, 3  }
  0x6d   :  { %19 = sbr.rel (!%p17_p2) target bundleno = 7 (0x7), region = 340 }
  0x72   :  { %405 = vsyncmov [#allocation3] }
  0x75   :  { %s406_s0 = vpop.sfrf %405 }
  0x76   :  { %p525_p3 = scmp.ne.s32.totalorder %s406_s0, 0 }
  0x78   :  { %410 = shalt.err (%p525_p3)  }
  0x79   :  { %412 = vsyncmov [#allocation3 + $0x1] }
  0x7c   :  { %s413_s4 = vpop.sfrf %412 }
  0x7d   :  { %p526_p4 = scmp.ne.s32.totalorder %s413_s4, 0 }
  0x7f   :  { %417 = shalt.err (%p526_p4)  }
  0x80   :  { %419 = vsyncmov [#allocation3 + $0x2] }
  0x83   :  { %s420_s5 = vpop.sfrf %419 }
  0x84   :  { %p527_p5 = scmp.ne.s32.totalorder %s420_s5, 0 }
  0x86   :  { %424 = shalt.err (%p527_p5)  }
  0x87   :  { %426 = vsyncmov [#allocation3 + $0x3] }
  0x8a   :  { %s427_s19 = vpop.sfrf %426 }
  0x8b   :  { %p528_p6 = scmp.ne.s32.totalorder %s427_s19, 0 }
  0x8d   :  { %431 = shalt.err (%p528_p6)  }
  0x8e   :  { %433 = vsyncmov [#allocation3 + $0x4] }
  0x91   :  { %s434_s6 = vpop.sfrf %433 }
  0x92   :  { %p529_p7 = scmp.ne.s32.totalorder %s434_s6, 0 }
  0x94   :  { %438 = shalt.err (%p529_p7)  }
  0x95   :  { %440 = vsyncmov [#allocation3 + $0x5] }
  0x98   :  { %s441_s1 = vpop.sfrf %440 }
  0x99   :  { %p530_p8 = scmp.ne.s32.totalorder %s441_s1, 0 }
  0x9b   :  { %445 = shalt.err (%p530_p8)  }
  0x9c   :  { %447 = vsyncmov [#allocation3 + $0x6] }
  0x9f   :  { %s448_s2 = vpop.sfrf %447 }
  0xa0   :  { %p531_p9 = scmp.ne.s32.totalorder %s448_s2, 0 }
  0xa2   :  { %452 = shalt.err (%p531_p9)  }
  0xa3   :  { %454 = vsyncmov [#allocation3 + $0x7] }
  0xa6   :  { %s455_s13 = vpop.sfrf %454 }
  0xa7   :  { %p532_p10 = scmp.ne.s32.totalorder %s455_s13, 0 }
  0xa9   :  { %459 = shalt.err (%p532_p10)  }

// kernel: decoder_rnn_forward.5
= control target key start
LH: loop header
LB: loop body
LE: loop exit
PB: predicated region body
PF: predicated region fallthrough
CT: control target
= control target key end

     0   :  { %vm80_vm0 = vcmask 261120   ;;  %s299_s1 = inlined_call_operand.vmem [shape: bf16[32,512], index: 1, kind: input, shape index: {}]   ;;  %s300_s0 = inlined_call_operand.vmem [shape: bf16[16,32], index: 0, kind: input, shape index: {}]   ;;  %s301_s2 = inlined_call_operand.vmem [shape: f32[1,512], index: 2, kind: input, shape index: {}]   ;;  %s302_s3 = inlined_call_operand.vmem [shape: f32[16,512], index: 3, kind: output, shape index: {}]  }
   0x1   :  { %v174_v0 = vld [vmem:[%s299_s1 + $0x20] sm:$0xf]  ;;  %v199_v1 = vld [vmem:[%s299_s1 + $0x2c] sm:$0xf0]  ;;  %v197_v2 = vld [vmem:[%s299_s1 + $0x24] sm:$0xf] }
   0x2   :  { %v175_v3 = vor.u32 %v199_v1, %v174_v0  ;;  %v176_v4 = vld [vmem:[%s299_s1 + $0x30] sm:$0xf0]  ;;  %v182_v5 = vld [vmem:[%s299_s1 + $0x28] sm:$0xf]  ;;  %v200_v6 = vld [vmem:[%s299_s1 + $0x34] sm:$0xf0] }
   0x3   :  { %v179_v7 = vor.u32 %v197_v2, %v176_v4  ;;  %v183_v8 = vor.u32 %v200_v6, %v182_v5  ;;  %v198_v9 = vld [vmem:[%s299_s1 + $0x2c] sm:$0xf]  ;;  %v184_v10 = vld [vmem:[%s299_s1 + $0x38] sm:$0xf0]  ;;  %v158_v11 = vld [vmem:[%s299_s1] sm:$0xf] }
   0x4   :  { %90 = vmatpush.bf16.msra.mxu0 %v175_v3  ;;  %v187_v12 = vor.u32 %v198_v9, %v184_v10  ;;  %v195_v13 = vld [vmem:[%s299_s1 + $0xc] sm:$0xf0]  ;;  %v193_v14 = vld [vmem:[%s299_s1 + $0x4] sm:$0xf]  ;;  %v160_v15 = vld [vmem:[%s299_s1 + $0x10] sm:$0xf0] }
   0x5   :  { %104 = vmatpush.bf16.msra.mxu1 %v179_v7  ;;  %118 = vmatpush.bf16.msra.mxu2 %v183_v8  ;;  %v159_v16 = vor.u32 %v195_v13, %v158_v11  ;;  %v163_v17 = vor.u32 %v193_v14, %v160_v15  ;;  %v166_v18 = vld [vmem:[%s299_s1 + $0x8] sm:$0xf]  ;;  %v196_v19 = vld [vmem:[%s299_s1 + $0x14] sm:$0xf0]  ;;  %v194_v20 = vld [vmem:[%s299_s1 + $0xc] sm:$0xf] }
   0x6   :  { %132 = vmatpush.bf16.msra.mxu3 %v187_v12  ;;  %v167_v21 = vor.u32 %v196_v19, %v166_v18  ;;  %v168_v22 = vld [vmem:[%s299_s1 + $0x18] sm:$0xf0]  ;;  %v192_v24 = vld [vmem:[%s300_s0] sm:$0xff] }
   0x7   :  { %v171_v23 = vor.u32 %v194_v20, %v168_v22  ;;  %v25_v25 = vld [vmem:[%s301_s2] sm:$0xf] }
   0x8   :  { %91 = vmatpush.bf16.msra.mxu0 %v159_v16  ;;  %v27_v26 = vperm.slane %v25_v25, 0  ;;  %v28_v27 = vperm.slane %v25_v25, 1  ;;  %v29_v32 = vperm.slane %v25_v25, 2  ;;  %v30_v33 = vperm.slane %v25_v25, 3 }
   0x9   :  { %105 = vmatpush.bf16.msra.mxu1 %v163_v17  ;;  %119 = vmatpush.bf16.msra.mxu2 %v167_v21 }
   0xa   :  { %133 = vmatpush.bf16.msra.mxu3 %v171_v23 }
   0xb   :  { %188 = vmatmul.msk.bf16.vlgmr.msra.gmra.mxu0 %vm80_vm0, %v192_v24 }
   0xc   :  { %189 = vmatmul.msk.bf16.vlgmr.msra.gmra.mxu1 %vm80_vm0, %v192_v24  ;;  %190 = vmatmul.msk.bf16.vlgmr.msra.gmra.mxu2 %vm80_vm0, %v192_v24 }
   0xd   :  { %191 = vmatmul.msk.bf16.vlgmr.msra.gmra.mxu3 %vm80_vm0, %v192_v24 }
  0x88   :  { %v93_v28 = vpop.f32.mrf.mxu0 }
  0x89   :  { %v94_v29 = vadd.f32 %v93_v28, %v27_v26  ;;  %v107_v30 = vpop.f32.mrf.mxu1 }
  0x8a   :  { %v108_v31 = vadd.f32 %v107_v30, %v28_v27 }
  0x8b   :  { %140 = vst [vmem:[%s302_s3] sm:$0xff] %v94_v29 }
  0x8c   :  { %141 = vst [vmem:[%s302_s3 + $0x8] sm:$0xff] %v108_v31 }
  0x8f   :  { %v121_v34 = vpop.f32.mrf.mxu2 }
  0x90   :  { %v122_v35 = vadd.f32 %v121_v34, %v29_v32  ;;  %v135_v36 = vpop.f32.mrf.mxu3  ;;  %v95_v37 = vpop.f32.mrf.mxu0 }
  0x91   :  { %v136_v38 = vadd.f32 %v135_v36, %v30_v33  ;;  %v96_v39 = vadd.f32 %v95_v37, %v27_v26  ;;  %v109_v40 = vpop.f32.mrf.mxu1 }
  0x92   :  { %142 = vst [vmem:[%s302_s3 + $0x10] sm:$0xff] %v122_v35  ;;  %v110_v41 = vadd.f32 %v109_v40, %v28_v27 }
  0x93   :  { %143 = vst [vmem:[%s302_s3 + $0x18] sm:$0xff] %v136_v38 }
  0x94   :  { %144 = vst [vmem:[%s302_s3 + $0x20] sm:$0xff] %v96_v39 }
  0x95   :  { %145 = vst [vmem:[%s302_s3 + $0x28] sm:$0xff] %v110_v41 }
  0x97   :  { %v123_v42 = vpop.f32.mrf.mxu2 }
  0x98   :  { %v124_v43 = vadd.f32 %v123_v42, %v29_v32  ;;  %v137_v44 = vpop.f32.mrf.mxu3 }
  0x99   :  { %v138_v45 = vadd.f32 %v137_v44, %v30_v33 }
  0x9a   :  { %146 = vst [vmem:[%s302_s3 + $0x30] sm:$0xff] %v124_v43 }
  0x9b   :  { %147 = vst [vmem:[%s302_s3 + $0x38] sm:$0xff] %v138_v45 }

// kernel: decoder_rnn_forward.7
= control target key start
LH: loop header
LB: loop body
LE: loop exit
PB: predicated region body
PF: predicated region fallthrough
CT: control target
= control target key end

     0   :  { %s417_s0 = inlined_call_operand.vmem [shape: bf16[16,128], index: 0, kind: input, shape index: {}]   ;;  %s418_s1 = inlined_call_operand.vmem [shape: bf16[128,256], index: 1, kind: input, shape index: {}]   ;;  %s419_s2 = inlined_call_operand.vmem [shape: f32[1,256], index: 2, kind: input, shape index: {}]   ;;  %s420_s3 = inlined_call_operand.hbm [shape: f32[16,256], index: 3, kind: output, shape index: {}]  }
   0x1   :  { %v237_v0 = vld [vmem:[%s418_s1 + $0x70] sm:$0xf]  ;;  %v259_v1 = vld [vmem:[%s418_s1 + $0x74] sm:$0xf0]  ;;  %v258_v2 = vld [vmem:[%s418_s1 + $0x74] sm:$0xf] }
   0x2   :  { %v238_v3 = vor.u32 %v259_v1, %v237_v0  ;;  %v239_v4 = vld [vmem:[%s418_s1 + $0x78] sm:$0xf0]  ;;  %v229_v5 = vld [vmem:[%s418_s1 + $0x60] sm:$0xf]  ;;  %v257_v6 = vld [vmem:[%s418_s1 + $0x64] sm:$0xf0] }
   0x3   :  { %v242_v7 = vor.u32 %v258_v2, %v239_v4  ;;  %v256_v8 = vld [vmem:[%s418_s1 + $0x64] sm:$0xf]  ;;  %v231_v9 = vld [vmem:[%s418_s1 + $0x68] sm:$0xf0]  ;;  %v230_v10 = vor.u32 %v257_v6, %v229_v5  ;;  %v221_v12 = vld [vmem:[%s418_s1 + $0x50] sm:$0xf] }
   0x4   :  { %125 = vmatpush.bf16.msra.mxu0 %v238_v3  ;;  %v234_v11 = vor.u32 %v256_v8, %v231_v9  ;;  %v255_v13 = vld [vmem:[%s418_s1 + $0x54] sm:$0xf0]  ;;  %v254_v14 = vld [vmem:[%s418_s1 + $0x54] sm:$0xf]  ;;  %v223_v15 = vld [vmem:[%s418_s1 + $0x58] sm:$0xf0] }
   0x5   :  { %139 = vmatpush.bf16.msra.mxu1 %v242_v7  ;;  %v222_v16 = vor.u32 %v255_v13, %v221_v12  ;;  %v226_v17 = vor.u32 %v254_v14, %v223_v15  ;;  %v213_v18 = vld [vmem:[%s418_s1 + $0x40] sm:$0xf]  ;;  %v253_v19 = vld [vmem:[%s418_s1 + $0x44] sm:$0xf0]  ;;  %v252_v20 = vld [vmem:[%s418_s1 + $0x44] sm:$0xf] }
   0x6   :  { %v215_v21 = vld [vmem:[%s418_s1 + $0x48] sm:$0xf0]  ;;  %v214_v22 = vor.u32 %v253_v19, %v213_v18 }
   0x8   :  { %126 = vmatpush.bf16.msra.mxu0 %v230_v10 }
   0x9   :  { %140 = vmatpush.bf16.msra.mxu1 %v234_v11 }
   0xc   :  { %127 = vmatpush.bf16.msra.mxu0 %v222_v16 }
   0xd   :  { %8 = vsyncpa [#allocation3], 0  ;;  %141 = vmatpush.bf16.msra.mxu1 %v226_v17  ;;  %v218_v23 = vor.u32 %v252_v20, %v215_v21  ;;  %v205_v24 = vld [vmem:[%s418_s1 + $0x30] sm:$0xf]  ;;  %v251_v25 = vld [vmem:[%s418_s1 + $0x34] sm:$0xf0] }
   0xe   :  { %v250_v26 = vld [vmem:[%s418_s1 + $0x34] sm:$0xf]  ;;  %v207_v27 = vld [vmem:[%s418_s1 + $0x38] sm:$0xf0]  ;;  %v206_v28 = vor.u32 %v251_v25, %v205_v24  ;;  %v197_v30 = vld [vmem:[%s418_s1 + $0x20] sm:$0xf] }
   0xf   :  { %v210_v29 = vor.u32 %v250_v26, %v207_v27  ;;  %v249_v31 = vld [vmem:[%s418_s1 + $0x24] sm:$0xf0]  ;;  %v248_v32 = vld [vmem:[%s418_s1 + $0x24] sm:$0xf]  ;;  %v199_v33 = vld [vmem:[%s418_s1 + $0x28] sm:$0xf0] }
  0x10   :  { %128 = vmatpush.bf16.msra.mxu0 %v214_v22  ;;  %v198_v34 = vor.u32 %v249_v31, %v197_v30  ;;  %v202_v35 = vor.u32 %v248_v32, %v199_v33  ;;  %v189_v36 = vld [vmem:[%s418_s1 + $0x10] sm:$0xf]  ;;  %v247_v37 = vld [vmem:[%s418_s1 + $0x14] sm:$0xf0]  ;;  %v246_v38 = vld [vmem:[%s418_s1 + $0x14] sm:$0xf] }
  0x11   :  { %142 = vmatpush.bf16.msra.mxu1 %v218_v23  ;;  %v191_v39 = vld [vmem:[%s418_s1 + $0x18] sm:$0xf0]  ;;  %v190_v40 = vor.u32 %v247_v37, %v189_v36  ;;  %v181_v42 = vld [vmem:[%s418_s1] sm:$0xf]  ;;  %v245_v43 = vld [vmem:[%s418_s1 + $0x4] sm:$0xf0] }
  0x12   :  { %v194_v41 = vor.u32 %v246_v38, %v191_v39  ;;  %v244_v44 = vld [vmem:[%s418_s1 + $0x4] sm:$0xf]  ;;  %v183_v45 = vld [vmem:[%s418_s1 + $0x8] sm:$0xf0]  ;;  %v182_v46 = vor.u32 %v245_v43, %v181_v42  ;;  %v33_v49 = vld [vmem:[%s419_s2] sm:$0x3] }
  0x13   :  { %v186_v47 = vor.u32 %v244_v44, %v183_v45  ;;  %v243_v48 = vld [vmem:[%s417_s0] sm:$0xff]  ;;  %v35_v50 = vperm.slane %v33_v49, 0  ;;  %v36_v51 = vperm.slane %v33_v49, 1  ;;  %s289_s1 = smov [#allocation2]   ;;  %s163_s28 = sshll.u32 %s420_s3, 4  ;;  %s164_s28 = int_to_ptr.hbm [resolvable:$true] %s163_s28 }
  0x14   :  { %129 = vmatpush.bf16.msra.mxu0 %v206_v28  ;;  %s161_s26 = sshll.u32 %s289_s1, 4  ;;  %s290_s2 = smov 256   ;;  %s162_s26 = int_to_ptr.vmem [resolvable:$true] %s161_s26 }
  0x15   :  { %143 = vmatpush.bf16.msra.mxu1 %v210_v29  ;;  %s291_s29 = smov 16  }
  0x18   :  { %130 = vmatpush.bf16.msra.mxu0 %v198_v34 }
  0x19   :  { %144 = vmatpush.bf16.msra.mxu1 %v202_v35 }
  0x1c   :  { %131 = vmatpush.bf16.msra.mxu0 %v190_v40 }
  0x1d   :  { %145 = vmatpush.bf16.msra.mxu1 %v194_v41 }
  0x20   :  { %132 = vmatpush.bf16.msra.mxu0 %v182_v46 }
  0x21   :  { %146 = vmatpush.bf16.msra.mxu1 %v186_v47 }
  0x23   :  { %133 = vmatmul.bf16.vlgmr.msra.gmra.mxu0 %v243_v48 }
  0x24   :  { %147 = vmatmul.bf16.vlgmr.msra.gmra.mxu1 %v243_v48 }
  0xa0   :  { %v134_v52 = vpop.f32.mrf.mxu0 }
  0xa1   :  { %v135_v53 = vadd.f32 %v134_v52, %v35_v50  ;;  %v148_v54 = vpop.f32.mrf.mxu1 }
  0xa2   :  { %v149_v55 = vadd.f32 %v148_v54, %v36_v51 }
  0xa3   :  { %153 = vst [vmem:[#allocation2] sm:$0xff] %v135_v53 }
  0xa4   :  { %154 = vst [vmem:[#allocation2 + $0x8] sm:$0xff] %v149_v55 }
  0xa8   :  { %v136_v56 = vpop.f32.mrf.mxu0 }
  0xa9   :  { %v137_v57 = vadd.f32 %v136_v56, %v35_v50  ;;  %v150_v58 = vpop.f32.mrf.mxu1 }
  0xaa   :  { %v151_v59 = vadd.f32 %v150_v58, %v36_v51 }
  0xab   :  { %155 = vst [vmem:[#allocation2 + $0x10] sm:$0xff] %v137_v57 }
  0xac   :  { %156 = vst [vmem:[#allocation2 + $0x18] sm:$0xff] %v151_v59 }
  0xad   :  { %169 = dma.vmem_to_hbm [thread:$0]  %s162_s26, 512, %s164_s28, [#allocation3], %s290_s2, %s290_s2, %s291_s29  }
  0xae   :  { %287 = dma.done.wait [#allocation3], 512  }
  0xaf   :  { %288 = vsyncadd [#allocation3], 4294966784 }
  0xb0   :  { %174 = vsyncpa [#allocation3], 1 }

// kernel: decoder_rnn_forward.6
= control target key start
LH: loop header
LB: loop body
LE: loop exit
PB: predicated region body
PF: predicated region fallthrough
CT: control target
= control target key end

     0   :  { %7 = vsyncpa [#allocation3], 0  ;;  %s1633_s12 = smov [#allocation2]   ;;  %s1634_s14 = smov 512   ;;  %s2523_s0 = inlined_call_operand.vmem [shape: f32[2,4096], index: 0, kind: input, shape index: {}]   ;;  %s2524_s1 = inlined_call_operand.hbm [shape: f32[128,512], index: 1, kind: input, shape index: {}]   ;;  %s2525_s2 = inlined_call_operand.vmem [shape: f32[2,1024], index: 2, kind: output, shape index: {}]  }
   0x1   :  { %s14_s11 = sshll.u32 %s2524_s1, 4  ;;  %s16_s13 = sshll.u32 %s1633_s12, 4  ;;  %s15_s11 = int_to_ptr.hbm [resolvable:$true] %s14_s11  ;;  %s17_s13 = int_to_ptr.vmem [resolvable:$true] %s16_s13 }
   0x2   :  { %s1635_s15 = smov 32  }
   0x3   :  { %22 = dma.hbm_to_vmem [thread:$0]  %s15_s11, 8192, %s17_s13, [#allocation3], %s1634_s14, %s1634_s14, %s1635_s15  }
   0x4   :  { %1631 = dma.done.wait [#allocation3], 8192  }
   0x5   :  { %1632 = vsyncadd [#allocation3], 4294959104  ;;  %v1655_v0 = vld [vmem:[#allocation2 + $0x1f0] sm:$0xff]  ;;  %v1657_v1 = vld [vmem:[#allocation2 + $0x1f8] sm:$0xff]  ;;  %v1636_v62 = vmov 0.0   ;;  %vm179_vm0 = vcmask 1041408  }
   0x6   :  { %v1659_v2 = vld [vmem:[#allocation2 + $0x1d0] sm:$0xff]  ;;  %132 = vmatpush.msra.mxu2 %v1655_v0  ;;  %152 = vmatpush.msra.mxu3 %v1657_v1  ;;  %v1663_v3 = vld [vmem:[#allocation2 + $0x1d8] sm:$0xff]  ;;  %v1669_v6 = vld [vmem:[#allocation2 + $0x1e8] sm:$0xff]  ;;  %vm181_vm1 = vcmask 1045508   ;;  %vm183_vm2 = vcmask 1043456  }
   0x7   :  { %v1665_v4 = vld [vmem:[#allocation2 + $0x1b0] sm:$0xff]  ;;  %v1667_v5 = vld [vmem:[#allocation2 + $0x1b8] sm:$0xff]  ;;  %v1673_v7 = vld [vmem:[#allocation2 + $0x1e0] sm:$0xff]  ;;  %112 = vmatpush.msra.mxu1 %v1669_v6 }
   0x8   :  { %133 = vmatpush.msra.mxu2 %v1659_v2  ;;  %153 = vmatpush.msra.mxu3 %v1663_v3  ;;  %v1675_v8 = vld [vmem:[#allocation2 + $0x1c8] sm:$0xff]  ;;  %v1678_v9 = vld [vmem:[#allocation2 + $0x190] sm:$0xff]  ;;  %v1680_v10 = vld [vmem:[#allocation2 + $0x198] sm:$0xff] }
   0x9   :  { %92 = vmatpush.msra.mxu0 %v1673_v7  ;;  %v1683_v11 = vld [vmem:[#allocation2 + $0x1c0] sm:$0xff]  ;;  %v1687_v12 = vld [vmem:[#allocation2 + $0x1a8] sm:$0xff]  ;;  %113 = vmatpush.msra.mxu1 %v1675_v8  ;;  %v1692_v14 = vld [vmem:[#allocation2 + $0x170] sm:$0xff] }
   0xa   :  { %134 = vmatpush.msra.mxu2 %v1665_v4  ;;  %154 = vmatpush.msra.mxu3 %v1667_v5  ;;  %v1689_v13 = vld [vmem:[#allocation2 + $0x1a0] sm:$0xff]  ;;  %v1694_v15 = vld [vmem:[#allocation2 + $0x178] sm:$0xff]  ;;  %v1699_v16 = vld [vmem:[#allocation2 + $0x188] sm:$0xff] }
   0xb   :  { %93 = vmatpush.msra.mxu0 %v1683_v11  ;;  %v1701_v17 = vld [vmem:[#allocation2 + $0x180] sm:$0xff]  ;;  %114 = vmatpush.msra.mxu1 %v1687_v12  ;;  %v1704_v18 = vld [vmem:[#allocation2 + $0x150] sm:$0xff]  ;;  %v1706_v19 = vld [vmem:[#allocation2 + $0x158] sm:$0xff] }
   0xc   :  { %135 = vmatpush.msra.mxu2 %v1678_v9  ;;  %155 = vmatpush.msra.mxu3 %v1680_v10  ;;  %v1711_v20 = vld [vmem:[#allocation2 + $0x168] sm:$0xff]  ;;  %v1713_v21 = vld [vmem:[#allocation2 + $0x160] sm:$0xff]  ;;  %v1716_v22 = vld [vmem:[#allocation2 + $0x130] sm:$0xff] }
   0xd   :  { %94 = vmatpush.msra.mxu0 %v1689_v13  ;;  %115 = vmatpush.msra.mxu1 %v1699_v16  ;;  %v1718_v23 = vld [vmem:[#allocation2 + $0x138] sm:$0xff]  ;;  %v1723_v24 = vld [vmem:[#allocation2 + $0x148] sm:$0xff]  ;;  %v1725_v25 = vld [vmem:[#allocation2 + $0x140] sm:$0xff] }
   0xe   :  { %136 = vmatpush.msra.mxu2 %v1692_v14  ;;  %156 = vmatpush.msra.mxu3 %v1694_v15  ;;  %v1728_v26 = vld [vmem:[#allocation2 + $0x110] sm:$0xff]  ;;  %v1730_v27 = vld [vmem:[#allocation2 + $0x118] sm:$0xff]  ;;  %v1735_v28 = vld [vmem:[#allocation2 + $0x128] sm:$0xff] }
   0xf   :  { %95 = vmatpush.msra.mxu0 %v1701_v17  ;;  %116 = vmatpush.msra.mxu1 %v1711_v20  ;;  %v1737_v29 = vld [vmem:[#allocation2 + $0x120] sm:$0xff]  ;;  %v1740_v30 = vld [vmem:[#allocation2 + $0xf0] sm:$0xff]  ;;  %v1742_v31 = vld [vmem:[#allocation2 + $0xf8] sm:$0xff] }
  0x10   :  { %137 = vmatpush.msra.mxu2 %v1704_v18  ;;  %157 = vmatpush.msra.mxu3 %v1706_v19  ;;  %v1747_v32 = vld [vmem:[#allocation2 + $0x108] sm:$0xff]  ;;  %v1749_v33 = vld [vmem:[#allocation2 + $0x100] sm:$0xff]  ;;  %v1752_v34 = vld [vmem:[#allocation2 + $0xd0] sm:$0xff] }
  0x11   :  { %96 = vmatpush.msra.mxu0 %v1713_v21  ;;  %117 = vmatpush.msra.mxu1 %v1723_v24  ;;  %2634 = vst [vmem:[#allocation5_spill] sm:$0xff] %v1752_v34  ;;  %v1754_v35 = vld [vmem:[#allocation2 + $0xd8] sm:$0xff]  ;;  %v1759_v36 = vld [vmem:[#allocation2 + $0xe8] sm:$0xff]  ;;  %v1761_v37 = vld [vmem:[#allocation2 + $0xe0] sm:$0xff] }
  0x12   :  { %138 = vmatpush.msra.mxu2 %v1716_v22  ;;  %158 = vmatpush.msra.mxu3 %v1718_v23  ;;  %2635 = vst [vmem:[#allocation6_spill] sm:$0xff] %v1754_v35  ;;  %v1764_v38 = vld [vmem:[#allocation2 + $0xb0] sm:$0xff]  ;;  %v1766_v39 = vld [vmem:[#allocation2 + $0xb8] sm:$0xff]  ;;  %v1771_v40 = vld [vmem:[#allocation2 + $0xc8] sm:$0xff] }
  0x13   :  { %97 = vmatpush.msra.mxu0 %v1725_v25  ;;  %118 = vmatpush.msra.mxu1 %v1735_v28  ;;  %2636 = vst [vmem:[#allocation7_spill] sm:$0xff] %v1764_v38  ;;  %v1773_v41 = vld [vmem:[#allocation2 + $0xc0] sm:$0xff]  ;;  %v1776_v42 = vld [vmem:[#allocation2 + $0x90] sm:$0xff]  ;;  %v1778_v43 = vld [vmem:[#allocation2 + $0x98] sm:$0xff] }
  0x14   :  { %139 = vmatpush.msra.mxu2 %v1728_v26  ;;  %159 = vmatpush.msra.mxu3 %v1730_v27  ;;  %2637 = vst [vmem:[#allocation8_spill] sm:$0xff] %v1766_v39  ;;  %v1783_v44 = vld [vmem:[#allocation2 + $0xa8] sm:$0xff]  ;;  %v1785_v45 = vld [vmem:[#allocation2 + $0xa0] sm:$0xff]  ;;  %v1788_v46 = vld [vmem:[#allocation2 + $0x70] sm:$0xff] }
  0x15   :  { %98 = vmatpush.msra.mxu0 %v1737_v29  ;;  %119 = vmatpush.msra.mxu1 %v1747_v32  ;;  %2638 = vst [vmem:[#allocation9_spill] sm:$0xff] %v1771_v40  ;;  %v1790_v47 = vld [vmem:[#allocation2 + $0x78] sm:$0xff]  ;;  %v1795_v48 = vld [vmem:[#allocation2 + $0x88] sm:$0xff]  ;;  %v1797_v49 = vld [vmem:[#allocation2 + $0x80] sm:$0xff] }
  0x16   :  { %140 = vmatpush.msra.mxu2 %v1740_v30  ;;  %160 = vmatpush.msra.mxu3 %v1742_v31  ;;  %2639 = vst [vmem:[#allocation10_spill] sm:$0xff] %v1776_v42  ;;  %v1800_v50 = vld [vmem:[#allocation2 + $0x50] sm:$0xff]  ;;  %v1802_v51 = vld [vmem:[#allocation2 + $0x58] sm:$0xff]  ;;  %v1807_v52 = vld [vmem:[#allocation2 + $0x68] sm:$0xff] }
  0x17   :  { %99 = vmatpush.msra.mxu0 %v1749_v33  ;;  %120 = vmatpush.msra.mxu1 %v1759_v36  ;;  %2640 = vst [vmem:[#allocation11_spill] sm:$0xff] %v1778_v43  ;;  %v1809_v53 = vld [vmem:[#allocation2 + $0x60] sm:$0xff]  ;;  %v1812_v54 = vld [vmem:[#allocation2 + $0x30] sm:$0xff]  ;;  %v1814_v55 = vld [vmem:[#allocation2 + $0x38] sm:$0xff] }
  0x18   :  { %141 = vmatpush.msra.mxu2 %v1752_v34  ;;  %161 = vmatpush.msra.mxu3 %v1754_v35  ;;  %2641 = vst [vmem:[#allocation12_spill] sm:$0xff] %v1783_v44  ;;  %v1819_v56 = vld [vmem:[#allocation2 + $0x48] sm:$0xff]  ;;  %v1821_v57 = vld [vmem:[#allocation2 + $0x40] sm:$0xff]  ;;  %v1824_v58 = vld [vmem:[#allocation2 + $0x10] sm:$0xff] }
  0x19   :  { %100 = vmatpush.msra.mxu0 %v1761_v37  ;;  %2642 = vst [vmem:[#allocation13_spill] sm:$0xff] %v1785_v45  ;;  %121 = vmatpush.msra.mxu1 %v1771_v40  ;;  %v1826_v59 = vld [vmem:[#allocation2 + $0x18] sm:$0xff]  ;;  %v1833_v60 = vld [vmem:[#allocation2 + $0x28] sm:$0xff]  ;;  %v1835_v61 = vld [vmem:[#allocation2 + $0x20] sm:$0xff] }
  0x1a   :  { %142 = vmatpush.msra.mxu2 %v1764_v38  ;;  %162 = vmatpush.msra.mxu3 %v1766_v39  ;;  %2643 = vst [vmem:[#allocation14_spill] sm:$0xff] %v1788_v46  ;;  %v1839_v63 = vld [vmem:[#allocation2 + $0x8] sm:$0xff] }
  0x1b   :  { %2644 = vst [vmem:[#allocation15_spill] sm:$0xff] %v1790_v47  ;;  %101 = vmatpush.msra.mxu0 %v1773_v41  ;;  %122 = vmatpush.msra.mxu1 %v1783_v44 }
  0x1c   :  { %143 = vmatpush.msra.mxu2 %v1776_v42  ;;  %163 = vmatpush.msra.mxu3 %v1778_v43  ;;  %2645 = vst [vmem:[#allocation16_spill] sm:$0xff] %v1795_v48 }
  0x1d   :  { %2646 = vst [vmem:[#allocation17_spill] sm:$0xff] %v1797_v49  ;;  %102 = vmatpush.msra.mxu0 %v1785_v45  ;;  %123 = vmatpush.msra.mxu1 %v1795_v48 }
  0x1e   :  { %2647 = vst [vmem:[#allocation18_spill] sm:$0xff] %v1800_v50  ;;  %144 = vmatpush.msra.mxu2 %v1788_v46  ;;  %164 = vmatpush.msra.mxu3 %v1790_v47 }
  0x1f   :  { %2648 = vst [vmem:[#allocation19_spill] sm:$0xff] %v1802_v51  ;;  %103 = vmatpush.msra.mxu0 %v1797_v49  ;;  %124 = vmatpush.msra.mxu1 %v1807_v52 }
  0x20   :  { %2649 = vst [vmem:[#allocation20_spill] sm:$0xff] %v1807_v52  ;;  %145 = vmatpush.msra.mxu2 %v1800_v50  ;;  %165 = vmatpush.msra.mxu3 %v1802_v51 }
  0x21   :  { %2650 = vst [vmem:[#allocation21_spill] sm:$0xff] %v1809_v53  ;;  %104 = vmatpush.msra.mxu0 %v1809_v53  ;;  %125 = vmatpush.msra.mxu1 %v1819_v56 }
  0x22   :  { %2651 = vst [vmem:[#allocation22_spill] sm:$0xff] %v1812_v54  ;;  %146 = vmatpush.msra.mxu2 %v1812_v54  ;;  %166 = vmatpush.msra.mxu3 %v1814_v55  ;;  %v1841_v54 = vld [vmem:[#allocation2] sm:$0xff] }
  0x23   :  { %2652 = vst [vmem:[#allocation23_spill] sm:$0xff] %v1814_v55  ;;  %105 = vmatpush.msra.mxu0 %v1821_v57  ;;  %126 = vmatpush.msra.mxu1 %v1833_v60 }
  0x24   :  { %2653 = vst [vmem:[#allocation24_spill] sm:$0xff] %v1819_v56  ;;  %147 = vmatpush.msra.mxu2 %v1824_v58  ;;  %167 = vmatpush.msra.mxu3 %v1826_v59 }
  0x25   :  { %2654 = vst [vmem:[#allocation25_spill] sm:$0xff] %v1821_v57  ;;  %148 = vmatmul.f32.vlgmr.msra.gmra.mxu2 %v1636_v62  ;;  %168 = vmatmul.f32.vlgmr.msra.gmra.mxu3 %v1636_v62 }
  0x26   :  { %2655 = vst [vmem:[#allocation26_spill] sm:$0xff] %v1824_v58  ;;  %106 = vmatpush.msra.mxu0 %v1835_v61  ;;  %299 = vmatpush.msrb.mxu2 %v1655_v0 }
  0x27   :  { %2656 = vst [vmem:[#allocation27_spill] sm:$0xff] %v1826_v59  ;;  %319 = vmatpush.msrb.mxu3 %v1657_v1  ;;  %127 = vmatpush.msra.mxu1 %v1839_v63 }
  0x28   :  { %2657 = vst [vmem:[#allocation28_spill] sm:$0xff] %v1833_v60  ;;  %107 = vmatpush.msra.mxu0 %v1841_v54  ;;  %128 = vmatmul.f32.vlgmr.msra.gmra.mxu1 %v1636_v62 }
  0x29   :  { %2658 = vst [vmem:[#allocation29_spill] sm:$0xff] %v1835_v61  ;;  %108 = vmatmul.f32.vlgmr.msra.gmra.mxu0 %v1636_v62  ;;  %279 = vmatpush.msrb.mxu1 %v1669_v6  ;;  %v2661_v62 = vld [vmem:[#allocation22_spill] sm:$0xff] }
  0x2a   :  { %2659 = vst [vmem:[#allocation30_spill] sm:$0xff] %v1839_v63  ;;  %259 = vmatpush.msrb.mxu0 %v1673_v7  ;;  %300 = vmatpush.msrb.mxu2 %v1659_v2 }
  0x2b   :  { %2660 = vst [vmem:[#allocation31_spill] sm:$0xff] %v1841_v54  ;;  %320 = vmatpush.msrb.mxu3 %v1663_v3  ;;  %280 = vmatpush.msrb.mxu1 %v1675_v8 }
  0x2c   :  { %260 = vmatpush.msrb.mxu0 %v1683_v11  ;;  %301 = vmatpush.msrb.mxu2 %v1665_v4 }
  0x2d   :  { %321 = vmatpush.msrb.mxu3 %v1667_v5  ;;  %281 = vmatpush.msrb.mxu1 %v1687_v12 }
  0x2e   :  { %261 = vmatpush.msrb.mxu0 %v1689_v13  ;;  %302 = vmatpush.msrb.mxu2 %v1678_v9 }
  0x2f   :  { %322 = vmatpush.msrb.mxu3 %v1680_v10  ;;  %282 = vmatpush.msrb.mxu1 %v1699_v16 }
  0x30   :  { %262 = vmatpush.msrb.mxu0 %v1701_v17  ;;  %303 = vmatpush.msrb.mxu2 %v1692_v14 }
  0x31   :  { %323 = vmatpush.msrb.mxu3 %v1694_v15  ;;  %283 = vmatpush.msrb.mxu1 %v1711_v20 }
  0x32   :  { %263 = vmatpush.msrb.mxu0 %v1713_v21  ;;  %304 = vmatpush.msrb.mxu2 %v1704_v18 }
  0x33   :  { %324 = vmatpush.msrb.mxu3 %v1706_v19  ;;  %284 = vmatpush.msrb.mxu1 %v1723_v24 }
  0x34   :  { %264 = vmatpush.msrb.mxu0 %v1725_v25  ;;  %305 = vmatpush.msrb.mxu2 %v1716_v22 }
  0x35   :  { %325 = vmatpush.msrb.mxu3 %v1718_v23  ;;  %285 = vmatpush.msrb.mxu1 %v1735_v28 }
  0x36   :  { %265 = vmatpush.msrb.mxu0 %v1737_v29  ;;  %306 = vmatpush.msrb.mxu2 %v1728_v26 }
  0x37   :  { %326 = vmatpush.msrb.mxu3 %v1730_v27  ;;  %286 = vmatpush.msrb.mxu1 %v1747_v32 }
  0x38   :  { %266 = vmatpush.msrb.mxu0 %v1749_v33  ;;  %307 = vmatpush.msrb.mxu2 %v1740_v30 }
  0x39   :  { %327 = vmatpush.msrb.mxu3 %v1742_v31  ;;  %287 = vmatpush.msrb.mxu1 %v1759_v36 }
  0x3a   :  { %267 = vmatpush.msrb.mxu0 %v1761_v37  ;;  %308 = vmatpush.msrb.mxu2 %v1752_v34 }
  0x3b   :  { %328 = vmatpush.msrb.mxu3 %v1754_v35  ;;  %288 = vmatpush.msrb.mxu1 %v1771_v40 }
  0x3c   :  { %268 = vmatpush.msrb.mxu0 %v1773_v41  ;;  %309 = vmatpush.msrb.mxu2 %v1764_v38 }
  0x3d   :  { %329 = vmatpush.msrb.mxu3 %v1766_v39  ;;  %289 = vmatpush.msrb.mxu1 %v1783_v44 }
  0x3e   :  { %269 = vmatpush.msrb.mxu0 %v1785_v45  ;;  %310 = vmatpush.msrb.mxu2 %v1776_v42 }
  0x3f   :  { %330 = vmatpush.msrb.mxu3 %v1778_v43  ;;  %290 = vmatpush.msrb.mxu1 %v1795_v48 }
  0x40   :  { %270 = vmatpush.msrb.mxu0 %v1797_v49  ;;  %311 = vmatpush.msrb.mxu2 %v1788_v46 }
  0x41   :  { %331 = vmatpush.msrb.mxu3 %v1790_v47  ;;  %291 = vmatpush.msrb.mxu1 %v1807_v52 }
  0x42   :  { %271 = vmatpush.msrb.mxu0 %v1809_v53  ;;  %312 = vmatpush.msrb.mxu2 %v1800_v50 }
  0x43   :  { %332 = vmatpush.msrb.mxu3 %v1802_v51  ;;  %292 = vmatpush.msrb.mxu1 %v1819_v56 }
  0x44   :  { %272 = vmatpush.msrb.mxu0 %v1821_v57  ;;  %313 = vmatpush.msrb.mxu2 %v2661_v62 }
  0x45   :  { %333 = vmatpush.msrb.mxu3 %v1814_v55  ;;  %293 = vmatpush.msrb.mxu1 %v1833_v60 }
  0x46   :  { %273 = vmatpush.msrb.mxu0 %v1835_v61  ;;  %314 = vmatpush.msrb.mxu2 %v1824_v58 }
  0x47   :  { %334 = vmatpush.msrb.mxu3 %v1826_v59  ;;  %294 = vmatpush.msrb.mxu1 %v1839_v63 }
  0x48   :  { %274 = vmatpush.msrb.mxu0 %v1841_v54  ;;  %463 = vmatpush.msra.mxu2 %v1655_v0 }
  0x49   :  { %443 = vmatpush.msra.mxu1 %v1669_v6  ;;  %483 = vmatpush.msra.mxu3 %v1657_v1 }
  0x4a   :  { %423 = vmatpush.msra.mxu0 %v1673_v7  ;;  %464 = vmatpush.msra.mxu2 %v1659_v2 }
  0x4b   :  { %444 = vmatpush.msra.mxu1 %v1675_v8  ;;  %484 = vmatpush.msra.mxu3 %v1663_v3 }
  0x4c   :  { %424 = vmatpush.msra.mxu0 %v1683_v11  ;;  %465 = vmatpush.msra.mxu2 %v1665_v4 }
  0x4d   :  { %445 = vmatpush.msra.mxu1 %v1687_v12  ;;  %485 = vmatpush.msra.mxu3 %v1667_v5 }
  0x4e   :  { %425 = vmatpush.msra.mxu0 %v1689_v13  ;;  %466 = vmatpush.msra.mxu2 %v1678_v9 }
  0x4f   :  { %446 = vmatpush.msra.mxu1 %v1699_v16  ;;  %486 = vmatpush.msra.mxu3 %v1680_v10 }
  0x50   :  { %426 = vmatpush.msra.mxu0 %v1701_v17  ;;  %467 = vmatpush.msra.mxu2 %v1692_v14 }
  0x51   :  { %447 = vmatpush.msra.mxu1 %v1711_v20  ;;  %487 = vmatpush.msra.mxu3 %v1694_v15 }
  0x52   :  { %427 = vmatpush.msra.mxu0 %v1713_v21  ;;  %468 = vmatpush.msra.mxu2 %v1704_v18 }
  0x53   :  { %448 = vmatpush.msra.mxu1 %v1723_v24  ;;  %488 = vmatpush.msra.mxu3 %v1706_v19 }
  0x54   :  { %428 = vmatpush.msra.mxu0 %v1725_v25  ;;  %469 = vmatpush.msra.mxu2 %v1716_v22 }
  0x55   :  { %449 = vmatpush.msra.mxu1 %v1735_v28  ;;  %489 = vmatpush.msra.mxu3 %v1718_v23 }
  0x56   :  { %429 = vmatpush.msra.mxu0 %v1737_v29  ;;  %470 = vmatpush.msra.mxu2 %v1728_v26 }
  0x57   :  { %450 = vmatpush.msra.mxu1 %v1747_v32  ;;  %490 = vmatpush.msra.mxu3 %v1730_v27 }
  0x58   :  { %430 = vmatpush.msra.mxu0 %v1749_v33  ;;  %471 = vmatpush.msra.mxu2 %v1740_v30 }
  0x59   :  { %451 = vmatpush.msra.mxu1 %v1759_v36  ;;  %491 = vmatpush.msra.mxu3 %v1742_v31 }
  0x5a   :  { %431 = vmatpush.msra.mxu0 %v1761_v37  ;;  %472 = vmatpush.msra.mxu2 %v1752_v34 }
  0x5b   :  { %452 = vmatpush.msra.mxu1 %v1771_v40  ;;  %492 = vmatpush.msra.mxu3 %v1754_v35 }
  0x5c   :  { %432 = vmatpush.msra.mxu0 %v1773_v41  ;;  %473 = vmatpush.msra.mxu2 %v1764_v38 }
  0x5d   :  { %453 = vmatpush.msra.mxu1 %v1783_v44  ;;  %493 = vmatpush.msra.mxu3 %v1766_v39 }
  0x5e   :  { %433 = vmatpush.msra.mxu0 %v1785_v45  ;;  %474 = vmatpush.msra.mxu2 %v1776_v42 }
  0x5f   :  { %454 = vmatpush.msra.mxu1 %v1795_v48  ;;  %494 = vmatpush.msra.mxu3 %v1778_v43 }
  0x60   :  { %434 = vmatpush.msra.mxu0 %v1797_v49  ;;  %475 = vmatpush.msra.mxu2 %v1788_v46 }
  0x61   :  { %455 = vmatpush.msra.mxu1 %v1807_v52  ;;  %495 = vmatpush.msra.mxu3 %v1790_v47 }
  0x62   :  { %435 = vmatpush.msra.mxu0 %v1809_v53  ;;  %476 = vmatpush.msra.mxu2 %v1800_v50 }
  0x63   :  { %456 = vmatpush.msra.mxu1 %v1819_v56  ;;  %496 = vmatpush.msra.mxu3 %v1802_v51 }
  0x64   :  { %436 = vmatpush.msra.mxu0 %v1821_v57  ;;  %477 = vmatpush.msra.mxu2 %v2661_v62 }
  0x65   :  { %457 = vmatpush.msra.mxu1 %v1833_v60  ;;  %497 = vmatpush.msra.mxu3 %v1814_v55 }
  0x66   :  { %437 = vmatpush.msra.mxu0 %v1835_v61  ;;  %478 = vmatpush.msra.mxu2 %v1824_v58 }
  0x67   :  { %458 = vmatpush.msra.mxu1 %v1839_v63  ;;  %498 = vmatpush.msra.mxu3 %v1826_v59  ;;  %v91_v63 = vld [vmem:[%s2523_s0] sm:$0xff] }
  0x68   :  { %438 = vmatpush.msra.mxu0 %v1841_v54 }
  0xa5   :  { %v129_v56 = vpop.f32.mrf.mxu1 }
  0xa6   :  { %v109_v50 = vpop.f32.mrf.mxu0  ;;  %v176_v51 = vrot.slane %v129_v56, 6 }
  0xa8   :  { %v149_v57 = vpop.f32.mrf.mxu2  ;;  %v169_v61 = vpop.f32.mrf.mxu3  ;;  %v180_v62 = vsel %vm179_vm0, %v109_v50, %v176_v51 }
  0xa9   :  { %v177_v60 = vrot.slane %v149_v57, 4  ;;  %v178_v47 = vrot.slane %v169_v61, 2 }
  0xab   :  { %v182_v58 = vsel %vm181_vm1, %v177_v60, %v178_v47 }
  0xac   :  { %v184_v59 = vsel %vm183_vm2, %v180_v62, %v182_v58 }
  0xad   :  { %v186_v54 = vadd.f32 %v184_v59, %v91_v63 }
  0xaf   :  { %v187_v55 = vsub.f32 0.0, %v186_v54  ;;  %v207_v46 = vrot.slane %v186_v54, 2  ;;  %v231_v56 = vrot.slane %v186_v54, 6 }
  0xb1   :  { %v188_v52 = vmul.f32 1.442695, %v187_v55  ;;  %v209_v53 = vsub.f32 0.0, %v207_v46  ;;  %v233_v43 = vsub.f32 0.0, %v231_v56  ;;  %v228_v46 = vrot.slane %v186_v54, 4 }
  0xb3   :  { %1415 = vpow2.f32 %v188_v52  ;;  %v210_v57 = vmul.f32 1.442695, %v209_v53  ;;  %v234_v61 = vmul.f32 1.442695, %v233_v43 }
  0xb5   :  { %1417 = vpow2.f32 %v210_v57 }
  0xb6   :  { %1419 = vpow2.f32 %v234_v61 }
  0xb9   :  { %v1416_v50 = vpop.eup %1415 }
  0xba   :  { %v190_v51 = vadd.f32 1.0, %v1416_v50 }
  0xbb   :  { %v1418_v42 = vpop.eup %1417 }
  0xbc   :  { %v1420_v48 = vpop.eup %1419  ;;  %1421 = vrcp.f32 %v190_v51  ;;  %v212_v47 = vadd.f32 1.0, %v1418_v42  ;;  %v202_v43 = vand.u32 2147483648, %v190_v51  ;;  %v200_v57 = vand.u32 2147483647, %v190_v51 }
  0xbd   :  { %v236_v60 = vadd.f32 1.0, %v1420_v48  ;;  %vm196_vm4 = vweird.f32 %v190_v51 }
  0xbe   :  { %1423 = vrcp.f32 %v212_v47  ;;  %v224_v42 = vand.u32 2147483648, %v212_v47  ;;  %v222_v49 = vand.u32 2147483647, %v212_v47  ;;  %v203_v38 = vor.u32 1.1754944e-38, %v202_v43 }
  0xbf   :  { %1425 = vrcp.f32 %v236_v60  ;;  %vm201_vm7 = vcmp.eq.f32.partialorder %v200_v57, 8.507059e+37  ;;  %vm218_vm8 = vweird.f32 %v212_v47  ;;  %vm242_vm12 = vweird.f32 %v236_v60  ;;  %v2668_v57 = vld [vmem:[#allocation17_spill] sm:$0xff] }
  0xc0   :  { %1427 = vtanh.f32 %v228_v46  ;;  %v225_v44 = vor.u32 1.1754944e-38, %v224_v42  ;;  %vm223_vm10 = vcmp.eq.f32.partialorder %v222_v49, 8.507059e+37  ;;  %v246_v43 = vand.u32 2147483647, %v236_v60  ;;  %v2670_v42 = vld [vmem:[#allocation10_spill] sm:$0xff] }
  0xc2   :  { %v1422_v58 = vpop.eup %1421  ;;  %vm247_vm14 = vcmp.eq.f32.partialorder %v246_v43, 8.507059e+37  ;;  %v2681_v43 = vld [vmem:[#allocation28_spill] sm:$0xff] }
  0xc3   :  { %v192_v59 = vmul.f32 %v1422_v58, %v190_v51  ;;  %vm197_vm3 = vweird.f32 %v1422_v58 }
  0xc4   :  { %v1424_v63 = vpop.eup %1423  ;;  %vm198_vm5 = vmor %vm196_vm4, %vm197_vm3 }
  0xc5   :  { %v193_v55 = vsub.f32 1.0, %v192_v59  ;;  %v1426_v62 = vpop.eup %1425  ;;  %v214_v52 = vmul.f32 %v1424_v63, %v212_v47  ;;  %vm219_vm6 = vweird.f32 %v1424_v63 }
  0xc6   :  { %v238_v56 = vmul.f32 %v1426_v62, %v236_v60  ;;  %vm220_vm9 = vmor %vm218_vm8, %vm219_vm6  ;;  %vm243_vm11 = vweird.f32 %v1426_v62 }
  0xc7   :  { %v194_v53 = vmul.f32 %v1422_v58, %v193_v55  ;;  %v215_v61 = vsub.f32 1.0, %v214_v52  ;;  %v1428_v52 = vpop.eup %1427  ;;  %vm244_vm13 = vmor %vm242_vm12, %vm243_vm11 }
  0xc8   :  { %v239_v59 = vsub.f32 1.0, %v238_v56  ;;  %v2667_v56 = vld [vmem:[#allocation8_spill] sm:$0xff] }
  0xc9   :  { %v195_v50 = vadd.f32 %v1422_v58, %v194_v53  ;;  %v216_v48 = vmul.f32 %v1424_v63, %v215_v61 }
  0xca   :  { %v240_v51 = vmul.f32 %v1426_v62, %v239_v59  ;;  %v2672_v59 = vld [vmem:[#allocation21_spill] sm:$0xff] }
  0xcb   :  { %v199_v39 = vsel %vm198_vm5, %v1422_v58, %v195_v50  ;;  %v217_v54 = vadd.f32 %v1424_v63, %v216_v48  ;;  %v248_v58 = vand.u32 2147483648, %v236_v60  ;;  %v2665_v60 = vld [vmem:[#allocation12_spill] sm:$0xff]  ;;  %v2671_v48 = vld [vmem:[#allocation11_spill] sm:$0xff] }
  0xcc   :  { %v204_v55 = vsel %vm201_vm7, %v203_v38, %v199_v39  ;;  %v241_v61 = vadd.f32 %v1426_v62, %v240_v51  ;;  %v2669_v50 = vld [vmem:[#allocation16_spill] sm:$0xff] }
  0xcd   :  { %v221_v45 = vsel %vm220_vm9, %v1424_v63, %v217_v54  ;;  %v253_v46 = vmul.f32 %v1428_v52, %v204_v55  ;;  %v249_v39 = vor.u32 1.1754944e-38, %v248_v58  ;;  %v2673_v54 = vld [vmem:[#allocation20_spill] sm:$0xff]  ;;  %v2674_v55 = vld [vmem:[#allocation14_spill] sm:$0xff]  ;;  %v2675_v52 = vld [vmem:[#allocation15_spill] sm:$0xff] }
  0xce   :  { %v226_v53 = vsel %vm223_vm10, %v225_v44, %v221_v45  ;;  %v245_v38 = vsel %vm244_vm13, %v1426_v62, %v241_v61  ;;  %v2663_v44 = vld [vmem:[#allocation6_spill] sm:$0xff]  ;;  %v2664_v45 = vld [vmem:[#allocation13_spill] sm:$0xff]  ;;  %v2666_v62 = vld [vmem:[#allocation7_spill] sm:$0xff] }
  0xcf   :  { %v252_v35 = vmul.f32 0.0, %v226_v53  ;;  %v250_v49 = vsel %vm247_vm14, %v249_v39, %v245_v38  ;;  %v2676_v53 = vld [vmem:[#allocation25_spill] sm:$0xff]  ;;  %v2677_v51 = vld [vmem:[#allocation24_spill] sm:$0xff]  ;;  %v2679_v61 = vld [vmem:[#allocation19_spill] sm:$0xff] }
  0xd0   :  { %v2680_v58 = vld [vmem:[#allocation29_spill] sm:$0xff]  ;;  %v2682_v38 = vld [vmem:[#allocation22_spill] sm:$0xff]  ;;  %v2683_v39 = vld [vmem:[#allocation23_spill] sm:$0xff] }
  0xd1   :  { %v1981_v34 = vadd.f32 %v253_v46, %v252_v35  ;;  %v2662_v35 = vld [vmem:[#allocation5_spill] sm:$0xff]  ;;  %v2678_v46 = vld [vmem:[#allocation18_spill] sm:$0xff] }
  0xd3   :  { %1429 = vtanh.f32 %v1981_v34 }
  0xd9   :  { %v1430_v47 = vpop.eup %1429 }
  0xda   :  { %v256_v63 = vmul.f32 %v1430_v47, %v250_v49  ;;  %v2684_v47 = vld [vmem:[#allocation31_spill] sm:$0xff]  ;;  %v2685_v49 = vld [vmem:[#allocation30_spill] sm:$0xff] }
  0xdc   :  { %257 = vst [vmem:[%s2525_s2] sm:$0x3] %v256_v63  ;;  %275 = vmatmul.f32.vlgmr.msrb.gmra.mxu0 %v256_v63  ;;  %295 = vmatmul.f32.vlgmr.msrb.gmra.mxu1 %v256_v63 }
  0xdd   :  { %315 = vmatmul.f32.vlgmr.msrb.gmra.mxu2 %v256_v63  ;;  %335 = vmatmul.f32.vlgmr.msrb.gmra.mxu3 %v256_v63  ;;  %v2686_v63 = vld [vmem:[#allocation26_spill] sm:$0xff] }
  0xde   :  { %587 = vmatpush.msrb.mxu0 %v1673_v7  ;;  %607 = vmatpush.msrb.mxu1 %v1669_v6 }
  0xdf   :  { %627 = vmatpush.msrb.mxu2 %v1655_v0  ;;  %647 = vmatpush.msrb.mxu3 %v1657_v1 }
  0xe0   :  { %588 = vmatpush.msrb.mxu0 %v1683_v11  ;;  %608 = vmatpush.msrb.mxu1 %v1675_v8 }
  0xe1   :  { %628 = vmatpush.msrb.mxu2 %v1659_v2  ;;  %648 = vmatpush.msrb.mxu3 %v1663_v3 }
  0xe2   :  { %589 = vmatpush.msrb.mxu0 %v1689_v13  ;;  %609 = vmatpush.msrb.mxu1 %v1687_v12 }
  0xe3   :  { %629 = vmatpush.msrb.mxu2 %v1665_v4  ;;  %649 = vmatpush.msrb.mxu3 %v1667_v5 }
  0xe4   :  { %590 = vmatpush.msrb.mxu0 %v1701_v17  ;;  %610 = vmatpush.msrb.mxu1 %v1699_v16 }
  0xe5   :  { %630 = vmatpush.msrb.mxu2 %v1678_v9  ;;  %650 = vmatpush.msrb.mxu3 %v1680_v10 }
  0xe6   :  { %591 = vmatpush.msrb.mxu0 %v1713_v21  ;;  %611 = vmatpush.msrb.mxu1 %v1711_v20 }
  0xe7   :  { %631 = vmatpush.msrb.mxu2 %v1692_v14  ;;  %651 = vmatpush.msrb.mxu3 %v1694_v15 }
  0xe8   :  { %592 = vmatpush.msrb.mxu0 %v1725_v25  ;;  %612 = vmatpush.msrb.mxu1 %v1723_v24 }
  0xe9   :  { %632 = vmatpush.msrb.mxu2 %v1704_v18  ;;  %652 = vmatpush.msrb.mxu3 %v1706_v19 }
  0xea   :  { %593 = vmatpush.msrb.mxu0 %v1737_v29  ;;  %613 = vmatpush.msrb.mxu1 %v1735_v28 }
  0xeb   :  { %633 = vmatpush.msrb.mxu2 %v1716_v22  ;;  %653 = vmatpush.msrb.mxu3 %v1718_v23 }
  0xec   :  { %594 = vmatpush.msrb.mxu0 %v1749_v33  ;;  %614 = vmatpush.msrb.mxu1 %v1747_v32 }
  0xed   :  { %634 = vmatpush.msrb.mxu2 %v1728_v26  ;;  %654 = vmatpush.msrb.mxu3 %v1730_v27 }
  0xee   :  { %595 = vmatpush.msrb.mxu0 %v1761_v37  ;;  %615 = vmatpush.msrb.mxu1 %v1759_v36 }
  0xef   :  { %635 = vmatpush.msrb.mxu2 %v1740_v30  ;;  %655 = vmatpush.msrb.mxu3 %v1742_v31 }
  0xf0   :  { %596 = vmatpush.msrb.mxu0 %v1773_v41  ;;  %616 = vmatpush.msrb.mxu1 %v1771_v40 }
  0xf1   :  { %636 = vmatpush.msrb.mxu2 %v2662_v35  ;;  %656 = vmatpush.msrb.mxu3 %v2663_v44 }
  0xf2   :  { %597 = vmatpush.msrb.mxu0 %v2664_v45  ;;  %617 = vmatpush.msrb.mxu1 %v2665_v60 }
  0xf3   :  { %637 = vmatpush.msrb.mxu2 %v2666_v62  ;;  %657 = vmatpush.msrb.mxu3 %v2667_v56 }
  0xf4   :  { %598 = vmatpush.msrb.mxu0 %v2668_v57  ;;  %618 = vmatpush.msrb.mxu1 %v2669_v50 }
  0xf5   :  { %638 = vmatpush.msrb.mxu2 %v2670_v42  ;;  %658 = vmatpush.msrb.mxu3 %v2671_v48 }
  0xf6   :  { %599 = vmatpush.msrb.mxu0 %v2672_v59  ;;  %619 = vmatpush.msrb.mxu1 %v2673_v54 }
  0xf7   :  { %639 = vmatpush.msrb.mxu2 %v2674_v55  ;;  %659 = vmatpush.msrb.mxu3 %v2675_v52 }
  0xf8   :  { %600 = vmatpush.msrb.mxu0 %v2676_v53  ;;  %620 = vmatpush.msrb.mxu1 %v2677_v51  ;;  %v2687_v53 = vld [vmem:[#allocation27_spill] sm:$0xff] }
  0xf9   :  { %640 = vmatpush.msrb.mxu2 %v2678_v46  ;;  %660 = vmatpush.msrb.mxu3 %v2679_v61 }
  0xfa   :  { %601 = vmatpush.msrb.mxu0 %v2680_v58  ;;  %621 = vmatpush.msrb.mxu1 %v2681_v43 }
  0xfb   :  { %641 = vmatpush.msrb.mxu2 %v2682_v38  ;;  %661 = vmatpush.msrb.mxu3 %v2683_v39  ;;  %v258_v38 = vld [vmem:[%s2523_s0 + $0x8] sm:$0xff] }
  0xfc   :  { %602 = vmatpush.msrb.mxu0 %v2684_v47  ;;  %622 = vmatpush.msrb.mxu1 %v2685_v49 }
  0xfd   :  { %642 = vmatpush.msrb.mxu2 %v2686_v63  ;;  %662 = vmatpush.msrb.mxu3 %v2687_v53 }
 0x159   :  { %v296_v51 = vpop.f32.mrf.mxu1  ;;  %v276_v54 = vpop.f32.mrf.mxu0 }
 0x15a   :  { %v343_v46 = vrot.slane %v296_v51, 6 }
 0x15c   :  { %v346_v39 = vsel %vm179_vm0, %v276_v54, %v343_v46 }
 0x160   :  { %v316_v52 = vpop.f32.mrf.mxu2  ;;  %v336_v61 = vpop.f32.mrf.mxu3 }
 0x161   :  { %v344_v55 = vrot.slane %v316_v52, 4  ;;  %v345_v58 = vrot.slane %v336_v61, 2 }
 0x163   :  { %v347_v47 = vsel %vm181_vm1, %v344_v55, %v345_v58 }
 0x164   :  { %v348_v49 = vsel %vm183_vm2, %v346_v39, %v347_v47 }
 0x165   :  { %v350_v63 = vadd.f32 %v348_v49, %v258_v38 }
 0x167   :  { %v351_v43 = vsub.f32 0.0, %v350_v63  ;;  %v371_v53 = vrot.slane %v350_v63, 2  ;;  %v395_v59 = vrot.slane %v350_v63, 6 }
 0x169   :  { %v352_v51 = vmul.f32 1.442695, %v351_v43  ;;  %v373_v48 = vsub.f32 0.0, %v371_v53  ;;  %v397_v42 = vsub.f32 0.0, %v395_v59  ;;  %v392_v43 = vrot.slane %v350_v63, 4 }
 0x16b   :  { %1431 = vpow2.f32 %v352_v51  ;;  %v374_v52 = vmul.f32 1.442695, %v373_v48  ;;  %v398_v61 = vmul.f32 1.442695, %v397_v42 }
 0x16d   :  { %1433 = vpow2.f32 %v374_v52 }
 0x16e   :  { %1435 = vpow2.f32 %v398_v61 }
 0x171   :  { %v1432_v50 = vpop.eup %1431 }
 0x172   :  { %v354_v57 = vadd.f32 1.0, %v1432_v50 }
 0x173   :  { %v1434_v56 = vpop.eup %1433 }
 0x174   :  { %v1436_v54 = vpop.eup %1435  ;;  %1437 = vrcp.f32 %v354_v57  ;;  %v376_v55 = vadd.f32 1.0, %v1434_v56  ;;  %v366_v48 = vand.u32 2147483648, %v354_v57  ;;  %v364_v50 = vand.u32 2147483647, %v354_v57 }
 0x175   :  { %v400_v46 = vadd.f32 1.0, %v1436_v54  ;;  %vm360_vm3 = vweird.f32 %v354_v57 }
 0x176   :  { %1439 = vrcp.f32 %v376_v55  ;;  %v388_v52 = vand.u32 2147483648, %v376_v55  ;;  %v386_v54 = vand.u32 2147483647, %v376_v55  ;;  %v367_v62 = vor.u32 1.1754944e-38, %v366_v48 }
 0x177   :  { %1441 = vrcp.f32 %v400_v46  ;;  %vm365_vm6 = vcmp.eq.f32.partialorder %v364_v50, 8.507059e+37  ;;  %vm382_vm7 = vweird.f32 %v376_v55  ;;  %v412_v48 = vand.u32 2147483648, %v400_v46 }
 0x178   :  { %1443 = vtanh.f32 %v392_v43  ;;  %vm387_vm9 = vcmp.eq.f32.partialorder %v386_v54, 8.507059e+37  ;;  %vm406_vm11 = vweird.f32 %v400_v46 }
 0x17a   :  { %v1438_v58 = vpop.eup %1437 }
 0x17b   :  { %v356_v38 = vmul.f32 %v1438_v58, %v354_v57  ;;  %vm361_vm15 = vweird.f32 %v1438_v58 }
 0x17c   :  { %v1440_v39 = vpop.eup %1439  ;;  %vm362_vm5 = vmor %vm360_vm3, %vm361_vm15 }
 0x17d   :  { %v1442_v53 = vpop.eup %1441  ;;  %v357_v59 = vsub.f32 1.0, %v356_v38  ;;  %v378_v47 = vmul.f32 %v1440_v39, %v376_v55  ;;  %vm383_vm4 = vweird.f32 %v1440_v39  ;;  %v410_v55 = vand.u32 2147483647, %v400_v46 }
 0x17e   :  { %v402_v42 = vmul.f32 %v1442_v53, %v400_v46  ;;  %vm384_vm8 = vmor %vm382_vm7, %vm383_vm4  ;;  %v1444_v44 = vpop.eup %1443  ;;  %vm407_vm10 = vweird.f32 %v1442_v53 }
 0x17f   :  { %v379_v49 = vsub.f32 1.0, %v378_v47  ;;  %v358_v51 = vmul.f32 %v1438_v58, %v357_v59  ;;  %v389_v47 = vor.u32 1.1754944e-38, %v388_v52  ;;  %vm408_vm12 = vmor %vm406_vm11, %vm407_vm10  ;;  %vm411_vm13 = vcmp.eq.f32.partialorder %v410_v55, 8.507059e+37 }
 0x180   :  { %v403_v60 = vsub.f32 1.0, %v402_v42 }
 0x181   :  { %v359_v56 = vadd.f32 %v1438_v58, %v358_v51  ;;  %v380_v61 = vmul.f32 %v1440_v39, %v379_v49 }
 0x182   :  { %v404_v57 = vmul.f32 %v1442_v53, %v403_v60 }
 0x183   :  { %v363_v63 = vsel %vm362_vm5, %v1438_v58, %v359_v56  ;;  %v381_v38 = vadd.f32 %v1440_v39, %v380_v61  ;;  %v413_v58 = vor.u32 1.1754944e-38, %v412_v48 }
 0x184   :  { %v368_v45 = vsel %vm365_vm6, %v367_v62, %v363_v63  ;;  %v405_v40 = vadd.f32 %v1442_v53, %v404_v57 }
 0x185   :  { %v385_v59 = vsel %vm384_vm8, %v1440_v39, %v381_v38  ;;  %v417_v49 = vmul.f32 %v1444_v44, %v368_v45 }
 0x186   :  { %v390_v43 = vsel %vm387_vm9, %v389_v47, %v385_v59  ;;  %v409_v62 = vsel %vm408_vm12, %v1442_v53, %v405_v40 }
 0x187   :  { %v416_v51 = vmul.f32 %v390_v43, %v1981_v34  ;;  %v414_v42 = vsel %vm411_vm13, %v413_v58, %v409_v62  ;;  %v422_v34 = vld [vmem:[%s2523_s0 + $0x10] sm:$0xff] }
 0x189   :  { %v2058_v35 = vadd.f32 %v417_v49, %v416_v51 }
 0x18b   :  { %1445 = vtanh.f32 %v2058_v35 }
 0x191   :  { %v1446_v39 = vpop.eup %1445 }
 0x192   :  { %v420_v50 = vmul.f32 %v1446_v39, %v414_v42 }
 0x194   :  { %421 = vst [vmem:[%s2525_s2 + $0x2] sm:$0x3] %v420_v50  ;;  %439 = vmatmul.f32.vlgmr.msra.gmra.mxu0 %v420_v50  ;;  %459 = vmatmul.f32.vlgmr.msra.gmra.mxu1 %v420_v50 }
 0x195   :  { %479 = vmatmul.f32.vlgmr.msra.gmra.mxu2 %v420_v50  ;;  %499 = vmatmul.f32.vlgmr.msra.gmra.mxu3 %v420_v50 }
 0x196   :  { %751 = vmatpush.msra.mxu0 %v1673_v7  ;;  %771 = vmatpush.msra.mxu1 %v1669_v6  ;;  %v2694_v6 = vld [vmem:[#allocation8_spill] sm:$0xff]  ;;  %v2695_v7 = vld [vmem:[#allocation17_spill] sm:$0xff] }
 0x197   :  { %791 = vmatpush.msra.mxu2 %v1655_v0  ;;  %811 = vmatpush.msra.mxu3 %v1657_v1  ;;  %v2688_v0 = vld [vmem:[#allocation9_spill] sm:$0xff] }
 0x198   :  { %752 = vmatpush.msra.mxu0 %v1683_v11  ;;  %772 = vmatpush.msra.mxu1 %v1675_v8  ;;  %v2689_v1 = vld [vmem:[#allocation5_spill] sm:$0xff]  ;;  %v2696_v8 = vld [vmem:[#allocation16_spill] sm:$0xff] }
 0x199   :  { %792 = vmatpush.msra.mxu2 %v1659_v2  ;;  %812 = vmatpush.msra.mxu3 %v1663_v3  ;;  %v2690_v2 = vld [vmem:[#allocation6_spill] sm:$0xff]  ;;  %v2691_v3 = vld [vmem:[#allocation13_spill] sm:$0xff] }
 0x19a   :  { %753 = vmatpush.msra.mxu0 %v1689_v13  ;;  %773 = vmatpush.msra.mxu1 %v1687_v12  ;;  %v2699_v11 = vld [vmem:[#allocation21_spill] sm:$0xff]  ;;  %v2700_v12 = vld [vmem:[#allocation20_spill] sm:$0xff]  ;;  %v2701_v13 = vld [vmem:[#allocation14_spill] sm:$0xff] }
 0x19b   :  { %793 = vmatpush.msra.mxu2 %v1665_v4  ;;  %813 = vmatpush.msra.mxu3 %v1667_v5  ;;  %v2692_v4 = vld [vmem:[#allocation12_spill] sm:$0xff]  ;;  %v2693_v5 = vld [vmem:[#allocation7_spill] sm:$0xff] }
 0x19c   :  { %754 = vmatpush.msra.mxu0 %v1701_v17  ;;  %774 = vmatpush.msra.mxu1 %v1699_v16  ;;  %v2704_v16 = vld [vmem:[#allocation24_spill] sm:$0xff]  ;;  %v2705_v17 = vld [vmem:[#allocation18_spill] sm:$0xff] }
 0x19d   :  { %794 = vmatpush.msra.mxu2 %v1678_v9  ;;  %814 = vmatpush.msra.mxu3 %v1680_v10  ;;  %v2697_v9 = vld [vmem:[#allocation10_spill] sm:$0xff]  ;;  %v2698_v10 = vld [vmem:[#allocation11_spill] sm:$0xff] }
 0x19e   :  { %755 = vmatpush.msra.mxu0 %v1713_v21  ;;  %775 = vmatpush.msra.mxu1 %v1711_v20  ;;  %v2708_v20 = vld [vmem:[#allocation28_spill] sm:$0xff]  ;;  %v2709_v21 = vld [vmem:[#allocation22_spill] sm:$0xff] }
 0x19f   :  { %795 = vmatpush.msra.mxu2 %v1692_v14  ;;  %815 = vmatpush.msra.mxu3 %v1694_v15  ;;  %v2702_v14 = vld [vmem:[#allocation15_spill] sm:$0xff]  ;;  %v2703_v15 = vld [vmem:[#allocation25_spill] sm:$0xff] }
 0x1a0   :  { %756 = vmatpush.msra.mxu0 %v1725_v25  ;;  %776 = vmatpush.msra.mxu1 %v1723_v24  ;;  %v2712_v24 = vld [vmem:[#allocation30_spill] sm:$0xff] }
 0x1a1   :  { %796 = vmatpush.msra.mxu2 %v1704_v18  ;;  %816 = vmatpush.msra.mxu3 %v1706_v19  ;;  %v2706_v18 = vld [vmem:[#allocation19_spill] sm:$0xff]  ;;  %v2707_v19 = vld [vmem:[#allocation29_spill] sm:$0xff]  ;;  %v2713_v25 = vld [vmem:[#allocation26_spill] sm:$0xff] }
 0x1a2   :  { %757 = vmatpush.msra.mxu0 %v1737_v29  ;;  %777 = vmatpush.msra.mxu1 %v1735_v28 }
 0x1a3   :  { %797 = vmatpush.msra.mxu2 %v1716_v22  ;;  %817 = vmatpush.msra.mxu3 %v1718_v23  ;;  %v2710_v22 = vld [vmem:[#allocation23_spill] sm:$0xff] }
 0x1a4   :  { %758 = vmatpush.msra.mxu0 %v1749_v33  ;;  %778 = vmatpush.msra.mxu1 %v1747_v32  ;;  %v2711_v23 = vld [vmem:[#allocation31_spill] sm:$0xff] }
 0x1a5   :  { %798 = vmatpush.msra.mxu2 %v1728_v26  ;;  %818 = vmatpush.msra.mxu3 %v1730_v27  ;;  %v2714_v26 = vld [vmem:[#allocation27_spill] sm:$0xff] }
 0x1a6   :  { %759 = vmatpush.msra.mxu0 %v1761_v37  ;;  %779 = vmatpush.msra.mxu1 %v1759_v36 }
 0x1a7   :  { %799 = vmatpush.msra.mxu2 %v1740_v30  ;;  %819 = vmatpush.msra.mxu3 %v1742_v31 }
 0x1a8   :  { %760 = vmatpush.msra.mxu0 %v1773_v41  ;;  %780 = vmatpush.msra.mxu1 %v2688_v0 }
 0x1a9   :  { %800 = vmatpush.msra.mxu2 %v2689_v1  ;;  %820 = vmatpush.msra.mxu3 %v2690_v2 }
 0x1aa   :  { %761 = vmatpush.msra.mxu0 %v2691_v3  ;;  %781 = vmatpush.msra.mxu1 %v2692_v4 }
 0x1ab   :  { %801 = vmatpush.msra.mxu2 %v2693_v5  ;;  %821 = vmatpush.msra.mxu3 %v2694_v6 }
 0x1ac   :  { %762 = vmatpush.msra.mxu0 %v2695_v7  ;;  %782 = vmatpush.msra.mxu1 %v2696_v8 }
 0x1ad   :  { %802 = vmatpush.msra.mxu2 %v2697_v9  ;;  %822 = vmatpush.msra.mxu3 %v2698_v10 }
 0x1ae   :  { %763 = vmatpush.msra.mxu0 %v2699_v11  ;;  %783 = vmatpush.msra.mxu1 %v2700_v12 }
 0x1af   :  { %803 = vmatpush.msra.mxu2 %v2701_v13  ;;  %823 = vmatpush.msra.mxu3 %v2702_v14 }
 0x1b0   :  { %764 = vmatpush.msra.mxu0 %v2703_v15  ;;  %784 = vmatpush.msra.mxu1 %v2704_v16 }
 0x1b1   :  { %804 = vmatpush.msra.mxu2 %v2705_v17  ;;  %824 = vmatpush.msra.mxu3 %v2706_v18 }
 0x1b2   :  { %765 = vmatpush.msra.mxu0 %v2707_v19  ;;  %785 = vmatpush.msra.mxu1 %v2708_v20 }
 0x1b3   :  { %805 = vmatpush.msra.mxu2 %v2709_v21  ;;  %825 = vmatpush.msra.mxu3 %v2710_v22 }
 0x1b4   :  { %766 = vmatpush.msra.mxu0 %v2711_v23  ;;  %786 = vmatpush.msra.mxu1 %v2712_v24 }
 0x1b5   :  { %806 = vmatpush.msra.mxu2 %v2713_v25  ;;  %826 = vmatpush.msra.mxu3 %v2714_v26 }
 0x211   :  { %v460_v27 = vpop.f32.mrf.mxu1  ;;  %v440_v33 = vpop.f32.mrf.mxu0 }
 0x212   :  { %v507_v28 = vrot.slane %v460_v27, 6  ;;  %v2144_v27 = vld [vmem:[#allocation2 + $0x1e8] sm:$0xff] }
 0x214   :  { %v510_v36 = vsel %vm179_vm0, %v440_v33, %v507_v28  ;;  %v2147_v28 = vld [vmem:[#allocation2 + $0x1f0] sm:$0xff]  ;;  %v2162_v33 = vld [vmem:[#allocation2 + $0x1d8] sm:$0xff] }
 0x218   :  { %v480_v29 = vpop.f32.mrf.mxu2  ;;  %v500_v30 = vpop.f32.mrf.mxu3 }
 0x219   :  { %v508_v31 = vrot.slane %v480_v29, 4  ;;  %v509_v32 = vrot.slane %v500_v30, 2  ;;  %v2150_v29 = vld [vmem:[#allocation2 + $0x1f8] sm:$0xff]  ;;  %v2153_v30 = vld [vmem:[#allocation2 + $0x1c0] sm:$0xff] }
 0x21b   :  { %v511_v37 = vsel %vm181_vm1, %v508_v31, %v509_v32  ;;  %v2156_v31 = vld [vmem:[#allocation2 + $0x1c8] sm:$0xff]  ;;  %v2159_v32 = vld [vmem:[#allocation2 + $0x1d0] sm:$0xff] }
 0x21c   :  { %v512_v40 = vsel %vm183_vm2, %v510_v36, %v511_v37  ;;  %v2168_v36 = vld [vmem:[#allocation2 + $0x1a8] sm:$0xff]  ;;  %v2171_v37 = vld [vmem:[#allocation2 + $0x1b0] sm:$0xff] }
 0x21d   :  { %v514_v41 = vadd.f32 %v512_v40, %v422_v34  ;;  %v2165_v34 = vld [vmem:[#allocation2 + $0x1a0] sm:$0xff]  ;;  %v2174_v40 = vld [vmem:[#allocation2 + $0x1b8] sm:$0xff] }
 0x21f   :  { %v515_v44 = vsub.f32 0.0, %v514_v41  ;;  %v535_v45 = vrot.slane %v514_v41, 2  ;;  %v559_v60 = vrot.slane %v514_v41, 6  ;;  %v556_v48 = vrot.slane %v514_v41, 4  ;;  %v2177_v41 = vld [vmem:[#allocation2 + $0x180] sm:$0xff] }
 0x221   :  { %v516_v46 = vmul.f32 1.442695, %v515_v44  ;;  %v537_v53 = vsub.f32 0.0, %v535_v45  ;;  %v561_v52 = vsub.f32 0.0, %v559_v60  ;;  %v2180_v44 = vld [vmem:[#allocation2 + $0x188] sm:$0xff]  ;;  %v2183_v45 = vld [vmem:[#allocation2 + $0x190] sm:$0xff] }
 0x222   :  { %v2186_v60 = vld [vmem:[#allocation2 + $0x198] sm:$0xff] }
 0x223   :  { %1447 = vpow2.f32 %v516_v46  ;;  %v538_v56 = vmul.f32 1.442695, %v537_v53  ;;  %v562_v61 = vmul.f32 1.442695, %v561_v52  ;;  %v2189_v46 = vld [vmem:[#allocation2 + $0x160] sm:$0xff]  ;;  %v2192_v53 = vld [vmem:[#allocation2 + $0x168] sm:$0xff] }
 0x224   :  { %v2195_v52 = vld [vmem:[#allocation2 + $0x170] sm:$0xff] }
 0x225   :  { %1449 = vpow2.f32 %v538_v56  ;;  %v2198_v56 = vld [vmem:[#allocation2 + $0x178] sm:$0xff] }
 0x226   :  { %1451 = vpow2.f32 %v562_v61  ;;  %v2201_v61 = vld [vmem:[#allocation2 + $0x140] sm:$0xff] }
 0x229   :  { %v1448_v54 = vpop.eup %1447 }
 0x22a   :  { %v518_v63 = vadd.f32 1.0, %v1448_v54  ;;  %v2204_v54 = vld [vmem:[#allocation2 + $0x148] sm:$0xff] }
 0x22b   :  { %v1450_v38 = vpop.eup %1449 }
 0x22c   :  { %v1452_v47 = vpop.eup %1451  ;;  %1453 = vrcp.f32 %v518_v63  ;;  %v540_v59 = vadd.f32 1.0, %v1450_v38  ;;  %v530_v39 = vand.u32 2147483648, %v518_v63  ;;  %v528_v1 = vand.u32 2147483647, %v518_v63  ;;  %v2210_v38 = vld [vmem:[#allocation2 + $0x158] sm:$0xff] }
 0x22d   :  { %v564_v43 = vadd.f32 1.0, %v1452_v47  ;;  %vm524_vm15 = vweird.f32 %v518_v63  ;;  %v2213_v47 = vld [vmem:[#allocation2 + $0x120] sm:$0xff] }
 0x22e   :  { %1455 = vrcp.f32 %v540_v59  ;;  %v552_v2 = vand.u32 2147483648, %v540_v59  ;;  %v550_v5 = vand.u32 2147483647, %v540_v59  ;;  %v531_v6 = vor.u32 1.1754944e-38, %v530_v39  ;;  %v2243_v39 = vld [vmem:[#allocation2 + $0xf0] sm:$0xff] }
 0x22f   :  { %1457 = vrcp.f32 %v564_v43  ;;  %vm529_vm5 = vcmp.eq.f32.partialorder %v528_v1, 8.507059e+37  ;;  %vm546_vm6 = vweird.f32 %v540_v59  ;;  %v576_v20 = vand.u32 2147483648, %v564_v43  ;;  %v2255_v1 = vld [vmem:[#allocation2 + $0xd0] sm:$0xff] }
 0x230   :  { %1459 = vtanh.f32 %v556_v48  ;;  %v553_v11 = vor.u32 1.1754944e-38, %v552_v2  ;;  %vm551_vm8 = vcmp.eq.f32.partialorder %v550_v5, 8.507059e+37  ;;  %vm570_vm10 = vweird.f32 %v564_v43  ;;  %v2231_v48 = vld [vmem:[#allocation2 + $0x110] sm:$0xff]  ;;  %2716 = vst [vmem:[#allocation5_spill] sm:$0xff] %v2255_v1  ;;  %v2258_v2 = vld [vmem:[#allocation2 + $0xd8] sm:$0xff] }
 0x231   :  { %v574_v21 = vand.u32 2147483647, %v564_v43  ;;  %v577_v23 = vor.u32 1.1754944e-38, %v576_v20  ;;  %2717 = vst [vmem:[#allocation6_spill] sm:$0xff] %v2258_v2  ;;  %v2267_v5 = vld [vmem:[#allocation2 + $0xb0] sm:$0xff]  ;;  %v2309_v20 = vld [vmem:[#allocation2 + $0x20] sm:$0xff] }
 0x232   :  { %v1454_v57 = vpop.eup %1453  ;;  %2720 = vst [vmem:[#allocation7_spill] sm:$0xff] %v2267_v5 }
 0x233   :  { %v520_v51 = vmul.f32 %v1454_v57, %v518_v63  ;;  %vm525_vm14 = vweird.f32 %v1454_v57  ;;  %vm575_vm12 = vcmp.eq.f32.partialorder %v574_v21, 8.507059e+37  ;;  %v2207_v63 = vld [vmem:[#allocation2 + $0x150] sm:$0xff]  ;;  %2734 = vst [vmem:[#allocation29_spill] sm:$0xff] %v2309_v20  ;;  %v2312_v21 = vld [vmem:[#allocation2 + $0x28] sm:$0xff] }
 0x234   :  { %v1456_v49 = vpop.eup %1455  ;;  %vm526_vm4 = vmor %vm524_vm15, %vm525_vm14  ;;  %2735 = vst [vmem:[#allocation28_spill] sm:$0xff] %v2312_v21 }
 0x235   :  { %v1458_v55 = vpop.eup %1457  ;;  %v521_v62 = vsub.f32 1.0, %v520_v51  ;;  %v542_v58 = vmul.f32 %v1456_v49, %v540_v59  ;;  %vm547_vm3 = vweird.f32 %v1456_v49  ;;  %v2216_v59 = vld [vmem:[#allocation2 + $0x128] sm:$0xff]  ;;  %v2225_v51 = vld [vmem:[#allocation2 + $0x100] sm:$0xff] }
 0x236   :  { %v566_v42 = vmul.f32 %v1458_v55, %v564_v43  ;;  %vm548_vm7 = vmor %vm546_vm6, %vm547_vm3  ;;  %v1460_v13 = vpop.eup %1459  ;;  %vm571_vm9 = vweird.f32 %v1458_v55  ;;  %v2219_v43 = vld [vmem:[#allocation2 + $0x130] sm:$0xff] }
 0x237   :  { %v543_v50 = vsub.f32 1.0, %v542_v58  ;;  %v522_v0 = vmul.f32 %v1454_v57, %v521_v62  ;;  %vm572_vm11 = vmor %vm570_vm10, %vm571_vm9  ;;  %v2237_v62 = vld [vmem:[#allocation2 + $0xe0] sm:$0xff]  ;;  %v2240_v58 = vld [vmem:[#allocation2 + $0xe8] sm:$0xff] }
 0x238   :  { %v567_v7 = vsub.f32 1.0, %v566_v42  ;;  %v2246_v42 = vld [vmem:[#allocation2 + $0xf8] sm:$0xff] }
 0x239   :  { %v523_v3 = vadd.f32 %v1454_v57, %v522_v0  ;;  %v544_v4 = vmul.f32 %v1456_v49, %v543_v50  ;;  %v2249_v50 = vld [vmem:[#allocation2 + $0xc0] sm:$0xff]  ;;  %v2252_v0 = vld [vmem:[#allocation2 + $0xc8] sm:$0xff] }
 0x23a   :  { %v568_v15 = vmul.f32 %v1458_v55, %v567_v7  ;;  %2715 = vst [vmem:[#allocation9_spill] sm:$0xff] %v2252_v0  ;;  %v2273_v7 = vld [vmem:[#allocation2 + $0x80] sm:$0xff] }
 0x23b   :  { %v527_v8 = vsel %vm526_vm4, %v1454_v57, %v523_v3  ;;  %v545_v9 = vadd.f32 %v1456_v49, %v544_v4  ;;  %v2222_v57 = vld [vmem:[#allocation2 + $0x138] sm:$0xff]  ;;  %v2261_v3 = vld [vmem:[#allocation2 + $0xa0] sm:$0xff]  ;;  %v2264_v4 = vld [vmem:[#allocation2 + $0xa8] sm:$0xff]  ;;  %2722 = vst [vmem:[#allocation17_spill] sm:$0xff] %v2273_v7 }
 0x23c   :  { %v532_v10 = vsel %vm529_vm5, %v531_v6, %v527_v8  ;;  %v569_v19 = vadd.f32 %v1458_v55, %v568_v15  ;;  %2718 = vst [vmem:[#allocation13_spill] sm:$0xff] %v2261_v3  ;;  %v2270_v6 = vld [vmem:[#allocation2 + $0xb8] sm:$0xff]  ;;  %v2276_v8 = vld [vmem:[#allocation2 + $0x88] sm:$0xff]  ;;  %v2297_v15 = vld [vmem:[#allocation2 + $0x40] sm:$0xff] }
 0x23d   :  { %v549_v12 = vsel %vm548_vm7, %v1456_v49, %v545_v9  ;;  %v581_v17 = vmul.f32 %v1460_v13, %v532_v10  ;;  %v2228_v49 = vld [vmem:[#allocation2 + $0x108] sm:$0xff]  ;;  %2719 = vst [vmem:[#allocation12_spill] sm:$0xff] %v2264_v4  ;;  %v2279_v9 = vld [vmem:[#allocation2 + $0x90] sm:$0xff]  ;;  %v2282_v10 = vld [vmem:[#allocation2 + $0x98] sm:$0xff] }
 0x23e   :  { %v554_v14 = vsel %vm551_vm8, %v553_v11, %v549_v12  ;;  %v573_v22 = vsel %vm572_vm11, %v1458_v55, %v569_v19  ;;  %v2234_v55 = vld [vmem:[#allocation2 + $0x118] sm:$0xff]  ;;  %2721 = vst [vmem:[#allocation8_spill] sm:$0xff] %v2270_v6  ;;  %v2285_v11 = vld [vmem:[#allocation2 + $0x60] sm:$0xff]  ;;  %v2288_v12 = vld [vmem:[#allocation2 + $0x68] sm:$0xff] }
 0x23f   :  { %v580_v16 = vmul.f32 %v554_v14, %v2058_v35  ;;  %v578_v25 = vsel %vm575_vm12, %v577_v23, %v573_v22  ;;  %v2141_v35 = vld [vmem:[#allocation2 + $0x1e0] sm:$0xff]  ;;  %2723 = vst [vmem:[#allocation16_spill] sm:$0xff] %v2276_v8  ;;  %v2291_v13 = vld [vmem:[#allocation2 + $0x70] sm:$0xff]  ;;  %v2294_v14 = vld [vmem:[#allocation2 + $0x78] sm:$0xff] }
 0x240   :  { %2724 = vst [vmem:[#allocation10_spill] sm:$0xff] %v2279_v9  ;;  %v2306_v19 = vld [vmem:[#allocation2 + $0x58] sm:$0xff]  ;;  %v2315_v22 = vld [vmem:[#allocation2 + $0x30] sm:$0xff] }
 0x241   :  { %v2135_v18 = vadd.f32 %v581_v17, %v580_v16  ;;  %2725 = vst [vmem:[#allocation11_spill] sm:$0xff] %v2282_v10  ;;  %v2300_v16 = vld [vmem:[#allocation2 + $0x48] sm:$0xff]  ;;  %v2303_v17 = vld [vmem:[#allocation2 + $0x50] sm:$0xff]  ;;  %v2318_v23 = vld [vmem:[#allocation2 + $0x38] sm:$0xff] }
 0x242   :  { %2726 = vst [vmem:[#allocation21_spill] sm:$0xff] %v2285_v11 }
 0x243   :  { %1461 = vtanh.f32 %v2135_v18  ;;  %2727 = vst [vmem:[#allocation20_spill] sm:$0xff] %v2288_v12 }
 0x244   :  { %2728 = vst [vmem:[#allocation14_spill] sm:$0xff] %v2291_v13 }
 0x245   :  { %2729 = vst [vmem:[#allocation15_spill] sm:$0xff] %v2294_v14 }
 0x246   :  { %2730 = vst [vmem:[#allocation25_spill] sm:$0xff] %v2297_v15 }
 0x247   :  { %2731 = vst [vmem:[#allocation24_spill] sm:$0xff] %v2300_v16 }
 0x248   :  { %2732 = vst [vmem:[#allocation18_spill] sm:$0xff] %v2303_v17 }
 0x249   :  { %v1462_v24 = vpop.eup %1461  ;;  %2733 = vst [vmem:[#allocation19_spill] sm:$0xff] %v2306_v19 }
 0x24a   :  { %v584_v26 = vmul.f32 %v1462_v24, %v578_v25  ;;  %2736 = vst [vmem:[#allocation22_spill] sm:$0xff] %v2315_v22  ;;  %v2321_v24 = vld [vmem:[#allocation2] sm:$0xff]  ;;  %v2324_v25 = vld [vmem:[#allocation2 + $0x8] sm:$0xff] }
 0x24b   :  { %2737 = vst [vmem:[#allocation23_spill] sm:$0xff] %v2318_v23 }
 0x24c   :  { %585 = vst [vmem:[%s2525_s2 + $0x4] sm:$0x3] %v584_v26  ;;  %603 = vmatmul.f32.vlgmr.msrb.gmra.mxu0 %v584_v26  ;;  %623 = vmatmul.f32.vlgmr.msrb.gmra.mxu1 %v584_v26 }
 0x24d   :  { %643 = vmatmul.f32.vlgmr.msrb.gmra.mxu2 %v584_v26  ;;  %663 = vmatmul.f32.vlgmr.msrb.gmra.mxu3 %v584_v26  ;;  %2738 = vst [vmem:[#allocation31_spill] sm:$0xff] %v2321_v24  ;;  %v2327_v26 = vld [vmem:[#allocation2 + $0x10] sm:$0xff] }
 0x24e   :  { %915 = vmatpush.msrb.mxu0 %v2141_v35  ;;  %935 = vmatpush.msrb.mxu1 %v2144_v27  ;;  %2739 = vst [vmem:[#allocation30_spill] sm:$0xff] %v2324_v25 }
 0x24f   :  { %955 = vmatpush.msrb.mxu2 %v2147_v28  ;;  %975 = vmatpush.msrb.mxu3 %v2150_v29  ;;  %2740 = vst [vmem:[#allocation26_spill] sm:$0xff] %v2327_v26 }
 0x250   :  { %916 = vmatpush.msrb.mxu0 %v2153_v30  ;;  %936 = vmatpush.msrb.mxu1 %v2156_v31 }
 0x251   :  { %956 = vmatpush.msrb.mxu2 %v2159_v32  ;;  %976 = vmatpush.msrb.mxu3 %v2162_v33 }
 0x252   :  { %917 = vmatpush.msrb.mxu0 %v2165_v34  ;;  %937 = vmatpush.msrb.mxu1 %v2168_v36 }
 0x253   :  { %957 = vmatpush.msrb.mxu2 %v2171_v37  ;;  %977 = vmatpush.msrb.mxu3 %v2174_v40 }
 0x254   :  { %918 = vmatpush.msrb.mxu0 %v2177_v41  ;;  %938 = vmatpush.msrb.mxu1 %v2180_v44 }
 0x255   :  { %958 = vmatpush.msrb.mxu2 %v2183_v45  ;;  %978 = vmatpush.msrb.mxu3 %v2186_v60 }
 0x256   :  { %919 = vmatpush.msrb.mxu0 %v2189_v46  ;;  %939 = vmatpush.msrb.mxu1 %v2192_v53 }
 0x257   :  { %959 = vmatpush.msrb.mxu2 %v2195_v52  ;;  %979 = vmatpush.msrb.mxu3 %v2198_v56 }
 0x258   :  { %920 = vmatpush.msrb.mxu0 %v2201_v61  ;;  %940 = vmatpush.msrb.mxu1 %v2204_v54 }
 0x259   :  { %960 = vmatpush.msrb.mxu2 %v2207_v63  ;;  %980 = vmatpush.msrb.mxu3 %v2210_v38 }
 0x25a   :  { %921 = vmatpush.msrb.mxu0 %v2213_v47  ;;  %941 = vmatpush.msrb.mxu1 %v2216_v59 }
 0x25b   :  { %961 = vmatpush.msrb.mxu2 %v2219_v43  ;;  %981 = vmatpush.msrb.mxu3 %v2222_v57 }
 0x25c   :  { %922 = vmatpush.msrb.mxu0 %v2225_v51  ;;  %942 = vmatpush.msrb.mxu1 %v2228_v49 }
 0x25d   :  { %962 = vmatpush.msrb.mxu2 %v2231_v48  ;;  %982 = vmatpush.msrb.mxu3 %v2234_v55 }
 0x25e   :  { %923 = vmatpush.msrb.mxu0 %v2237_v62  ;;  %943 = vmatpush.msrb.mxu1 %v2240_v58 }
 0x25f   :  { %963 = vmatpush.msrb.mxu2 %v2243_v39  ;;  %983 = vmatpush.msrb.mxu3 %v2246_v42 }
 0x260   :  { %924 = vmatpush.msrb.mxu0 %v2249_v50  ;;  %944 = vmatpush.msrb.mxu1 %v2252_v0 }
 0x261   :  { %964 = vmatpush.msrb.mxu2 %v2255_v1  ;;  %984 = vmatpush.msrb.mxu3 %v2258_v2 }
 0x262   :  { %925 = vmatpush.msrb.mxu0 %v2261_v3  ;;  %945 = vmatpush.msrb.mxu1 %v2264_v4 }
 0x263   :  { %965 = vmatpush.msrb.mxu2 %v2267_v5  ;;  %985 = vmatpush.msrb.mxu3 %v2270_v6 }
 0x264   :  { %926 = vmatpush.msrb.mxu0 %v2273_v7  ;;  %946 = vmatpush.msrb.mxu1 %v2276_v8 }
 0x265   :  { %966 = vmatpush.msrb.mxu2 %v2279_v9  ;;  %986 = vmatpush.msrb.mxu3 %v2282_v10 }
 0x266   :  { %927 = vmatpush.msrb.mxu0 %v2285_v11  ;;  %947 = vmatpush.msrb.mxu1 %v2288_v12 }
 0x267   :  { %967 = vmatpush.msrb.mxu2 %v2291_v13  ;;  %987 = vmatpush.msrb.mxu3 %v2294_v14 }
 0x268   :  { %928 = vmatpush.msrb.mxu0 %v2297_v15  ;;  %948 = vmatpush.msrb.mxu1 %v2300_v16 }
 0x269   :  { %968 = vmatpush.msrb.mxu2 %v2303_v17  ;;  %988 = vmatpush.msrb.mxu3 %v2306_v19 }
 0x26a   :  { %929 = vmatpush.msrb.mxu0 %v2309_v20  ;;  %949 = vmatpush.msrb.mxu1 %v2312_v21  ;;  %v2330_v21 = vld [vmem:[#allocation2 + $0x18] sm:$0xff] }
 0x26b   :  { %969 = vmatpush.msrb.mxu2 %v2315_v22  ;;  %989 = vmatpush.msrb.mxu3 %v2318_v23  ;;  %2741 = vst [vmem:[#allocation27_spill] sm:$0xff] %v2330_v21 }
 0x26c   :  { %930 = vmatpush.msrb.mxu0 %v2321_v24  ;;  %950 = vmatpush.msrb.mxu1 %v2324_v25  ;;  %v586_v24 = vld [vmem:[%s2523_s0 + $0x18] sm:$0xff] }
 0x26d   :  { %970 = vmatpush.msrb.mxu2 %v2327_v26  ;;  %990 = vmatpush.msrb.mxu3 %v2330_v21 }
 0x2c9   :  { %v624_v22 = vpop.f32.mrf.mxu1  ;;  %v604_v15 = vpop.f32.mrf.mxu0 }
 0x2ca   :  { %v671_v20 = vrot.slane %v624_v22, 6 }
 0x2cc   :  { %v674_v25 = vsel %vm179_vm0, %v604_v15, %v671_v20 }
 0x2d0   :  { %v644_v19 = vpop.f32.mrf.mxu2  ;;  %v664_v23 = vpop.f32.mrf.mxu3 }
 0x2d1   :  { %v672_v17 = vrot.slane %v644_v19, 4  ;;  %v673_v16 = vrot.slane %v664_v23, 2 }
 0x2d3   :  { %v675_v14 = vsel %vm181_vm1, %v672_v17, %v673_v16 }
 0x2d4   :  { %v676_v26 = vsel %vm183_vm2, %v674_v25, %v675_v14 }
 0x2d5   :  { %v678_v13 = vadd.f32 %v676_v26, %v586_v24 }
 0x2d7   :  { %v679_v12 = vsub.f32 0.0, %v678_v13  ;;  %v699_v21 = vrot.slane %v678_v13, 2  ;;  %v723_v11 = vrot.slane %v678_v13, 6 }
 0x2d9   :  { %v680_v22 = vmul.f32 1.442695, %v679_v12  ;;  %v701_v10 = vsub.f32 0.0, %v699_v21  ;;  %v725_v9 = vsub.f32 0.0, %v723_v11  ;;  %v720_v12 = vrot.slane %v678_v13, 4 }
 0x2db   :  { %1463 = vpow2.f32 %v680_v22  ;;  %v702_v19 = vmul.f32 1.442695, %v701_v10  ;;  %v726_v23 = vmul.f32 1.442695, %v725_v9 }
 0x2dd   :  { %1465 = vpow2.f32 %v702_v19 }
 0x2de   :  { %1467 = vpow2.f32 %v726_v23 }
 0x2e1   :  { %v1464_v8 = vpop.eup %1463 }
 0x2e2   :  { %v682_v7 = vadd.f32 1.0, %v1464_v8 }
 0x2e3   :  { %v1466_v6 = vpop.eup %1465 }
 0x2e4   :  { %v1468_v15 = vpop.eup %1467  ;;  %1469 = vrcp.f32 %v682_v7  ;;  %v704_v16 = vadd.f32 1.0, %v1466_v6  ;;  %v694_v10 = vand.u32 2147483648, %v682_v7  ;;  %v692_v8 = vand.u32 2147483647, %v682_v7 }
 0x2e5   :  { %v728_v17 = vadd.f32 1.0, %v1468_v15  ;;  %vm688_vm14 = vweird.f32 %v682_v7 }
 0x2e6   :  { %1471 = vrcp.f32 %v704_v16  ;;  %v716_v19 = vand.u32 2147483648, %v704_v16  ;;  %v714_v15 = vand.u32 2147483647, %v704_v16  ;;  %v695_v5 = vor.u32 1.1754944e-38, %v694_v10 }
 0x2e7   :  { %1473 = vrcp.f32 %v728_v17  ;;  %vm693_vm4 = vcmp.eq.f32.partialorder %v692_v8, 8.507059e+37  ;;  %vm710_vm5 = vweird.f32 %v704_v16  ;;  %v740_v10 = vand.u32 2147483648, %v728_v17 }
 0x2e8   :  { %1475 = vtanh.f32 %v720_v12  ;;  %vm715_vm7 = vcmp.eq.f32.partialorder %v714_v15, 8.507059e+37  ;;  %vm734_vm9 = vweird.f32 %v728_v17  ;;  %v2752_v15 = vld [vmem:[#allocation11_spill] sm:$0xff] }
 0x2ea   :  { %v1470_v14 = vpop.eup %1469 }
 0x2eb   :  { %v684_v20 = vmul.f32 %v1470_v14, %v682_v7  ;;  %vm689_vm13 = vweird.f32 %v1470_v14 }
 0x2ec   :  { %v1472_v24 = vpop.eup %1471  ;;  %vm690_vm3 = vmor %vm688_vm14, %vm689_vm13 }
 0x2ed   :  { %v1474_v21 = vpop.eup %1473  ;;  %v685_v11 = vsub.f32 1.0, %v684_v20  ;;  %v706_v25 = vmul.f32 %v1472_v24, %v704_v16  ;;  %vm711_vm15 = vweird.f32 %v1472_v24  ;;  %v738_v16 = vand.u32 2147483647, %v728_v17 }
 0x2ee   :  { %v730_v9 = vmul.f32 %v1474_v21, %v728_v17  ;;  %vm712_vm6 = vmor %vm710_vm5, %vm711_vm15  ;;  %v1476_v2 = vpop.eup %1475  ;;  %vm735_vm8 = vweird.f32 %v1474_v21  ;;  %v2747_v17 = vld [vmem:[#allocation7_spill] sm:$0xff] }
 0x2ef   :  { %v707_v26 = vsub.f32 1.0, %v706_v25  ;;  %v686_v22 = vmul.f32 %v1470_v14, %v685_v11  ;;  %v717_v25 = vor.u32 1.1754944e-38, %v716_v19  ;;  %vm736_vm10 = vmor %vm734_vm9, %vm735_vm8  ;;  %vm739_vm11 = vcmp.eq.f32.partialorder %v738_v16, 8.507059e+37  ;;  %v2749_v19 = vld [vmem:[#allocation17_spill] sm:$0xff]  ;;  %v2762_v16 = vld [vmem:[#allocation28_spill] sm:$0xff] }
 0x2f0   :  { %v731_v4 = vsub.f32 1.0, %v730_v9 }
 0x2f1   :  { %v687_v6 = vadd.f32 %v1470_v14, %v686_v22  ;;  %v708_v23 = vmul.f32 %v1472_v24, %v707_v26 }
 0x2f2   :  { %v732_v7 = vmul.f32 %v1474_v21, %v731_v4  ;;  %v2746_v4 = vld [vmem:[#allocation12_spill] sm:$0xff] }
 0x2f3   :  { %v691_v13 = vsel %vm690_vm3, %v1470_v14, %v687_v6  ;;  %v709_v20 = vadd.f32 %v1472_v24, %v708_v23  ;;  %v741_v14 = vor.u32 1.1754944e-38, %v740_v10  ;;  %v2750_v6 = vld [vmem:[#allocation16_spill] sm:$0xff]  ;;  %v2751_v23 = vld [vmem:[#allocation10_spill] sm:$0xff]  ;;  %v2761_v10 = vld [vmem:[#allocation29_spill] sm:$0xff] }
 0x2f4   :  { %v696_v3 = vsel %vm693_vm4, %v695_v5, %v691_v13  ;;  %v733_v0 = vadd.f32 %v1474_v21, %v732_v7  ;;  %v2753_v13 = vld [vmem:[#allocation21_spill] sm:$0xff]  ;;  %v2758_v7 = vld [vmem:[#allocation24_spill] sm:$0xff] }
 0x2f5   :  { %v713_v11 = vsel %vm712_vm6, %v1472_v24, %v709_v20  ;;  %v745_v26 = vmul.f32 %v1476_v2, %v696_v3  ;;  %v2744_v2 = vld [vmem:[#allocation6_spill] sm:$0xff]  ;;  %v2745_v3 = vld [vmem:[#allocation13_spill] sm:$0xff]  ;;  %v2754_v20 = vld [vmem:[#allocation20_spill] sm:$0xff] }
 0x2f6   :  { %v718_v12 = vsel %vm715_vm7, %v717_v25, %v713_v11  ;;  %v737_v5 = vsel %vm736_vm10, %v1474_v21, %v733_v0  ;;  %v2743_v0 = vld [vmem:[#allocation5_spill] sm:$0xff]  ;;  %v2748_v21 = vld [vmem:[#allocation8_spill] sm:$0xff]  ;;  %v2755_v25 = vld [vmem:[#allocation14_spill] sm:$0xff] }
 0x2f7   :  { %v744_v22 = vmul.f32 %v718_v12, %v2135_v18  ;;  %v742_v9 = vsel %vm739_vm11, %v741_v14, %v737_v5  ;;  %v2742_v18 = vld [vmem:[#allocation9_spill] sm:$0xff]  ;;  %v2756_v11 = vld [vmem:[#allocation15_spill] sm:$0xff]  ;;  %v2763_v5 = vld [vmem:[#allocation22_spill] sm:$0xff] }
 0x2f8   :  { %v2757_v12 = vld [vmem:[#allocation25_spill] sm:$0xff]  ;;  %v2764_v14 = vld [vmem:[#allocation23_spill] sm:$0xff] }
 0x2f9   :  { %v2340_v1 = vadd.f32 %v745_v26, %v744_v22  ;;  %v2759_v22 = vld [vmem:[#allocation18_spill] sm:$0xff]  ;;  %v2760_v26 = vld [vmem:[#allocation19_spill] sm:$0xff] }
 0x2fb   :  { %1477 = vtanh.f32 %v2340_v1 }
 0x301   :  { %v1478_v24 = vpop.eup %1477 }
 0x302   :  { %v748_v8 = vmul.f32 %v1478_v24, %v742_v9  ;;  %v2765_v24 = vld [vmem:[#allocation31_spill] sm:$0xff]  ;;  %v2766_v9 = vld [vmem:[#allocation30_spill] sm:$0xff] }
 0x304   :  { %749 = vst [vmem:[%s2525_s2 + $0x6] sm:$0x3] %v748_v8  ;;  %767 = vmatmul.f32.vlgmr.msra.gmra.mxu0 %v748_v8  ;;  %787 = vmatmul.f32.vlgmr.msra.gmra.mxu1 %v748_v8 }
 0x305   :  { %807 = vmatmul.f32.vlgmr.msra.gmra.mxu2 %v748_v8  ;;  %827 = vmatmul.f32.vlgmr.msra.gmra.mxu3 %v748_v8  ;;  %v2767_v8 = vld [vmem:[#allocation26_spill] sm:$0xff] }
 0x306   :  { %1079 = vmatpush.msra.mxu0 %v2141_v35  ;;  %1099 = vmatpush.msra.mxu1 %v2144_v27 }
 0x307   :  { %1119 = vmatpush.msra.mxu2 %v2147_v28  ;;  %1139 = vmatpush.msra.mxu3 %v2150_v29 }
 0x308   :  { %1080 = vmatpush.msra.mxu0 %v2153_v30  ;;  %1100 = vmatpush.msra.mxu1 %v2156_v31 }
 0x309   :  { %1120 = vmatpush.msra.mxu2 %v2159_v32  ;;  %1140 = vmatpush.msra.mxu3 %v2162_v33 }
 0x30a   :  { %1081 = vmatpush.msra.mxu0 %v2165_v34  ;;  %1101 = vmatpush.msra.mxu1 %v2168_v36 }
 0x30b   :  { %1121 = vmatpush.msra.mxu2 %v2171_v37  ;;  %1141 = vmatpush.msra.mxu3 %v2174_v40 }
 0x30c   :  { %1082 = vmatpush.msra.mxu0 %v2177_v41  ;;  %1102 = vmatpush.msra.mxu1 %v2180_v44 }
 0x30d   :  { %1122 = vmatpush.msra.mxu2 %v2183_v45  ;;  %1142 = vmatpush.msra.mxu3 %v2186_v60 }
 0x30e   :  { %1083 = vmatpush.msra.mxu0 %v2189_v46  ;;  %1103 = vmatpush.msra.mxu1 %v2192_v53 }
 0x30f   :  { %1123 = vmatpush.msra.mxu2 %v2195_v52  ;;  %1143 = vmatpush.msra.mxu3 %v2198_v56 }
 0x310   :  { %1084 = vmatpush.msra.mxu0 %v2201_v61  ;;  %1104 = vmatpush.msra.mxu1 %v2204_v54 }
 0x311   :  { %1124 = vmatpush.msra.mxu2 %v2207_v63  ;;  %1144 = vmatpush.msra.mxu3 %v2210_v38 }
 0x312   :  { %1085 = vmatpush.msra.mxu0 %v2213_v47  ;;  %1105 = vmatpush.msra.mxu1 %v2216_v59 }
 0x313   :  { %1125 = vmatpush.msra.mxu2 %v2219_v43  ;;  %1145 = vmatpush.msra.mxu3 %v2222_v57 }
 0x314   :  { %1086 = vmatpush.msra.mxu0 %v2225_v51  ;;  %1106 = vmatpush.msra.mxu1 %v2228_v49 }
 0x315   :  { %1126 = vmatpush.msra.mxu2 %v2231_v48  ;;  %1146 = vmatpush.msra.mxu3 %v2234_v55 }
 0x316   :  { %1087 = vmatpush.msra.mxu0 %v2237_v62  ;;  %1107 = vmatpush.msra.mxu1 %v2240_v58 }
 0x317   :  { %1127 = vmatpush.msra.mxu2 %v2243_v39  ;;  %1147 = vmatpush.msra.mxu3 %v2246_v42 }
 0x318   :  { %1088 = vmatpush.msra.mxu0 %v2249_v50  ;;  %1108 = vmatpush.msra.mxu1 %v2742_v18 }
 0x319   :  { %1128 = vmatpush.msra.mxu2 %v2743_v0  ;;  %1148 = vmatpush.msra.mxu3 %v2744_v2 }
 0x31a   :  { %1089 = vmatpush.msra.mxu0 %v2745_v3  ;;  %1109 = vmatpush.msra.mxu1 %v2746_v4 }
 0x31b   :  { %1129 = vmatpush.msra.mxu2 %v2747_v17  ;;  %1149 = vmatpush.msra.mxu3 %v2748_v21 }
 0x31c   :  { %1090 = vmatpush.msra.mxu0 %v2749_v19  ;;  %1110 = vmatpush.msra.mxu1 %v2750_v6 }
 0x31d   :  { %1130 = vmatpush.msra.mxu2 %v2751_v23  ;;  %1150 = vmatpush.msra.mxu3 %v2752_v15 }
 0x31e   :  { %1091 = vmatpush.msra.mxu0 %v2753_v13  ;;  %1111 = vmatpush.msra.mxu1 %v2754_v20 }
 0x31f   :  { %1131 = vmatpush.msra.mxu2 %v2755_v25  ;;  %1151 = vmatpush.msra.mxu3 %v2756_v11 }
 0x320   :  { %1092 = vmatpush.msra.mxu0 %v2757_v12  ;;  %1112 = vmatpush.msra.mxu1 %v2758_v7  ;;  %v2768_v12 = vld [vmem:[#allocation27_spill] sm:$0xff] }
 0x321   :  { %1132 = vmatpush.msra.mxu2 %v2759_v22  ;;  %1152 = vmatpush.msra.mxu3 %v2760_v26 }
 0x322   :  { %1093 = vmatpush.msra.mxu0 %v2761_v10  ;;  %1113 = vmatpush.msra.mxu1 %v2762_v16 }
 0x323   :  { %1133 = vmatpush.msra.mxu2 %v2763_v5  ;;  %1153 = vmatpush.msra.mxu3 %v2764_v14  ;;  %v750_v5 = vld [vmem:[%s2523_s0 + $0x20] sm:$0xff] }
 0x324   :  { %1094 = vmatpush.msra.mxu0 %v2765_v24  ;;  %1114 = vmatpush.msra.mxu1 %v2766_v9 }
 0x325   :  { %1134 = vmatpush.msra.mxu2 %v2767_v8  ;;  %1154 = vmatpush.msra.mxu3 %v2768_v12 }
 0x381   :  { %v788_v7 = vpop.f32.mrf.mxu1  ;;  %v768_v20 = vpop.f32.mrf.mxu0 }
 0x382   :  { %v835_v22 = vrot.slane %v788_v7, 6 }
 0x384   :  { %v838_v14 = vsel %vm179_vm0, %v768_v20, %v835_v22 }
 0x388   :  { %v808_v11 = vpop.f32.mrf.mxu2  ;;  %v828_v26 = vpop.f32.mrf.mxu3 }
 0x389   :  { %v836_v25 = vrot.slane %v808_v11, 4  ;;  %v837_v10 = vrot.slane %v828_v26, 2 }
 0x38b   :  { %v839_v24 = vsel %vm181_vm1, %v836_v25, %v837_v10 }
 0x38c   :  { %v840_v9 = vsel %vm183_vm2, %v838_v14, %v839_v24 }
 0x38d   :  { %v842_v8 = vadd.f32 %v840_v9, %v750_v5 }
 0x38f   :  { %v843_v16 = vsub.f32 0.0, %v842_v8  ;;  %v863_v12 = vrot.slane %v842_v8, 2  ;;  %v887_v13 = vrot.slane %v842_v8, 6 }
 0x391   :  { %v844_v7 = vmul.f32 1.442695, %v843_v16  ;;  %v865_v15 = vsub.f32 0.0, %v863_v12  ;;  %v889_v23 = vsub.f32 0.0, %v887_v13  ;;  %v884_v16 = vrot.slane %v842_v8, 4 }
 0x393   :  { %1479 = vpow2.f32 %v844_v7  ;;  %v866_v11 = vmul.f32 1.442695, %v865_v15  ;;  %v890_v26 = vmul.f32 1.442695, %v889_v23 }
 0x395   :  { %1481 = vpow2.f32 %v866_v11 }
 0x396   :  { %1483 = vpow2.f32 %v890_v26 }
 0x399   :  { %v1480_v6 = vpop.eup %1479 }
 0x39a   :  { %v846_v19 = vadd.f32 1.0, %v1480_v6 }
 0x39b   :  { %v1482_v21 = vpop.eup %1481 }
 0x39c   :  { %v1484_v20 = vpop.eup %1483  ;;  %1485 = vrcp.f32 %v846_v19  ;;  %v868_v25 = vadd.f32 1.0, %v1482_v21  ;;  %v858_v15 = vand.u32 2147483648, %v846_v19  ;;  %v856_v6 = vand.u32 2147483647, %v846_v19 }
 0x39d   :  { %v892_v22 = vadd.f32 1.0, %v1484_v20  ;;  %vm852_vm13 = vweird.f32 %v846_v19 }
 0x39e   :  { %1487 = vrcp.f32 %v868_v25  ;;  %v880_v11 = vand.u32 2147483648, %v868_v25  ;;  %v878_v20 = vand.u32 2147483647, %v868_v25  ;;  %v859_v17 = vor.u32 1.1754944e-38, %v858_v15 }
 0x39f   :  { %1489 = vrcp.f32 %v892_v22  ;;  %vm857_vm3 = vcmp.eq.f32.partialorder %v856_v6, 8.507059e+37  ;;  %vm874_vm4 = vweird.f32 %v868_v25  ;;  %v904_v15 = vand.u32 2147483648, %v892_v22 }
 0x3a0   :  { %1491 = vtanh.f32 %v884_v16  ;;  %vm879_vm6 = vcmp.eq.f32.partialorder %v878_v20, 8.507059e+37  ;;  %vm898_vm8 = vweird.f32 %v892_v22 }
 0x3a2   :  { %v1486_v10 = vpop.eup %1485 }
 0x3a3   :  { %v848_v5 = vmul.f32 %v1486_v10, %v846_v19  ;;  %vm853_vm12 = vweird.f32 %v1486_v10 }
 0x3a4   :  { %v1488_v14 = vpop.eup %1487  ;;  %vm854_vm15 = vmor %vm852_vm13, %vm853_vm12 }
 0x3a5   :  { %v1490_v12 = vpop.eup %1489  ;;  %v849_v13 = vsub.f32 1.0, %v848_v5  ;;  %v870_v24 = vmul.f32 %v1488_v14, %v868_v25  ;;  %vm875_vm14 = vweird.f32 %v1488_v14  ;;  %v902_v25 = vand.u32 2147483647, %v892_v22 }
 0x3a6   :  { %v894_v23 = vmul.f32 %v1490_v12, %v892_v22  ;;  %vm876_vm5 = vmor %vm874_vm4, %vm875_vm14  ;;  %v1492_v2 = vpop.eup %1491  ;;  %vm899_vm7 = vweird.f32 %v1490_v12 }
 0x3a7   :  { %v871_v9 = vsub.f32 1.0, %v870_v24  ;;  %v850_v7 = vmul.f32 %v1486_v10, %v849_v13  ;;  %v881_v24 = vor.u32 1.1754944e-38, %v880_v11  ;;  %vm900_vm9 = vmor %vm898_vm8, %vm899_vm7  ;;  %vm903_vm10 = vcmp.eq.f32.partialorder %v902_v25, 8.507059e+37 }
 0x3a8   :  { %v895_v4 = vsub.f32 1.0, %v894_v23 }
 0x3a9   :  { %v851_v21 = vadd.f32 %v1486_v10, %v850_v7  ;;  %v872_v26 = vmul.f32 %v1488_v14, %v871_v9 }
 0x3aa   :  { %v896_v19 = vmul.f32 %v1490_v12, %v895_v4 }
 0x3ab   :  { %v855_v8 = vsel %vm854_vm15, %v1486_v10, %v851_v21  ;;  %v873_v5 = vadd.f32 %v1488_v14, %v872_v26  ;;  %v905_v10 = vor.u32 1.1754944e-38, %v904_v15 }
 0x3ac   :  { %v860_v3 = vsel %vm857_vm3, %v859_v17, %v855_v8  ;;  %v897_v18 = vadd.f32 %v1490_v12, %v896_v19 }
 0x3ad   :  { %v877_v13 = vsel %vm876_vm5, %v1488_v14, %v873_v5  ;;  %v909_v9 = vmul.f32 %v1492_v2, %v860_v3 }
 0x3ae   :  { %v882_v16 = vsel %vm879_vm6, %v881_v24, %v877_v13  ;;  %v901_v17 = vsel %vm900_vm9, %v1490_v12, %v897_v18 }
 0x3af   :  { %v908_v7 = vmul.f32 %v882_v16, %v2340_v1  ;;  %v906_v23 = vsel %vm903_vm10, %v905_v10, %v901_v17 }
 0x3b1   :  { %v2417_v0 = vadd.f32 %v909_v9, %v908_v7 }
 0x3b3   :  { %1493 = vtanh.f32 %v2417_v0 }
 0x3b9   :  { %v1494_v14 = vpop.eup %1493 }
 0x3ba   :  { %v912_v6 = vmul.f32 %v1494_v14, %v906_v23 }
 0x3bc   :  { %913 = vst [vmem:[%s2525_s2 + $0x8] sm:$0x3] %v912_v6  ;;  %931 = vmatmul.f32.vlgmr.msrb.gmra.mxu0 %v912_v6  ;;  %951 = vmatmul.f32.vlgmr.msrb.gmra.mxu1 %v912_v6 }
 0x3bd   :  { %971 = vmatmul.f32.vlgmr.msrb.gmra.mxu2 %v912_v6  ;;  %991 = vmatmul.f32.vlgmr.msrb.gmra.mxu3 %v912_v6 }
 0x3be   :  { %1243 = vmatpush.msrb.mxu0 %v2141_v35  ;;  %1263 = vmatpush.msrb.mxu1 %v2144_v27  ;;  %v2769_v35 = vld [vmem:[#allocation9_spill] sm:$0xff] }
 0x3bf   :  { %1283 = vmatpush.msrb.mxu2 %v2147_v28  ;;  %1303 = vmatpush.msrb.mxu3 %v2150_v29  ;;  %v2770_v27 = vld [vmem:[#allocation5_spill] sm:$0xff]  ;;  %v2771_v28 = vld [vmem:[#allocation6_spill] sm:$0xff] }
 0x3c0   :  { %1244 = vmatpush.msrb.mxu0 %v2153_v30  ;;  %1264 = vmatpush.msrb.mxu1 %v2156_v31  ;;  %v2772_v29 = vld [vmem:[#allocation13_spill] sm:$0xff]  ;;  %v2773_v30 = vld [vmem:[#allocation12_spill] sm:$0xff]  ;;  %v2774_v31 = vld [vmem:[#allocation7_spill] sm:$0xff] }
 0x3c1   :  { %1284 = vmatpush.msrb.mxu2 %v2159_v32  ;;  %1304 = vmatpush.msrb.mxu3 %v2162_v33  ;;  %v2775_v32 = vld [vmem:[#allocation8_spill] sm:$0xff]  ;;  %v2776_v33 = vld [vmem:[#allocation17_spill] sm:$0xff] }
 0x3c2   :  { %1245 = vmatpush.msrb.mxu0 %v2165_v34  ;;  %1265 = vmatpush.msrb.mxu1 %v2168_v36  ;;  %v2777_v34 = vld [vmem:[#allocation16_spill] sm:$0xff]  ;;  %v2778_v36 = vld [vmem:[#allocation10_spill] sm:$0xff] }
 0x3c3   :  { %1285 = vmatpush.msrb.mxu2 %v2171_v37  ;;  %1305 = vmatpush.msrb.mxu3 %v2174_v40  ;;  %v2779_v37 = vld [vmem:[#allocation11_spill] sm:$0xff]  ;;  %v2780_v40 = vld [vmem:[#allocation21_spill] sm:$0xff] }
 0x3c4   :  { %1246 = vmatpush.msrb.mxu0 %v2177_v41  ;;  %1266 = vmatpush.msrb.mxu1 %v2180_v44  ;;  %v2781_v41 = vld [vmem:[#allocation20_spill] sm:$0xff]  ;;  %v2782_v44 = vld [vmem:[#allocation14_spill] sm:$0xff] }
 0x3c5   :  { %1286 = vmatpush.msrb.mxu2 %v2183_v45  ;;  %1306 = vmatpush.msrb.mxu3 %v2186_v60  ;;  %v2783_v45 = vld [vmem:[#allocation15_spill] sm:$0xff]  ;;  %v2784_v60 = vld [vmem:[#allocation25_spill] sm:$0xff] }
 0x3c6   :  { %1247 = vmatpush.msrb.mxu0 %v2189_v46  ;;  %1267 = vmatpush.msrb.mxu1 %v2192_v53  ;;  %v2785_v46 = vld [vmem:[#allocation24_spill] sm:$0xff]  ;;  %v2786_v53 = vld [vmem:[#allocation18_spill] sm:$0xff] }
 0x3c7   :  { %1287 = vmatpush.msrb.mxu2 %v2195_v52  ;;  %1307 = vmatpush.msrb.mxu3 %v2198_v56  ;;  %v2787_v52 = vld [vmem:[#allocation19_spill] sm:$0xff]  ;;  %v2788_v56 = vld [vmem:[#allocation29_spill] sm:$0xff] }
 0x3c8   :  { %1248 = vmatpush.msrb.mxu0 %v2201_v61  ;;  %1268 = vmatpush.msrb.mxu1 %v2204_v54  ;;  %v2789_v61 = vld [vmem:[#allocation28_spill] sm:$0xff]  ;;  %v2790_v54 = vld [vmem:[#allocation22_spill] sm:$0xff] }
 0x3c9   :  { %1288 = vmatpush.msrb.mxu2 %v2207_v63  ;;  %1308 = vmatpush.msrb.mxu3 %v2210_v38  ;;  %v2791_v63 = vld [vmem:[#allocation23_spill] sm:$0xff] }
 0x3ca   :  { %1249 = vmatpush.msrb.mxu0 %v2213_v47  ;;  %1269 = vmatpush.msrb.mxu1 %v2216_v59  ;;  %v2792_v38 = vld [vmem:[#allocation31_spill] sm:$0xff]  ;;  %v2793_v47 = vld [vmem:[#allocation30_spill] sm:$0xff] }
 0x3cb   :  { %1289 = vmatpush.msrb.mxu2 %v2219_v43  ;;  %1309 = vmatpush.msrb.mxu3 %v2222_v57  ;;  %v2794_v59 = vld [vmem:[#allocation26_spill] sm:$0xff]  ;;  %v2795_v43 = vld [vmem:[#allocation27_spill] sm:$0xff] }
 0x3cc   :  { %1250 = vmatpush.msrb.mxu0 %v2225_v51  ;;  %1270 = vmatpush.msrb.mxu1 %v2228_v49 }
 0x3cd   :  { %1290 = vmatpush.msrb.mxu2 %v2231_v48  ;;  %1310 = vmatpush.msrb.mxu3 %v2234_v55 }
 0x3ce   :  { %1251 = vmatpush.msrb.mxu0 %v2237_v62  ;;  %1271 = vmatpush.msrb.mxu1 %v2240_v58 }
 0x3cf   :  { %1291 = vmatpush.msrb.mxu2 %v2243_v39  ;;  %1311 = vmatpush.msrb.mxu3 %v2246_v42  ;;  %v914_v39 = vld [vmem:[%s2523_s0 + $0x28] sm:$0xff] }
 0x3d0   :  { %1252 = vmatpush.msrb.mxu0 %v2249_v50  ;;  %1272 = vmatpush.msrb.mxu1 %v2769_v35 }
 0x3d1   :  { %1292 = vmatpush.msrb.mxu2 %v2770_v27  ;;  %1312 = vmatpush.msrb.mxu3 %v2771_v28 }
 0x3d2   :  { %1253 = vmatpush.msrb.mxu0 %v2772_v29  ;;  %1273 = vmatpush.msrb.mxu1 %v2773_v30 }
 0x3d3   :  { %1293 = vmatpush.msrb.mxu2 %v2774_v31  ;;  %1313 = vmatpush.msrb.mxu3 %v2775_v32 }
 0x3d4   :  { %1254 = vmatpush.msrb.mxu0 %v2776_v33  ;;  %1274 = vmatpush.msrb.mxu1 %v2777_v34 }
 0x3d5   :  { %1294 = vmatpush.msrb.mxu2 %v2778_v36  ;;  %1314 = vmatpush.msrb.mxu3 %v2779_v37 }
 0x3d6   :  { %1255 = vmatpush.msrb.mxu0 %v2780_v40  ;;  %1275 = vmatpush.msrb.mxu1 %v2781_v41 }
 0x3d7   :  { %1295 = vmatpush.msrb.mxu2 %v2782_v44  ;;  %1315 = vmatpush.msrb.mxu3 %v2783_v45 }
 0x3d8   :  { %1256 = vmatpush.msrb.mxu0 %v2784_v60  ;;  %1276 = vmatpush.msrb.mxu1 %v2785_v46 }
 0x3d9   :  { %1296 = vmatpush.msrb.mxu2 %v2786_v53  ;;  %1316 = vmatpush.msrb.mxu3 %v2787_v52 }
 0x3da   :  { %1257 = vmatpush.msrb.mxu0 %v2788_v56  ;;  %1277 = vmatpush.msrb.mxu1 %v2789_v61 }
 0x3db   :  { %1297 = vmatpush.msrb.mxu2 %v2790_v54  ;;  %1317 = vmatpush.msrb.mxu3 %v2791_v63 }
 0x3dc   :  { %1258 = vmatpush.msrb.mxu0 %v2792_v38  ;;  %1278 = vmatpush.msrb.mxu1 %v2793_v47 }
 0x3dd   :  { %1298 = vmatpush.msrb.mxu2 %v2794_v59  ;;  %1318 = vmatpush.msrb.mxu3 %v2795_v43 }
 0x439   :  { %v952_v57 = vpop.f32.mrf.mxu1  ;;  %v932_v58 = vpop.f32.mrf.mxu0 }
 0x43a   :  { %v999_v51 = vrot.slane %v952_v57, 6 }
 0x43c   :  { %v1002_v42 = vsel %vm179_vm0, %v932_v58, %v999_v51  ;;  %v1078_v58 = vld [vmem:[%s2523_s0 + $0x30] sm:$0xff] }
 0x440   :  { %v972_v49 = vpop.f32.mrf.mxu2  ;;  %v992_v48 = vpop.f32.mrf.mxu3 }
 0x441   :  { %v1000_v55 = vrot.slane %v972_v49, 4  ;;  %v1001_v62 = vrot.slane %v992_v48, 2 }
 0x443   :  { %v1003_v50 = vsel %vm181_vm1, %v1000_v55, %v1001_v62 }
 0x444   :  { %v1004_v1 = vsel %vm183_vm2, %v1002_v42, %v1003_v50 }
 0x445   :  { %v1006_v18 = vadd.f32 %v1004_v1, %v914_v39 }
 0x447   :  { %v1007_v2 = vsub.f32 0.0, %v1006_v18  ;;  %v1027_v3 = vrot.slane %v1006_v18, 2  ;;  %v1051_v4 = vrot.slane %v1006_v18, 6  ;;  %v1048_v15 = vrot.slane %v1006_v18, 4 }
 0x449   :  { %v1008_v22 = vmul.f32 1.442695, %v1007_v2  ;;  %v1029_v12 = vsub.f32 0.0, %v1027_v3  ;;  %v1053_v11 = vsub.f32 0.0, %v1051_v4 }
 0x44b   :  { %1495 = vpow2.f32 %v1008_v22  ;;  %v1030_v21 = vmul.f32 1.442695, %v1029_v12  ;;  %v1054_v26 = vmul.f32 1.442695, %v1053_v11 }
 0x44d   :  { %1497 = vpow2.f32 %v1030_v21 }
 0x44e   :  { %1499 = vpow2.f32 %v1054_v26 }
 0x451   :  { %v1496_v20 = vpop.eup %1495 }
 0x452   :  { %v1010_v8 = vadd.f32 1.0, %v1496_v20 }
 0x453   :  { %v1498_v5 = vpop.eup %1497 }
 0x454   :  { %v1500_v24 = vpop.eup %1499  ;;  %1501 = vrcp.f32 %v1010_v8  ;;  %v1032_v13 = vadd.f32 1.0, %v1498_v5  ;;  %v1022_v14 = vand.u32 2147483648, %v1010_v8  ;;  %v1020_v27 = vand.u32 2147483647, %v1010_v8 }
 0x455   :  { %v1056_v16 = vadd.f32 1.0, %v1500_v24  ;;  %vm1016_vm12 = vweird.f32 %v1010_v8 }
 0x456   :  { %1503 = vrcp.f32 %v1032_v13  ;;  %v1044_v28 = vand.u32 2147483648, %v1032_v13  ;;  %v1042_v31 = vand.u32 2147483647, %v1032_v13  ;;  %v1023_v32 = vor.u32 1.1754944e-38, %v1022_v14 }
 0x457   :  { %1505 = vrcp.f32 %v1056_v16  ;;  %vm1021_vm15 = vcmp.eq.f32.partialorder %v1020_v27, 8.507059e+37  ;;  %vm1038_vm3 = vweird.f32 %v1032_v13  ;;  %v1068_v61 = vand.u32 2147483648, %v1056_v16 }
 0x458   :  { %1507 = vtanh.f32 %v1048_v15  ;;  %v1045_v40 = vor.u32 1.1754944e-38, %v1044_v28  ;;  %vm1043_vm5 = vcmp.eq.f32.partialorder %v1042_v31, 8.507059e+37  ;;  %vm1062_vm7 = vweird.f32 %v1056_v16 }
 0x459   :  { %v1066_v54 = vand.u32 2147483647, %v1056_v16  ;;  %v1069_v38 = vor.u32 1.1754944e-38, %v1068_v61 }
 0x45a   :  { %v1502_v19 = vpop.eup %1501 }
 0x45b   :  { %v1012_v7 = vmul.f32 %v1502_v19, %v1010_v8  ;;  %vm1017_vm11 = vweird.f32 %v1502_v19  ;;  %vm1067_vm9 = vcmp.eq.f32.partialorder %v1066_v54, 8.507059e+37 }
 0x45c   :  { %v1504_v9 = vpop.eup %1503  ;;  %vm1018_vm14 = vmor %vm1016_vm12, %vm1017_vm11 }
 0x45d   :  { %v1506_v25 = vpop.eup %1505  ;;  %v1013_v17 = vsub.f32 1.0, %v1012_v7  ;;  %v1034_v10 = vmul.f32 %v1504_v9, %v1032_v13  ;;  %vm1039_vm13 = vweird.f32 %v1504_v9 }
 0x45e   :  { %v1058_v23 = vmul.f32 %v1506_v25, %v1056_v16  ;;  %vm1040_vm4 = vmor %vm1038_vm3, %vm1039_vm13  ;;  %v1508_v44 = vpop.eup %1507  ;;  %vm1063_vm6 = vweird.f32 %v1506_v25 }
 0x45f   :  { %v1035_v6 = vsub.f32 1.0, %v1034_v10  ;;  %v1014_v35 = vmul.f32 %v1502_v19, %v1013_v17  ;;  %vm1064_vm8 = vmor %vm1062_vm7, %vm1063_vm6 }
 0x460   :  { %v1059_v33 = vsub.f32 1.0, %v1058_v23 }
 0x461   :  { %v1015_v29 = vadd.f32 %v1502_v19, %v1014_v35  ;;  %v1036_v30 = vmul.f32 %v1504_v9, %v1035_v6 }
 0x462   :  { %v1060_v60 = vmul.f32 %v1506_v25, %v1059_v33 }
 0x463   :  { %v1019_v34 = vsel %vm1018_vm14, %v1502_v19, %v1015_v29  ;;  %v1037_v36 = vadd.f32 %v1504_v9, %v1036_v30 }
 0x464   :  { %v1024_v37 = vsel %vm1021_vm15, %v1023_v32, %v1019_v34  ;;  %v1061_v56 = vadd.f32 %v1506_v25, %v1060_v60 }
 0x465   :  { %v1041_v41 = vsel %vm1040_vm4, %v1504_v9, %v1037_v36  ;;  %v1073_v53 = vmul.f32 %v1508_v44, %v1024_v37 }
 0x466   :  { %v1046_v45 = vsel %vm1043_vm5, %v1045_v40, %v1041_v41  ;;  %v1065_v63 = vsel %vm1064_vm8, %v1506_v25, %v1061_v56 }
 0x467   :  { %v1072_v46 = vmul.f32 %v1046_v45, %v2417_v0  ;;  %v1070_v59 = vsel %vm1067_vm9, %v1069_v38, %v1065_v63 }
 0x469   :  { %v2494_v52 = vadd.f32 %v1073_v53, %v1072_v46 }
 0x46b   :  { %1509 = vtanh.f32 %v2494_v52 }
 0x471   :  { %v1510_v47 = vpop.eup %1509 }
 0x472   :  { %v1076_v43 = vmul.f32 %v1510_v47, %v1070_v59 }
 0x474   :  { %1077 = vst [vmem:[%s2525_s2 + $0xa] sm:$0x3] %v1076_v43  ;;  %1095 = vmatmul.f32.vlgmr.msra.gmra.mxu0 %v1076_v43  ;;  %1115 = vmatmul.f32.vlgmr.msra.gmra.mxu1 %v1076_v43 }
 0x475   :  { %1135 = vmatmul.f32.vlgmr.msra.gmra.mxu2 %v1076_v43  ;;  %1155 = vmatmul.f32.vlgmr.msra.gmra.mxu3 %v1076_v43 }
 0x4f1   :  { %v1116_v0 = vpop.f32.mrf.mxu1  ;;  %v1096_v62 = vpop.f32.mrf.mxu0 }
 0x4f2   :  { %v1163_v57 = vrot.slane %v1116_v0, 6 }
 0x4f4   :  { %v1166_v39 = vsel %vm179_vm0, %v1096_v62, %v1163_v57  ;;  %v1242_v62 = vld [vmem:[%s2523_s0 + $0x38] sm:$0xff] }
 0x4f8   :  { %v1136_v51 = vpop.f32.mrf.mxu2  ;;  %v1156_v49 = vpop.f32.mrf.mxu3 }
 0x4f9   :  { %v1164_v48 = vrot.slane %v1136_v51, 4  ;;  %v1165_v55 = vrot.slane %v1156_v49, 2 }
 0x4fb   :  { %v1167_v42 = vsel %vm181_vm1, %v1164_v48, %v1165_v55 }
 0x4fc   :  { %v1168_v50 = vsel %vm183_vm2, %v1166_v39, %v1167_v42 }
 0x4fd   :  { %v1170_v1 = vadd.f32 %v1168_v50, %v1078_v58 }
 0x4ff   :  { %v1171_v18 = vsub.f32 0.0, %v1170_v1  ;;  %v1191_v2 = vrot.slane %v1170_v1, 2  ;;  %v1215_v3 = vrot.slane %v1170_v1, 6  ;;  %v1212_v9 = vrot.slane %v1170_v1, 4 }
 0x501   :  { %v1172_v4 = vmul.f32 1.442695, %v1171_v18  ;;  %v1193_v22 = vsub.f32 0.0, %v1191_v2  ;;  %v1217_v12 = vsub.f32 0.0, %v1215_v3 }
 0x503   :  { %1511 = vpow2.f32 %v1172_v4  ;;  %v1194_v11 = vmul.f32 1.442695, %v1193_v22  ;;  %v1218_v21 = vmul.f32 1.442695, %v1217_v12 }
 0x505   :  { %1513 = vpow2.f32 %v1194_v11 }
 0x506   :  { %1515 = vpow2.f32 %v1218_v21 }
 0x509   :  { %v1512_v26 = vpop.eup %1511 }
 0x50a   :  { %v1174_v20 = vadd.f32 1.0, %v1512_v26 }
 0x50b   :  { %v1514_v8 = vpop.eup %1513 }
 0x50c   :  { %v1516_v5 = vpop.eup %1515  ;;  %1517 = vrcp.f32 %v1174_v20  ;;  %v1196_v24 = vadd.f32 1.0, %v1514_v8  ;;  %v1186_v10 = vand.u32 2147483648, %v1174_v20  ;;  %v1184_v35 = vand.u32 2147483647, %v1174_v20 }
 0x50d   :  { %v1220_v13 = vadd.f32 1.0, %v1516_v5  ;;  %vm1180_vm11 = vweird.f32 %v1174_v20 }
 0x50e   :  { %1519 = vrcp.f32 %v1196_v24  ;;  %v1208_v27 = vand.u32 2147483648, %v1196_v24  ;;  %v1206_v30 = vand.u32 2147483647, %v1196_v24  ;;  %v1187_v31 = vor.u32 1.1754944e-38, %v1186_v10 }
 0x50f   :  { %1521 = vrcp.f32 %v1220_v13  ;;  %vm1185_vm14 = vcmp.eq.f32.partialorder %v1184_v35, 8.507059e+37  ;;  %vm1202_vm15 = vweird.f32 %v1196_v24  ;;  %v1232_v61 = vand.u32 2147483648, %v1220_v13 }
 0x510   :  { %1523 = vtanh.f32 %v1212_v9  ;;  %v1209_v37 = vor.u32 1.1754944e-38, %v1208_v27  ;;  %vm1207_vm4 = vcmp.eq.f32.partialorder %v1206_v30, 8.507059e+37  ;;  %vm1226_vm6 = vweird.f32 %v1220_v13 }
 0x511   :  { %v1230_v54 = vand.u32 2147483647, %v1220_v13  ;;  %v1233_v38 = vor.u32 1.1754944e-38, %v1232_v61 }
 0x512   :  { %v1518_v16 = vpop.eup %1517 }
 0x513   :  { %v1176_v19 = vmul.f32 %v1518_v16, %v1174_v20  ;;  %vm1181_vm10 = vweird.f32 %v1518_v16  ;;  %vm1231_vm8 = vcmp.eq.f32.partialorder %v1230_v54, 8.507059e+37 }
 0x514   :  { %v1520_v7 = vpop.eup %1519  ;;  %vm1182_vm13 = vmor %vm1180_vm11, %vm1181_vm10 }
 0x515   :  { %v1522_v15 = vpop.eup %1521  ;;  %v1177_v25 = vsub.f32 1.0, %v1176_v19  ;;  %v1198_v17 = vmul.f32 %v1520_v7, %v1196_v24  ;;  %vm1203_vm12 = vweird.f32 %v1520_v7 }
 0x516   :  { %v1222_v14 = vmul.f32 %v1522_v15, %v1220_v13  ;;  %vm1204_vm3 = vmor %vm1202_vm15, %vm1203_vm12  ;;  %v1524_v41 = vpop.eup %1523  ;;  %vm1227_vm5 = vweird.f32 %v1522_v15 }
 0x517   :  { %v1199_v23 = vsub.f32 1.0, %v1198_v17  ;;  %v1178_v6 = vmul.f32 %v1518_v16, %v1177_v25  ;;  %vm1228_vm7 = vmor %vm1226_vm6, %vm1227_vm5 }
 0x518   :  { %v1223_v32 = vsub.f32 1.0, %v1222_v14 }
 0x519   :  { %v1179_v28 = vadd.f32 %v1518_v16, %v1178_v6  ;;  %v1200_v29 = vmul.f32 %v1520_v7, %v1199_v23 }
 0x51a   :  { %v1224_v45 = vmul.f32 %v1522_v15, %v1223_v32 }
 0x51b   :  { %v1183_v33 = vsel %vm1182_vm13, %v1518_v16, %v1179_v28  ;;  %v1201_v34 = vadd.f32 %v1520_v7, %v1200_v29 }
 0x51c   :  { %v1188_v36 = vsel %vm1185_vm14, %v1187_v31, %v1183_v33  ;;  %v1225_v56 = vadd.f32 %v1522_v15, %v1224_v45 }
 0x51d   :  { %v1205_v40 = vsel %vm1204_vm3, %v1520_v7, %v1201_v34  ;;  %v1237_v46 = vmul.f32 %v1524_v41, %v1188_v36 }
 0x51e   :  { %v1210_v44 = vsel %vm1207_vm4, %v1209_v37, %v1205_v40  ;;  %v1229_v63 = vsel %vm1228_vm7, %v1522_v15, %v1225_v56 }
 0x51f   :  { %v1236_v60 = vmul.f32 %v1210_v44, %v2494_v52  ;;  %v1234_v59 = vsel %vm1231_vm8, %v1233_v38, %v1229_v63 }
 0x521   :  { %v2507_v53 = vadd.f32 %v1237_v46, %v1236_v60 }
 0x523   :  { %1525 = vtanh.f32 %v2507_v53 }
 0x529   :  { %v1526_v47 = vpop.eup %1525 }
 0x52a   :  { %v1240_v43 = vmul.f32 %v1526_v47, %v1234_v59 }
 0x52c   :  { %1241 = vst [vmem:[%s2525_s2 + $0xc] sm:$0x3] %v1240_v43  ;;  %1259 = vmatmul.f32.vlgmr.msrb.gmra.mxu0 %v1240_v43  ;;  %1279 = vmatmul.f32.vlgmr.msrb.gmra.mxu1 %v1240_v43 }
 0x52d   :  { %1299 = vmatmul.f32.vlgmr.msrb.gmra.mxu2 %v1240_v43  ;;  %1319 = vmatmul.f32.vlgmr.msrb.gmra.mxu3 %v1240_v43 }
 0x5a9   :  { %v1280_v52 = vpop.f32.mrf.mxu1  ;;  %v1260_v55 = vpop.f32.mrf.mxu0 }
 0x5aa   :  { %v1327_v0 = vrot.slane %v1280_v52, 6 }
 0x5ac   :  { %v1330_v58 = vsel %vm179_vm0, %v1260_v55, %v1327_v0 }
 0x5b0   :  { %v1300_v57 = vpop.f32.mrf.mxu2  ;;  %v1320_v51 = vpop.f32.mrf.mxu3 }
 0x5b1   :  { %v1328_v49 = vrot.slane %v1300_v57, 4  ;;  %v1329_v48 = vrot.slane %v1320_v51, 2 }
 0x5b3   :  { %v1331_v39 = vsel %vm181_vm1, %v1328_v49, %v1329_v48 }
 0x5b4   :  { %v1332_v42 = vsel %vm183_vm2, %v1330_v58, %v1331_v39 }
 0x5b5   :  { %v1334_v50 = vadd.f32 %v1332_v42, %v1242_v62 }
 0x5b7   :  { %v1335_v1 = vsub.f32 0.0, %v1334_v50  ;;  %v1355_v18 = vrot.slane %v1334_v50, 2  ;;  %v1379_v2 = vrot.slane %v1334_v50, 6  ;;  %v1376_v9 = vrot.slane %v1334_v50, 4 }
 0x5b9   :  { %v1336_v3 = vmul.f32 1.442695, %v1335_v1  ;;  %v1357_v4 = vsub.f32 0.0, %v1355_v18  ;;  %v1381_v22 = vsub.f32 0.0, %v1379_v2 }
 0x5bb   :  { %1527 = vpow2.f32 %v1336_v3  ;;  %v1358_v12 = vmul.f32 1.442695, %v1357_v4  ;;  %v1382_v11 = vmul.f32 1.442695, %v1381_v22 }
 0x5bd   :  { %1529 = vpow2.f32 %v1358_v12 }
 0x5be   :  { %1531 = vpow2.f32 %v1382_v11 }
 0x5c1   :  { %v1528_v21 = vpop.eup %1527 }
 0x5c2   :  { %v1338_v26 = vadd.f32 1.0, %v1528_v21 }
 0x5c3   :  { %v1530_v20 = vpop.eup %1529 }
 0x5c4   :  { %v1532_v8 = vpop.eup %1531  ;;  %1533 = vrcp.f32 %v1338_v26  ;;  %v1360_v5 = vadd.f32 1.0, %v1530_v20  ;;  %v1350_v10 = vand.u32 2147483648, %v1338_v26  ;;  %v1348_v23 = vand.u32 2147483647, %v1338_v26 }
 0x5c5   :  { %v1384_v24 = vadd.f32 1.0, %v1532_v8  ;;  %vm1344_vm1 = vweird.f32 %v1338_v26 }
 0x5c6   :  { %1535 = vrcp.f32 %v1360_v5  ;;  %v1372_v27 = vand.u32 2147483648, %v1360_v5  ;;  %v1370_v29 = vand.u32 2147483647, %v1360_v5  ;;  %v1351_v31 = vor.u32 1.1754944e-38, %v1350_v10 }
 0x5c7   :  { %1537 = vrcp.f32 %v1384_v24  ;;  %vm1349_vm10 = vcmp.eq.f32.partialorder %v1348_v23, 8.507059e+37  ;;  %vm1366_vm11 = vweird.f32 %v1360_v5  ;;  %v1396_v61 = vand.u32 2147483648, %v1384_v24 }
 0x5c8   :  { %1539 = vtanh.f32 %v1376_v9  ;;  %v1373_v36 = vor.u32 1.1754944e-38, %v1372_v27  ;;  %vm1371_vm13 = vcmp.eq.f32.partialorder %v1370_v29, 8.507059e+37  ;;  %vm1390_vm15 = vweird.f32 %v1384_v24 }
 0x5c9   :  { %v1394_v54 = vand.u32 2147483647, %v1384_v24  ;;  %v1397_v38 = vor.u32 1.1754944e-38, %v1396_v61 }
 0x5ca   :  { %v1534_v13 = vpop.eup %1533 }
 0x5cb   :  { %v1340_v16 = vmul.f32 %v1534_v13, %v1338_v26  ;;  %vm1345_vm0 = vweird.f32 %v1534_v13  ;;  %vm1395_vm4 = vcmp.eq.f32.partialorder %v1394_v54, 8.507059e+37 }
 0x5cc   :  { %v1536_v19 = vpop.eup %1535  ;;  %vm1346_vm2 = vmor %vm1344_vm1, %vm1345_vm0 }
 0x5cd   :  { %v1341_v7 = vsub.f32 1.0, %v1340_v16  ;;  %v1538_v15 = vpop.eup %1537  ;;  %v1362_v25 = vmul.f32 %v1536_v19, %v1360_v5  ;;  %vm1367_vm9 = vweird.f32 %v1536_v19 }
 0x5ce   :  { %v1386_v14 = vmul.f32 %v1538_v15, %v1384_v24  ;;  %vm1368_vm12 = vmor %vm1366_vm11, %vm1367_vm9  ;;  %v1540_v40 = vpop.eup %1539  ;;  %vm1391_vm14 = vweird.f32 %v1538_v15 }
 0x5cf   :  { %v1342_v17 = vmul.f32 %v1534_v13, %v1341_v7  ;;  %v1363_v6 = vsub.f32 1.0, %v1362_v25  ;;  %vm1392_vm3 = vmor %vm1390_vm15, %vm1391_vm14 }
 0x5d0   :  { %v1387_v32 = vsub.f32 1.0, %v1386_v14 }
 0x5d1   :  { %v1343_v35 = vadd.f32 %v1534_v13, %v1342_v17  ;;  %v1364_v28 = vmul.f32 %v1536_v19, %v1363_v6 }
 0x5d2   :  { %v1388_v44 = vmul.f32 %v1538_v15, %v1387_v32 }
 0x5d3   :  { %v1347_v30 = vsel %vm1346_vm2, %v1534_v13, %v1343_v35  ;;  %v1365_v33 = vadd.f32 %v1536_v19, %v1364_v28 }
 0x5d4   :  { %v1352_v34 = vsel %vm1349_vm10, %v1351_v31, %v1347_v30  ;;  %v1389_v56 = vadd.f32 %v1538_v15, %v1388_v44 }
 0x5d5   :  { %v1369_v37 = vsel %vm1368_vm12, %v1536_v19, %v1365_v33  ;;  %v1401_v60 = vmul.f32 %v1540_v40, %v1352_v34 }
 0x5d6   :  { %v1374_v41 = vsel %vm1371_vm13, %v1373_v36, %v1369_v37  ;;  %v1393_v63 = vsel %vm1392_vm3, %v1538_v15, %v1389_v56 }
 0x5d7   :  { %v1400_v45 = vmul.f32 %v1374_v41, %v2507_v53  ;;  %v1398_v59 = vsel %vm1395_vm4, %v1397_v38, %v1393_v63 }
 0x5d9   :  { %v1402_v46 = vadd.f32 %v1401_v60, %v1400_v45 }
 0x5db   :  { %1541 = vtanh.f32 %v1402_v46 }
 0x5e1   :  { %v1542_v47 = vpop.eup %1541 }
 0x5e2   :  { %v1404_v43 = vmul.f32 %v1542_v47, %v1398_v59 }
 0x5e4   :  { %1405 = vst [vmem:[%s2525_s2 + $0xe] sm:$0x3] %v1404_v43 }
 0x5e5   :  { %1410 = vsyncpa [#allocation3], 1 }

</bundles_post_ra>
